<compile_context>
chip_gen: v6e
topology: v6e:2x2x1
jax: 0.10.0
libtpu: 0.0.40
codegen_flags: <defaults>
</compile_context>

<pallas_src>
import numpy as np
import jax
import jax.numpy as jnp
from jax import lax
from jax.experimental import pallas as pl
from jax.experimental.pallas import tpu as pltpu


# ----------------------------------------------------------------------------
# Fused forward kernel (one grid step == one batch element)
# ----------------------------------------------------------------------------
def _complexyolo_kernel(x_ref, w0_ref, sh0_ref, bs0_ref, bb0_ref, pool_ref,
                        w1_ref, sh1_ref, bs1_ref, bb1_ref,
                        wh_ref, bh_ref, a1_ref, a2_ref, a3_ref, esel_ref,
                        boff_ref, o_ref):
    f32 = jnp.float32

    def leaky(v):
        return jnp.where(v > 0, v, 0.1 * v)

    def conv3x3(act, w_ref, s_ref):
        # act: (C_in, S), spatial on lanes.  For each of the 9 taps the
        # shifted + zero-padded activation is act @ S_tap (exact 0/1 selection
        # on the MXU), then a (C_out, C_in) @ (C_in, S) channel mix.
        acc = None
        for t in range(w_ref.shape[0]):
            shifted = jnp.dot(act, s_ref[t], preferred_element_type=f32)
            part = jnp.dot(w_ref[t], shifted, preferred_element_type=f32)
            acc = part if acc is None else acc + part
        return acc

    # ---- conv_0: 3x3 s1 + folded BN + LeakyReLU(0.1) -----------------------
    y0 = leaky(conv3x3(x_ref[0], w0_ref, sh0_ref) * bs0_ref[...] + bb0_ref[...])

    # ---- maxpool_1: 2x2 stride 2 = max of 4 MXU selection matmuls ----------
    pooled = None
    for k in range(pool_ref.shape[0]):
        cand = jnp.dot(y0, pool_ref[k], preferred_element_type=f32)
        pooled = cand if pooled is None else jnp.maximum(pooled, cand)

    # ---- conv_2: 3x3 s1 + folded BN + LeakyReLU(0.1) -----------------------
    y1 = leaky(conv3x3(pooled, w1_ref, sh1_ref) * bs1_ref[...] + bb1_ref[...])

    # ---- conv_3 head: 1x1 s1 + bias (linear) -------------------------------
    head = jnp.dot(wh_ref[...], y1, preferred_element_type=f32) + bh_ref[...]

    # ---- yolo_4: Euler-angle decode (all coefficients precomputed) ---------
    sig = pl.reciprocal(1.0 + jnp.exp(-head), approx=False)
    expv = jnp.exp(head * esel_ref[...])      # exp(0)=1 on non-w/h channels
    dec = (a1_ref[...] * sig + a2_ref[...] * expv
           + a3_ref[...] * head + boff_ref[...])          # (A*D, G*G)
    o_ref[...] = dec.reshape(o_ref.shape)


# ----------------------------------------------------------------------------
# Wrapper: one fused pallas_call for the whole forward (targets=None)
# ----------------------------------------------------------------------------
def complexyolo_forward(x_nchw, params):
    N, C_in, H, W = x_nchw.shape
    assert H == W and H % 2 == 0, "YOLO stride derivation assumes square, even maps"
    HW = H * W
    Ho, Wo = H // 2, W // 2
    G, GG = Ho, Ho * Wo                # head grid after the single 2x2/2 maxpool
    stride = float(H) / float(G)

    w0, w1, wh = params["w0"], params["w1"], params["wh"]
    C1, C2 = w0.shape[3], w1.shape[3]
    A = params["anchors"].shape[0]
    D = params["num_classes"] + 7
    AD = A * D
    assert wh.shape[3] == AD

    # Activations: NCHW -> (N, C, H*W), spatial on lanes (pure reshape).
    x = x_nchw.reshape(N, C_in, HW).astype(jnp.float32)

    # Conv weights: (K,K,Cin,Cout) -> per-tap (9, Cout, Cin).
    wt0 = jnp.transpose(w0.reshape(9, C_in, C1), (0, 2, 1)).astype(jnp.float32)
    wt1 = jnp.transpose(w1.reshape(9, C1, C2), (0, 2, 1)).astype(jnp.float32)
    whT = wh.reshape(C2, AD).T.astype(jnp.float32)
    bs0 = params["s0"].reshape(C1, 1).astype(jnp.float32)
    bb0 = params["b0"].reshape(C1, 1).astype(jnp.float32)
    bs1 = params["s1"].reshape(C2, 1).astype(jnp.float32)
    bb1 = params["b1"].reshape(C2, 1).astype(jnp.float32)
    bh = params["bh"].reshape(AD, 1).astype(jnp.float32)

    # Precomputed 0/1 shift-selection matrices (zero padding folded in).
    def shift_mats(hh, ww):
        hw = hh * ww
        S = np.zeros((9, hw, hw), np.float32)
        for t in range(9):
            dy, dx = t // 3 - 1, t % 3 - 1
            for y in range(hh):
                ys = y + dy
                if not 0 <= ys < hh:
                    continue
                for xx in range(ww):
                    xs = xx + dx
                    if 0 <= xs < ww:
                        S[t, ys * ww + xs, y * ww + xx] = 1.0
        return jnp.asarray(S)

    def pool_mats(hh, ww):
        ho, wo = hh // 2, ww // 2
        P = np.zeros((4, hh * ww, ho * wo), np.float32)
        for k in range(4):
            ry, rx = k // 2, k % 2
            for yo in range(ho):
                for xo in range(wo):
                    P[k, (2 * yo + ry) * ww + (2 * xo + rx), yo * wo + xo] = 1.0
        return jnp.asarray(P)

    S0 = shift_mats(H, W)            # (9, HW, HW)
    S1 = shift_mats(Ho, Wo)          # (9, GG, GG)
    PM = pool_mats(H, W)             # (4, HW, GG)

    # Precomputed, grid-invariant YOLO-decode coefficients.
    anch = np.asarray(params["anchors"], np.float32)
    d_idx = np.arange(AD) % D
    a_idx = np.arange(AD) // D
    a1 = np.where(d_idx < 2, stride, np.where(d_idx >= 6, 1.0, 0.0))
    a2 = np.where(d_idx == 2, anch[a_idx, 0],
                  np.where(d_idx == 3, anch[a_idx, 1], 0.0))
    a3 = ((d_idx == 4) | (d_idx == 5)).astype(np.float32)
    esel = ((d_idx == 2) | (d_idx == 3)).astype(np.float32)
    gx = (np.arange(GG) % G).astype(np.float32)
    gy = (np.arange(GG) // G).astype(np.float32)
    boff = stride * ((d_idx == 0)[:, None] * gx[None, :]
                     + (d_idx == 1)[:, None] * gy[None, :])        # (AD, GG)
    a1 = jnp.asarray(a1, jnp.float32).reshape(AD, 1)
    a2 = jnp.asarray(a2, jnp.float32).reshape(AD, 1)
    a3 = jnp.asarray(a3, jnp.float32).reshape(AD, 1)
    esel = jnp.asarray(esel, jnp.float32).reshape(AD, 1)
    boff = jnp.asarray(boff, jnp.float32)

    const2d = lambda n: (0, 0)
    const3d = lambda n: (0, 0, 0)

    raw = pl.pallas_call(
        _complexyolo_kernel,
        out_shape=jax.ShapeDtypeStruct((N, AD, GG), jnp.float32),
        grid=(N,),
        in_specs=[
            pl.BlockSpec((1, C_in, HW), lambda n: (n, 0, 0)),
            pl.BlockSpec((9, C1, C_in), const3d),
            pl.BlockSpec((9, HW, HW), const3d),
            pl.BlockSpec((C1, 1), const2d),
            pl.BlockSpec((C1, 1), const2d),
            pl.BlockSpec((4, HW, GG), const3d),
            pl.BlockSpec((9, C2, C1), const3d),
            pl.BlockSpec((9, GG, GG), const3d),
            pl.BlockSpec((C2, 1), const2d),
            pl.BlockSpec((C2, 1), const2d),
            pl.BlockSpec((AD, C2), const2d),
            pl.BlockSpec((AD, 1), const2d),
            pl.BlockSpec((AD, 1), const2d),
            pl.BlockSpec((AD, 1), const2d),
            pl.BlockSpec((AD, 1), const2d),
            pl.BlockSpec((AD, 1), const2d),
            pl.BlockSpec((AD, GG), const2d),
        ],
        out_specs=pl.BlockSpec((1, AD, GG), lambda n: (n, 0, 0)),
        compiler_params=pltpu.CompilerParams(
            dimension_semantics=("parallel",),          # batch across v7x TCs
            vmem_limit_bytes=32 * 1024 * 1024),
    )(x, wt0, S0, bs0, bb0, PM, wt1, S1, bs1, bb1, whT, bh,
      a1, a2, a3, esel, boff)

    # (N, A*D, G*G) -> (N, A*G*G, 7+C): anchor-major torch YOLOLayer ordering.
    # Pure layout plumbing, kept out of the kernel per the perf review.
    return raw.reshape(N, A, D, GG).transpose(0, 1, 3, 2).reshape(N, A * GG, D)


# ----------------------------------------------------------------------------
# Deterministic parameter construction
# ----------------------------------------------------------------------------
def init_params(key, cin=4, c1=16, c2=16, num_anchors=2, num_classes=3):
    D = num_classes + 7
    chead = num_anchors * D
    ks = jax.random.split(key, 12)

    def bn_fold(kg, kb, km, kv, c):
        gamma = 1.0 + 0.1 * jax.random.normal(kg, (c,), jnp.float32)
        beta = 0.1 * jax.random.normal(kb, (c,), jnp.float32)
        mean = 0.1 * jax.random.normal(km, (c,), jnp.float32)
        var = 1.0 + 0.1 * jax.random.uniform(kv, (c,), jnp.float32)
        scale = gamma / jnp.sqrt(var + 1e-5)
        bias = beta - mean * scale
        return scale, bias

    w0 = 0.1 * jax.random.normal(ks[0], (3, 3, cin, c1), jnp.float32)
    s0, b0 = bn_fold(ks[1], ks[2], ks[3], ks[4], c1)
    w1 = 0.1 * jax.random.normal(ks[5], (3, 3, c1, c2), jnp.float32)
    s1, b1 = bn_fold(ks[6], ks[7], ks[8], ks[9], c2)
    wh = 0.1 * jax.random.normal(ks[10], (1, 1, c2, chead), jnp.float32)
    bh = 0.1 * jax.random.normal(ks[11], (chead,), jnp.float32)
    sh = jnp.ones((chead,), jnp.float32)
    # anchors: (a_w, a_h, sin(angle), cos(angle)) — only w, h used in forward.
    anchors = jnp.array([[1.5, 2.0, np.sin(0.3), np.cos(0.3)],
                         [3.0, 1.0, np.sin(1.2), np.cos(1.2)]], jnp.float32)
    return dict(w0=w0, s0=s0, b0=b0, w1=w1, s1=s1, b1=b1,
                wh=wh, sh=sh, bh=bh, anchors=anchors, num_classes=num_classes)


# ----------------------------------------------------------------------------
# Pure-JAX reference (for correctness check)
# ----------------------------------------------------------------------------
def ref_forward(x_nchw, params):
    x = jnp.transpose(x_nchw, (0, 2, 3, 1)).astype(jnp.float32)
    img_dim = x_nchw.shape[2]

    def conv(x, w, s, b, leaky, pad):
        y = lax.conv_general_dilated(x, w, (1, 1), [(pad, pad), (pad, pad)],
                                     dimension_numbers=("NHWC", "HWIO", "NHWC"))
        y = y * s.reshape(1, 1, 1, -1) + b.reshape(1, 1, 1, -1)
        return jnp.where(y > 0, y, 0.1 * y) if leaky else y

    x = conv(x, params["w0"], params["s0"], params["b0"], True, 1)
    x = lax.reduce_window(x, -jnp.inf, lax.max, (1, 2, 2, 1), (1, 2, 2, 1),
                          "VALID")
    x = conv(x, params["w1"], params["s1"], params["b1"], True, 1)
    x = conv(x, params["wh"], params["sh"], params["bh"], False, 0)

    N, G, _, _ = x.shape
    A = params["anchors"].shape[0]
    nc = params["num_classes"]
    D = nc + 7
    stride = float(img_dim) / float(G)
    pred = x.reshape(N, G, G, A, D).transpose(0, 3, 1, 2, 4)
    sig = jax.nn.sigmoid
    gx = jnp.arange(G, dtype=jnp.float32).reshape(1, 1, 1, G)
    gy = jnp.arange(G, dtype=jnp.float32).reshape(1, 1, G, 1)
    aw = (params["anchors"][:, 0] / stride).reshape(1, A, 1, 1)
    ah = (params["anchors"][:, 1] / stride).reshape(1, A, 1, 1)
    bx = (sig(pred[..., 0]) + gx) * stride
    by = (sig(pred[..., 1]) + gy) * stride
    bw = jnp.exp(pred[..., 2]) * aw * stride
    bh = jnp.exp(pred[..., 3]) * ah * stride
    im = pred[..., 4]
    re = pred[..., 5]
    conf = sig(pred[..., 6])
    cls = sig(pred[..., 7:])
    head = jnp.stack([bx, by, bw, bh, im, re, conf], axis=-1)
    out = jnp.concatenate([head, cls], axis=-1)
    return out.reshape(N, A * G * G, D)


if __name__ == "__main__":
    key = jax.random.PRNGKey(0)
    kx, kp = jax.random.split(key)
    x = jax.random.normal(kx, (2, 4, 16, 16), jnp.float32)   # NCHW, like torch
    params = init_params(kp)

    out = complexyolo_forward(x, params)
    out = jax.block_until_ready(out)

    ref = ref_forward(x, params)
    assert out.shape == (2, 2 * 8 * 8, 10), out.shape
    np.testing.assert_allclose(np.asarray(out), np.asarray(ref),
                               rtol=2e-4, atol=2e-4)
    print("KERNEL_OK")
</pallas_src>

<mosaic_0001>
module attributes {stable_mosaic.version = 11 : i64} {
  func.func @_complexyolo_kernel(%arg0: i32, %arg1: memref<1x4x256xf32, #tpu.memory_space<vmem>>, %arg2: memref<9x16x4xf32, #tpu.memory_space<vmem>>, %arg3: memref<9x256x256xf32, #tpu.memory_space<vmem>>, %arg4: memref<16x1xf32, #tpu.memory_space<vmem>>, %arg5: memref<16x1xf32, #tpu.memory_space<vmem>>, %arg6: memref<4x256x64xf32, #tpu.memory_space<vmem>>, %arg7: memref<9x16x16xf32, #tpu.memory_space<vmem>>, %arg8: memref<9x64x64xf32, #tpu.memory_space<vmem>>, %arg9: memref<16x1xf32, #tpu.memory_space<vmem>>, %arg10: memref<16x1xf32, #tpu.memory_space<vmem>>, %arg11: memref<20x16xf32, #tpu.memory_space<vmem>>, %arg12: memref<20x1xf32, #tpu.memory_space<vmem>>, %arg13: memref<20x1xf32, #tpu.memory_space<vmem>>, %arg14: memref<20x1xf32, #tpu.memory_space<vmem>>, %arg15: memref<20x1xf32, #tpu.memory_space<vmem>>, %arg16: memref<20x1xf32, #tpu.memory_space<vmem>>, %arg17: memref<20x64xf32, #tpu.memory_space<vmem>>, %arg18: memref<1x20x64xf32, #tpu.memory_space<vmem>>) attributes {dimension_semantics = [#tpu.dimension_semantics<parallel>], iteration_bounds = array<i64: 2>, scalar_prefetch = 0 : i64, scratch_operands = 0 : i64, tpu.core_type = #tpu.core_type<tc>, window_params = [{transform_indices = @transform_0, window_bounds = array<i64: 1, 4, 256>}, {pipeline_mode = #tpu.pipeline_mode<synchronous>, transform_indices = @transform_1, window_bounds = array<i64: 9, 16, 4>}, {pipeline_mode = #tpu.pipeline_mode<synchronous>, transform_indices = @transform_2, window_bounds = array<i64: 9, 256, 256>}, {pipeline_mode = #tpu.pipeline_mode<synchronous>, transform_indices = @transform_3, window_bounds = array<i64: 16, 1>}, {pipeline_mode = #tpu.pipeline_mode<synchronous>, transform_indices = @transform_4, window_bounds = array<i64: 16, 1>}, {pipeline_mode = #tpu.pipeline_mode<synchronous>, transform_indices = @transform_5, window_bounds = array<i64: 4, 256, 64>}, {pipeline_mode = #tpu.pipeline_mode<synchronous>, transform_indices = @transform_6, window_bounds = array<i64: 9, 16, 16>}, {pipeline_mode = #tpu.pipeline_mode<synchronous>, transform_indices = @transform_7, window_bounds = array<i64: 9, 64, 64>}, {pipeline_mode = #tpu.pipeline_mode<synchronous>, transform_indices = @transform_8, window_bounds = array<i64: 16, 1>}, {pipeline_mode = #tpu.pipeline_mode<synchronous>, transform_indices = @transform_9, window_bounds = array<i64: 16, 1>}, {pipeline_mode = #tpu.pipeline_mode<synchronous>, transform_indices = @transform_10, window_bounds = array<i64: 20, 16>}, {pipeline_mode = #tpu.pipeline_mode<synchronous>, transform_indices = @transform_11, window_bounds = array<i64: 20, 1>}, {pipeline_mode = #tpu.pipeline_mode<synchronous>, transform_indices = @transform_12, window_bounds = array<i64: 20, 1>}, {pipeline_mode = #tpu.pipeline_mode<synchronous>, transform_indices = @transform_13, window_bounds = array<i64: 20, 1>}, {pipeline_mode = #tpu.pipeline_mode<synchronous>, transform_indices = @transform_14, window_bounds = array<i64: 20, 1>}, {pipeline_mode = #tpu.pipeline_mode<synchronous>, transform_indices = @transform_15, window_bounds = array<i64: 20, 1>}, {pipeline_mode = #tpu.pipeline_mode<synchronous>, transform_indices = @transform_16, window_bounds = array<i64: 20, 64>}, {transform_indices = @transform_17, window_bounds = array<i64: 1, 20, 64>}]} {
    %c0 = arith.constant 0 : index
    %c0_0 = arith.constant 0 : index
    %c0_1 = arith.constant 0 : index
    %0 = vector.load %arg1[%c0, %c0_0, %c0_1] : memref<1x4x256xf32, #tpu.memory_space<vmem>>, vector<1x4x256xf32>
    %1 = vector.shape_cast %0 : vector<1x4x256xf32> to vector<4x256xf32>
    %c0_2 = arith.constant 0 : index
    %c0_3 = arith.constant 0 : index
    %c0_4 = arith.constant 0 : index
    %2 = vector.load %arg3[%c0_2, %c0_3, %c0_4] : memref<9x256x256xf32, #tpu.memory_space<vmem>>, vector<1x256x256xf32>
    %3 = vector.shape_cast %2 : vector<1x256x256xf32> to vector<256x256xf32>
    %cst = arith.constant dense<0.000000e+00> : vector<4x256xf32>
    %4 = tpu.matmul %1, %3, %cst {dimension_numbers = #tpu.dot_dimension_numbers<[1], [0], [0], [1], [0, 0, 1, 1], [], []>} : vector<4x256xf32>, vector<256x256xf32>, vector<4x256xf32> -> vector<4x256xf32>
    %c0_5 = arith.constant 0 : index
    %c0_6 = arith.constant 0 : index
    %c0_7 = arith.constant 0 : index
    %5 = vector.load %arg2[%c0_5, %c0_6, %c0_7] : memref<9x16x4xf32, #tpu.memory_space<vmem>>, vector<1x16x4xf32>
    %6 = vector.shape_cast %5 : vector<1x16x4xf32> to vector<16x4xf32>
    %cst_8 = arith.constant dense<0.000000e+00> : vector<16x256xf32>
    %7 = tpu.matmul %6, %4, %cst_8 {dimension_numbers = #tpu.dot_dimension_numbers<[1], [0], [0], [1], [0, 0, 1, 1], [], []>} : vector<16x4xf32>, vector<4x256xf32>, vector<16x256xf32> -> vector<16x256xf32>
    %c1 = arith.constant 1 : index
    %c0_9 = arith.constant 0 : index
    %c0_10 = arith.constant 0 : index
    %8 = vector.load %arg3[%c1, %c0_9, %c0_10] : memref<9x256x256xf32, #tpu.memory_space<vmem>>, vector<1x256x256xf32>
    %9 = vector.shape_cast %8 : vector<1x256x256xf32> to vector<256x256xf32>
    %cst_11 = arith.constant dense<0.000000e+00> : vector<4x256xf32>
    %10 = tpu.matmul %1, %9, %cst_11 {dimension_numbers = #tpu.dot_dimension_numbers<[1], [0], [0], [1], [0, 0, 1, 1], [], []>} : vector<4x256xf32>, vector<256x256xf32>, vector<4x256xf32> -> vector<4x256xf32>
    %c1_12 = arith.constant 1 : index
    %c0_13 = arith.constant 0 : index
    %c0_14 = arith.constant 0 : index
    %11 = vector.load %arg2[%c1_12, %c0_13, %c0_14] : memref<9x16x4xf32, #tpu.memory_space<vmem>>, vector<1x16x4xf32>
    %12 = vector.shape_cast %11 : vector<1x16x4xf32> to vector<16x4xf32>
    %cst_15 = arith.constant dense<0.000000e+00> : vector<16x256xf32>
    %13 = tpu.matmul %12, %10, %cst_15 {dimension_numbers = #tpu.dot_dimension_numbers<[1], [0], [0], [1], [0, 0, 1, 1], [], []>} : vector<16x4xf32>, vector<4x256xf32>, vector<16x256xf32> -> vector<16x256xf32>
    %14 = arith.addf %7, %13 : vector<16x256xf32>
    %c2 = arith.constant 2 : index
    %c0_16 = arith.constant 0 : index
    %c0_17 = arith.constant 0 : index
    %15 = vector.load %arg3[%c2, %c0_16, %c0_17] : memref<9x256x256xf32, #tpu.memory_space<vmem>>, vector<1x256x256xf32>
    %16 = vector.shape_cast %15 : vector<1x256x256xf32> to vector<256x256xf32>
    %cst_18 = arith.constant dense<0.000000e+00> : vector<4x256xf32>
    %17 = tpu.matmul %1, %16, %cst_18 {dimension_numbers = #tpu.dot_dimension_numbers<[1], [0], [0], [1], [0, 0, 1, 1], [], []>} : vector<4x256xf32>, vector<256x256xf32>, vector<4x256xf32> -> vector<4x256xf32>
    %c2_19 = arith.constant 2 : index
    %c0_20 = arith.constant 0 : index
    %c0_21 = arith.constant 0 : index
    %18 = vector.load %arg2[%c2_19, %c0_20, %c0_21] : memref<9x16x4xf32, #tpu.memory_space<vmem>>, vector<1x16x4xf32>
    %19 = vector.shape_cast %18 : vector<1x16x4xf32> to vector<16x4xf32>
    %cst_22 = arith.constant dense<0.000000e+00> : vector<16x256xf32>
    %20 = tpu.matmul %19, %17, %cst_22 {dimension_numbers = #tpu.dot_dimension_numbers<[1], [0], [0], [1], [0, 0, 1, 1], [], []>} : vector<16x4xf32>, vector<4x256xf32>, vector<16x256xf32> -> vector<16x256xf32>
    %21 = arith.addf %14, %20 : vector<16x256xf32>
    %c3 = arith.constant 3 : index
    %c0_23 = arith.constant 0 : index
    %c0_24 = arith.constant 0 : index
    %22 = vector.load %arg3[%c3, %c0_23, %c0_24] : memref<9x256x256xf32, #tpu.memory_space<vmem>>, vector<1x256x256xf32>
    %23 = vector.shape_cast %22 : vector<1x256x256xf32> to vector<256x256xf32>
    %cst_25 = arith.constant dense<0.000000e+00> : vector<4x256xf32>
    %24 = tpu.matmul %1, %23, %cst_25 {dimension_numbers = #tpu.dot_dimension_numbers<[1], [0], [0], [1], [0, 0, 1, 1], [], []>} : vector<4x256xf32>, vector<256x256xf32>, vector<4x256xf32> -> vector<4x256xf32>
    %c3_26 = arith.constant 3 : index
    %c0_27 = arith.constant 0 : index
    %c0_28 = arith.constant 0 : index
    %25 = vector.load %arg2[%c3_26, %c0_27, %c0_28] : memref<9x16x4xf32, #tpu.memory_space<vmem>>, vector<1x16x4xf32>
    %26 = vector.shape_cast %25 : vector<1x16x4xf32> to vector<16x4xf32>
    %cst_29 = arith.constant dense<0.000000e+00> : vector<16x256xf32>
    %27 = tpu.matmul %26, %24, %cst_29 {dimension_numbers = #tpu.dot_dimension_numbers<[1], [0], [0], [1], [0, 0, 1, 1], [], []>} : vector<16x4xf32>, vector<4x256xf32>, vector<16x256xf32> -> vector<16x256xf32>
    %28 = arith.addf %21, %27 : vector<16x256xf32>
    %c4 = arith.constant 4 : index
    %c0_30 = arith.constant 0 : index
    %c0_31 = arith.constant 0 : index
    %29 = vector.load %arg3[%c4, %c0_30, %c0_31] : memref<9x256x256xf32, #tpu.memory_space<vmem>>, vector<1x256x256xf32>
    %30 = vector.shape_cast %29 : vector<1x256x256xf32> to vector<256x256xf32>
    %cst_32 = arith.constant dense<0.000000e+00> : vector<4x256xf32>
    %31 = tpu.matmul %1, %30, %cst_32 {dimension_numbers = #tpu.dot_dimension_numbers<[1], [0], [0], [1], [0, 0, 1, 1], [], []>} : vector<4x256xf32>, vector<256x256xf32>, vector<4x256xf32> -> vector<4x256xf32>
    %c4_33 = arith.constant 4 : index
    %c0_34 = arith.constant 0 : index
    %c0_35 = arith.constant 0 : index
    %32 = vector.load %arg2[%c4_33, %c0_34, %c0_35] : memref<9x16x4xf32, #tpu.memory_space<vmem>>, vector<1x16x4xf32>
    %33 = vector.shape_cast %32 : vector<1x16x4xf32> to vector<16x4xf32>
    %cst_36 = arith.constant dense<0.000000e+00> : vector<16x256xf32>
    %34 = tpu.matmul %33, %31, %cst_36 {dimension_numbers = #tpu.dot_dimension_numbers<[1], [0], [0], [1], [0, 0, 1, 1], [], []>} : vector<16x4xf32>, vector<4x256xf32>, vector<16x256xf32> -> vector<16x256xf32>
    %35 = arith.addf %28, %34 : vector<16x256xf32>
    %c5 = arith.constant 5 : index
    %c0_37 = arith.constant 0 : index
    %c0_38 = arith.constant 0 : index
    %36 = vector.load %arg3[%c5, %c0_37, %c0_38] : memref<9x256x256xf32, #tpu.memory_space<vmem>>, vector<1x256x256xf32>
    %37 = vector.shape_cast %36 : vector<1x256x256xf32> to vector<256x256xf32>
    %cst_39 = arith.constant dense<0.000000e+00> : vector<4x256xf32>
    %38 = tpu.matmul %1, %37, %cst_39 {dimension_numbers = #tpu.dot_dimension_numbers<[1], [0], [0], [1], [0, 0, 1, 1], [], []>} : vector<4x256xf32>, vector<256x256xf32>, vector<4x256xf32> -> vector<4x256xf32>
    %c5_40 = arith.constant 5 : index
    %c0_41 = arith.constant 0 : index
    %c0_42 = arith.constant 0 : index
    %39 = vector.load %arg2[%c5_40, %c0_41, %c0_42] : memref<9x16x4xf32, #tpu.memory_space<vmem>>, vector<1x16x4xf32>
    %40 = vector.shape_cast %39 : vector<1x16x4xf32> to vector<16x4xf32>
    %cst_43 = arith.constant dense<0.000000e+00> : vector<16x256xf32>
    %41 = tpu.matmul %40, %38, %cst_43 {dimension_numbers = #tpu.dot_dimension_numbers<[1], [0], [0], [1], [0, 0, 1, 1], [], []>} : vector<16x4xf32>, vector<4x256xf32>, vector<16x256xf32> -> vector<16x256xf32>
    %42 = arith.addf %35, %41 : vector<16x256xf32>
    %c6 = arith.constant 6 : index
    %c0_44 = arith.constant 0 : index
    %c0_45 = arith.constant 0 : index
    %43 = vector.load %arg3[%c6, %c0_44, %c0_45] : memref<9x256x256xf32, #tpu.memory_space<vmem>>, vector<1x256x256xf32>
    %44 = vector.shape_cast %43 : vector<1x256x256xf32> to vector<256x256xf32>
    %cst_46 = arith.constant dense<0.000000e+00> : vector<4x256xf32>
    %45 = tpu.matmul %1, %44, %cst_46 {dimension_numbers = #tpu.dot_dimension_numbers<[1], [0], [0], [1], [0, 0, 1, 1], [], []>} : vector<4x256xf32>, vector<256x256xf32>, vector<4x256xf32> -> vector<4x256xf32>
    %c6_47 = arith.constant 6 : index
    %c0_48 = arith.constant 0 : index
    %c0_49 = arith.constant 0 : index
    %46 = vector.load %arg2[%c6_47, %c0_48, %c0_49] : memref<9x16x4xf32, #tpu.memory_space<vmem>>, vector<1x16x4xf32>
    %47 = vector.shape_cast %46 : vector<1x16x4xf32> to vector<16x4xf32>
    %cst_50 = arith.constant dense<0.000000e+00> : vector<16x256xf32>
    %48 = tpu.matmul %47, %45, %cst_50 {dimension_numbers = #tpu.dot_dimension_numbers<[1], [0], [0], [1], [0, 0, 1, 1], [], []>} : vector<16x4xf32>, vector<4x256xf32>, vector<16x256xf32> -> vector<16x256xf32>
    %49 = arith.addf %42, %48 : vector<16x256xf32>
    %c7 = arith.constant 7 : index
    %c0_51 = arith.constant 0 : index
    %c0_52 = arith.constant 0 : index
    %50 = vector.load %arg3[%c7, %c0_51, %c0_52] : memref<9x256x256xf32, #tpu.memory_space<vmem>>, vector<1x256x256xf32>
    %51 = vector.shape_cast %50 : vector<1x256x256xf32> to vector<256x256xf32>
    %cst_53 = arith.constant dense<0.000000e+00> : vector<4x256xf32>
    %52 = tpu.matmul %1, %51, %cst_53 {dimension_numbers = #tpu.dot_dimension_numbers<[1], [0], [0], [1], [0, 0, 1, 1], [], []>} : vector<4x256xf32>, vector<256x256xf32>, vector<4x256xf32> -> vector<4x256xf32>
    %c7_54 = arith.constant 7 : index
    %c0_55 = arith.constant 0 : index
    %c0_56 = arith.constant 0 : index
    %53 = vector.load %arg2[%c7_54, %c0_55, %c0_56] : memref<9x16x4xf32, #tpu.memory_space<vmem>>, vector<1x16x4xf32>
    %54 = vector.shape_cast %53 : vector<1x16x4xf32> to vector<16x4xf32>
    %cst_57 = arith.constant dense<0.000000e+00> : vector<16x256xf32>
    %55 = tpu.matmul %54, %52, %cst_57 {dimension_numbers = #tpu.dot_dimension_numbers<[1], [0], [0], [1], [0, 0, 1, 1], [], []>} : vector<16x4xf32>, vector<4x256xf32>, vector<16x256xf32> -> vector<16x256xf32>
    %56 = arith.addf %49, %55 : vector<16x256xf32>
    %c8 = arith.constant 8 : index
    %c0_58 = arith.constant 0 : index
    %c0_59 = arith.constant 0 : index
    %57 = vector.load %arg3[%c8, %c0_58, %c0_59] : memref<9x256x256xf32, #tpu.memory_space<vmem>>, vector<1x256x256xf32>
    %58 = vector.shape_cast %57 : vector<1x256x256xf32> to vector<256x256xf32>
    %cst_60 = arith.constant dense<0.000000e+00> : vector<4x256xf32>
    %59 = tpu.matmul %1, %58, %cst_60 {dimension_numbers = #tpu.dot_dimension_numbers<[1], [0], [0], [1], [0, 0, 1, 1], [], []>} : vector<4x256xf32>, vector<256x256xf32>, vector<4x256xf32> -> vector<4x256xf32>
    %c8_61 = arith.constant 8 : index
    %c0_62 = arith.constant 0 : index
    %c0_63 = arith.constant 0 : index
    %60 = vector.load %arg2[%c8_61, %c0_62, %c0_63] : memref<9x16x4xf32, #tpu.memory_space<vmem>>, vector<1x16x4xf32>
    %61 = vector.shape_cast %60 : vector<1x16x4xf32> to vector<16x4xf32>
    %cst_64 = arith.constant dense<0.000000e+00> : vector<16x256xf32>
    %62 = tpu.matmul %61, %59, %cst_64 {dimension_numbers = #tpu.dot_dimension_numbers<[1], [0], [0], [1], [0, 0, 1, 1], [], []>} : vector<16x4xf32>, vector<4x256xf32>, vector<16x256xf32> -> vector<16x256xf32>
    %63 = arith.addf %56, %62 : vector<16x256xf32>
    %c0_65 = arith.constant 0 : index
    %c0_66 = arith.constant 0 : index
    %64 = vector.load %arg4[%c0_65, %c0_66] : memref<16x1xf32, #tpu.memory_space<vmem>>, vector<16x1xf32>
    %65 = vector.broadcast %64 : vector<16x1xf32> to vector<16x256xf32>
    %66 = arith.mulf %63, %65 : vector<16x256xf32>
    %c0_67 = arith.constant 0 : index
    %c0_68 = arith.constant 0 : index
    %67 = vector.load %arg5[%c0_67, %c0_68] : memref<16x1xf32, #tpu.memory_space<vmem>>, vector<16x1xf32>
    %68 = vector.broadcast %67 : vector<16x1xf32> to vector<16x256xf32>
    %69 = arith.addf %66, %68 : vector<16x256xf32>
    %cst_69 = arith.constant 0.000000e+00 : f32
    %70 = vector.broadcast %cst_69 : f32 to vector<16x256xf32>
    %71 = arith.cmpf ogt, %69, %70 : vector<16x256xf32>
    %cst_70 = arith.constant 1.000000e-01 : f32
    %72 = vector.broadcast %cst_70 : f32 to vector<16x256xf32>
    %73 = arith.mulf %72, %69 : vector<16x256xf32>
    %74 = arith.select %71, %69, %73 : vector<16x256xi1>, vector<16x256xf32>
    %c0_71 = arith.constant 0 : index
    %c0_72 = arith.constant 0 : index
    %c0_73 = arith.constant 0 : index
    %75 = vector.load %arg6[%c0_71, %c0_72, %c0_73] : memref<4x256x64xf32, #tpu.memory_space<vmem>>, vector<1x256x64xf32>
    %76 = vector.shape_cast %75 : vector<1x256x64xf32> to vector<256x64xf32>
    %cst_74 = arith.constant dense<0.000000e+00> : vector<16x64xf32>
    %77 = tpu.matmul %74, %76, %cst_74 {dimension_numbers = #tpu.dot_dimension_numbers<[1], [0], [0], [1], [0, 0, 1, 1], [], []>} : vector<16x256xf32>, vector<256x64xf32>, vector<16x64xf32> -> vector<16x64xf32>
    %c1_75 = arith.constant 1 : index
    %c0_76 = arith.constant 0 : index
    %c0_77 = arith.constant 0 : index
    %78 = vector.load %arg6[%c1_75, %c0_76, %c0_77] : memref<4x256x64xf32, #tpu.memory_space<vmem>>, vector<1x256x64xf32>
    %79 = vector.shape_cast %78 : vector<1x256x64xf32> to vector<256x64xf32>
    %cst_78 = arith.constant dense<0.000000e+00> : vector<16x64xf32>
    %80 = tpu.matmul %74, %79, %cst_78 {dimension_numbers = #tpu.dot_dimension_numbers<[1], [0], [0], [1], [0, 0, 1, 1], [], []>} : vector<16x256xf32>, vector<256x64xf32>, vector<16x64xf32> -> vector<16x64xf32>
    %81 = arith.maximumf %77, %80 : vector<16x64xf32>
    %c2_79 = arith.constant 2 : index
    %c0_80 = arith.constant 0 : index
    %c0_81 = arith.constant 0 : index
    %82 = vector.load %arg6[%c2_79, %c0_80, %c0_81] : memref<4x256x64xf32, #tpu.memory_space<vmem>>, vector<1x256x64xf32>
    %83 = vector.shape_cast %82 : vector<1x256x64xf32> to vector<256x64xf32>
    %cst_82 = arith.constant dense<0.000000e+00> : vector<16x64xf32>
    %84 = tpu.matmul %74, %83, %cst_82 {dimension_numbers = #tpu.dot_dimension_numbers<[1], [0], [0], [1], [0, 0, 1, 1], [], []>} : vector<16x256xf32>, vector<256x64xf32>, vector<16x64xf32> -> vector<16x64xf32>
    %85 = arith.maximumf %81, %84 : vector<16x64xf32>
    %c3_83 = arith.constant 3 : index
    %c0_84 = arith.constant 0 : index
    %c0_85 = arith.constant 0 : index
    %86 = vector.load %arg6[%c3_83, %c0_84, %c0_85] : memref<4x256x64xf32, #tpu.memory_space<vmem>>, vector<1x256x64xf32>
    %87 = vector.shape_cast %86 : vector<1x256x64xf32> to vector<256x64xf32>
    %cst_86 = arith.constant dense<0.000000e+00> : vector<16x64xf32>
    %88 = tpu.matmul %74, %87, %cst_86 {dimension_numbers = #tpu.dot_dimension_numbers<[1], [0], [0], [1], [0, 0, 1, 1], [], []>} : vector<16x256xf32>, vector<256x64xf32>, vector<16x64xf32> -> vector<16x64xf32>
    %89 = arith.maximumf %85, %88 : vector<16x64xf32>
    %c0_87 = arith.constant 0 : index
    %c0_88 = arith.constant 0 : index
    %c0_89 = arith.constant 0 : index
    %90 = vector.load %arg8[%c0_87, %c0_88, %c0_89] : memref<9x64x64xf32, #tpu.memory_space<vmem>>, vector<1x64x64xf32>
    %91 = vector.shape_cast %90 : vector<1x64x64xf32> to vector<64x64xf32>
    %cst_90 = arith.constant dense<0.000000e+00> : vector<16x64xf32>
    %92 = tpu.matmul %89, %91, %cst_90 {dimension_numbers = #tpu.dot_dimension_numbers<[1], [0], [0], [1], [0, 0, 1, 1], [], []>} : vector<16x64xf32>, vector<64x64xf32>, vector<16x64xf32> -> vector<16x64xf32>
    %c0_91 = arith.constant 0 : index
    %c0_92 = arith.constant 0 : index
    %c0_93 = arith.constant 0 : index
    %93 = vector.load %arg7[%c0_91, %c0_92, %c0_93] : memref<9x16x16xf32, #tpu.memory_space<vmem>>, vector<1x16x16xf32>
    %94 = vector.shape_cast %93 : vector<1x16x16xf32> to vector<16x16xf32>
    %cst_94 = arith.constant dense<0.000000e+00> : vector<16x64xf32>
    %95 = tpu.matmul %94, %92, %cst_94 {dimension_numbers = #tpu.dot_dimension_numbers<[1], [0], [0], [1], [0, 0, 1, 1], [], []>} : vector<16x16xf32>, vector<16x64xf32>, vector<16x64xf32> -> vector<16x64xf32>
    %c1_95 = arith.constant 1 : index
    %c0_96 = arith.constant 0 : index
    %c0_97 = arith.constant 0 : index
    %96 = vector.load %arg8[%c1_95, %c0_96, %c0_97] : memref<9x64x64xf32, #tpu.memory_space<vmem>>, vector<1x64x64xf32>
    %97 = vector.shape_cast %96 : vector<1x64x64xf32> to vector<64x64xf32>
    %cst_98 = arith.constant dense<0.000000e+00> : vector<16x64xf32>
    %98 = tpu.matmul %89, %97, %cst_98 {dimension_numbers = #tpu.dot_dimension_numbers<[1], [0], [0], [1], [0, 0, 1, 1], [], []>} : vector<16x64xf32>, vector<64x64xf32>, vector<16x64xf32> -> vector<16x64xf32>
    %c1_99 = arith.constant 1 : index
    %c0_100 = arith.constant 0 : index
    %c0_101 = arith.constant 0 : index
    %99 = vector.load %arg7[%c1_99, %c0_100, %c0_101] : memref<9x16x16xf32, #tpu.memory_space<vmem>>, vector<1x16x16xf32>
    %100 = vector.shape_cast %99 : vector<1x16x16xf32> to vector<16x16xf32>
    %cst_102 = arith.constant dense<0.000000e+00> : vector<16x64xf32>
    %101 = tpu.matmul %100, %98, %cst_102 {dimension_numbers = #tpu.dot_dimension_numbers<[1], [0], [0], [1], [0, 0, 1, 1], [], []>} : vector<16x16xf32>, vector<16x64xf32>, vector<16x64xf32> -> vector<16x64xf32>
    %102 = arith.addf %95, %101 : vector<16x64xf32>
    %c2_103 = arith.constant 2 : index
    %c0_104 = arith.constant 0 : index
    %c0_105 = arith.constant 0 : index
    %103 = vector.load %arg8[%c2_103, %c0_104, %c0_105] : memref<9x64x64xf32, #tpu.memory_space<vmem>>, vector<1x64x64xf32>
    %104 = vector.shape_cast %103 : vector<1x64x64xf32> to vector<64x64xf32>
    %cst_106 = arith.constant dense<0.000000e+00> : vector<16x64xf32>
    %105 = tpu.matmul %89, %104, %cst_106 {dimension_numbers = #tpu.dot_dimension_numbers<[1], [0], [0], [1], [0, 0, 1, 1], [], []>} : vector<16x64xf32>, vector<64x64xf32>, vector<16x64xf32> -> vector<16x64xf32>
    %c2_107 = arith.constant 2 : index
    %c0_108 = arith.constant 0 : index
    %c0_109 = arith.constant 0 : index
    %106 = vector.load %arg7[%c2_107, %c0_108, %c0_109] : memref<9x16x16xf32, #tpu.memory_space<vmem>>, vector<1x16x16xf32>
    %107 = vector.shape_cast %106 : vector<1x16x16xf32> to vector<16x16xf32>
    %cst_110 = arith.constant dense<0.000000e+00> : vector<16x64xf32>
    %108 = tpu.matmul %107, %105, %cst_110 {dimension_numbers = #tpu.dot_dimension_numbers<[1], [0], [0], [1], [0, 0, 1, 1], [], []>} : vector<16x16xf32>, vector<16x64xf32>, vector<16x64xf32> -> vector<16x64xf32>
    %109 = arith.addf %102, %108 : vector<16x64xf32>
    %c3_111 = arith.constant 3 : index
    %c0_112 = arith.constant 0 : index
    %c0_113 = arith.constant 0 : index
    %110 = vector.load %arg8[%c3_111, %c0_112, %c0_113] : memref<9x64x64xf32, #tpu.memory_space<vmem>>, vector<1x64x64xf32>
    %111 = vector.shape_cast %110 : vector<1x64x64xf32> to vector<64x64xf32>
    %cst_114 = arith.constant dense<0.000000e+00> : vector<16x64xf32>
    %112 = tpu.matmul %89, %111, %cst_114 {dimension_numbers = #tpu.dot_dimension_numbers<[1], [0], [0], [1], [0, 0, 1, 1], [], []>} : vector<16x64xf32>, vector<64x64xf32>, vector<16x64xf32> -> vector<16x64xf32>
    %c3_115 = arith.constant 3 : index
    %c0_116 = arith.constant 0 : index
    %c0_117 = arith.constant 0 : index
    %113 = vector.load %arg7[%c3_115, %c0_116, %c0_117] : memref<9x16x16xf32, #tpu.memory_space<vmem>>, vector<1x16x16xf32>
    %114 = vector.shape_cast %113 : vector<1x16x16xf32> to vector<16x16xf32>
    %cst_118 = arith.constant dense<0.000000e+00> : vector<16x64xf32>
    %115 = tpu.matmul %114, %112, %cst_118 {dimension_numbers = #tpu.dot_dimension_numbers<[1], [0], [0], [1], [0, 0, 1, 1], [], []>} : vector<16x16xf32>, vector<16x64xf32>, vector<16x64xf32> -> vector<16x64xf32>
    %116 = arith.addf %109, %115 : vector<16x64xf32>
    %c4_119 = arith.constant 4 : index
    %c0_120 = arith.constant 0 : index
    %c0_121 = arith.constant 0 : index
    %117 = vector.load %arg8[%c4_119, %c0_120, %c0_121] : memref<9x64x64xf32, #tpu.memory_space<vmem>>, vector<1x64x64xf32>
    %118 = vector.shape_cast %117 : vector<1x64x64xf32> to vector<64x64xf32>
    %cst_122 = arith.constant dense<0.000000e+00> : vector<16x64xf32>
    %119 = tpu.matmul %89, %118, %cst_122 {dimension_numbers = #tpu.dot_dimension_numbers<[1], [0], [0], [1], [0, 0, 1, 1], [], []>} : vector<16x64xf32>, vector<64x64xf32>, vector<16x64xf32> -> vector<16x64xf32>
    %c4_123 = arith.constant 4 : index
    %c0_124 = arith.constant 0 : index
    %c0_125 = arith.constant 0 : index
    %120 = vector.load %arg7[%c4_123, %c0_124, %c0_125] : memref<9x16x16xf32, #tpu.memory_space<vmem>>, vector<1x16x16xf32>
    %121 = vector.shape_cast %120 : vector<1x16x16xf32> to vector<16x16xf32>
    %cst_126 = arith.constant dense<0.000000e+00> : vector<16x64xf32>
    %122 = tpu.matmul %121, %119, %cst_126 {dimension_numbers = #tpu.dot_dimension_numbers<[1], [0], [0], [1], [0, 0, 1, 1], [], []>} : vector<16x16xf32>, vector<16x64xf32>, vector<16x64xf32> -> vector<16x64xf32>
    %123 = arith.addf %116, %122 : vector<16x64xf32>
    %c5_127 = arith.constant 5 : index
    %c0_128 = arith.constant 0 : index
    %c0_129 = arith.constant 0 : index
    %124 = vector.load %arg8[%c5_127, %c0_128, %c0_129] : memref<9x64x64xf32, #tpu.memory_space<vmem>>, vector<1x64x64xf32>
    %125 = vector.shape_cast %124 : vector<1x64x64xf32> to vector<64x64xf32>
    %cst_130 = arith.constant dense<0.000000e+00> : vector<16x64xf32>
    %126 = tpu.matmul %89, %125, %cst_130 {dimension_numbers = #tpu.dot_dimension_numbers<[1], [0], [0], [1], [0, 0, 1, 1], [], []>} : vector<16x64xf32>, vector<64x64xf32>, vector<16x64xf32> -> vector<16x64xf32>
    %c5_131 = arith.constant 5 : index
    %c0_132 = arith.constant 0 : index
    %c0_133 = arith.constant 0 : index
    %127 = vector.load %arg7[%c5_131, %c0_132, %c0_133] : memref<9x16x16xf32, #tpu.memory_space<vmem>>, vector<1x16x16xf32>
    %128 = vector.shape_cast %127 : vector<1x16x16xf32> to vector<16x16xf32>
    %cst_134 = arith.constant dense<0.000000e+00> : vector<16x64xf32>
    %129 = tpu.matmul %128, %126, %cst_134 {dimension_numbers = #tpu.dot_dimension_numbers<[1], [0], [0], [1], [0, 0, 1, 1], [], []>} : vector<16x16xf32>, vector<16x64xf32>, vector<16x64xf32> -> vector<16x64xf32>
    %130 = arith.addf %123, %129 : vector<16x64xf32>
    %c6_135 = arith.constant 6 : index
    %c0_136 = arith.constant 0 : index
    %c0_137 = arith.constant 0 : index
    %131 = vector.load %arg8[%c6_135, %c0_136, %c0_137] : memref<9x64x64xf32, #tpu.memory_space<vmem>>, vector<1x64x64xf32>
    %132 = vector.shape_cast %131 : vector<1x64x64xf32> to vector<64x64xf32>
    %cst_138 = arith.constant dense<0.000000e+00> : vector<16x64xf32>
    %133 = tpu.matmul %89, %132, %cst_138 {dimension_numbers = #tpu.dot_dimension_numbers<[1], [0], [0], [1], [0, 0, 1, 1], [], []>} : vector<16x64xf32>, vector<64x64xf32>, vector<16x64xf32> -> vector<16x64xf32>
    %c6_139 = arith.constant 6 : index
    %c0_140 = arith.constant 0 : index
    %c0_141 = arith.constant 0 : index
    %134 = vector.load %arg7[%c6_139, %c0_140, %c0_141] : memref<9x16x16xf32, #tpu.memory_space<vmem>>, vector<1x16x16xf32>
    %135 = vector.shape_cast %134 : vector<1x16x16xf32> to vector<16x16xf32>
    %cst_142 = arith.constant dense<0.000000e+00> : vector<16x64xf32>
    %136 = tpu.matmul %135, %133, %cst_142 {dimension_numbers = #tpu.dot_dimension_numbers<[1], [0], [0], [1], [0, 0, 1, 1], [], []>} : vector<16x16xf32>, vector<16x64xf32>, vector<16x64xf32> -> vector<16x64xf32>
    %137 = arith.addf %130, %136 : vector<16x64xf32>
    %c7_143 = arith.constant 7 : index
    %c0_144 = arith.constant 0 : index
    %c0_145 = arith.constant 0 : index
    %138 = vector.load %arg8[%c7_143, %c0_144, %c0_145] : memref<9x64x64xf32, #tpu.memory_space<vmem>>, vector<1x64x64xf32>
    %139 = vector.shape_cast %138 : vector<1x64x64xf32> to vector<64x64xf32>
    %cst_146 = arith.constant dense<0.000000e+00> : vector<16x64xf32>
    %140 = tpu.matmul %89, %139, %cst_146 {dimension_numbers = #tpu.dot_dimension_numbers<[1], [0], [0], [1], [0, 0, 1, 1], [], []>} : vector<16x64xf32>, vector<64x64xf32>, vector<16x64xf32> -> vector<16x64xf32>
    %c7_147 = arith.constant 7 : index
    %c0_148 = arith.constant 0 : index
    %c0_149 = arith.constant 0 : index
    %141 = vector.load %arg7[%c7_147, %c0_148, %c0_149] : memref<9x16x16xf32, #tpu.memory_space<vmem>>, vector<1x16x16xf32>
    %142 = vector.shape_cast %141 : vector<1x16x16xf32> to vector<16x16xf32>
    %cst_150 = arith.constant dense<0.000000e+00> : vector<16x64xf32>
    %143 = tpu.matmul %142, %140, %cst_150 {dimension_numbers = #tpu.dot_dimension_numbers<[1], [0], [0], [1], [0, 0, 1, 1], [], []>} : vector<16x16xf32>, vector<16x64xf32>, vector<16x64xf32> -> vector<16x64xf32>
    %144 = arith.addf %137, %143 : vector<16x64xf32>
    %c8_151 = arith.constant 8 : index
    %c0_152 = arith.constant 0 : index
    %c0_153 = arith.constant 0 : index
    %145 = vector.load %arg8[%c8_151, %c0_152, %c0_153] : memref<9x64x64xf32, #tpu.memory_space<vmem>>, vector<1x64x64xf32>
    %146 = vector.shape_cast %145 : vector<1x64x64xf32> to vector<64x64xf32>
    %cst_154 = arith.constant dense<0.000000e+00> : vector<16x64xf32>
    %147 = tpu.matmul %89, %146, %cst_154 {dimension_numbers = #tpu.dot_dimension_numbers<[1], [0], [0], [1], [0, 0, 1, 1], [], []>} : vector<16x64xf32>, vector<64x64xf32>, vector<16x64xf32> -> vector<16x64xf32>
    %c8_155 = arith.constant 8 : index
    %c0_156 = arith.constant 0 : index
    %c0_157 = arith.constant 0 : index
    %148 = vector.load %arg7[%c8_155, %c0_156, %c0_157] : memref<9x16x16xf32, #tpu.memory_space<vmem>>, vector<1x16x16xf32>
    %149 = vector.shape_cast %148 : vector<1x16x16xf32> to vector<16x16xf32>
    %cst_158 = arith.constant dense<0.000000e+00> : vector<16x64xf32>
    %150 = tpu.matmul %149, %147, %cst_158 {dimension_numbers = #tpu.dot_dimension_numbers<[1], [0], [0], [1], [0, 0, 1, 1], [], []>} : vector<16x16xf32>, vector<16x64xf32>, vector<16x64xf32> -> vector<16x64xf32>
    %151 = arith.addf %144, %150 : vector<16x64xf32>
    %c0_159 = arith.constant 0 : index
    %c0_160 = arith.constant 0 : index
    %152 = vector.load %arg9[%c0_159, %c0_160] : memref<16x1xf32, #tpu.memory_space<vmem>>, vector<16x1xf32>
    %153 = vector.broadcast %152 : vector<16x1xf32> to vector<16x64xf32>
    %154 = arith.mulf %151, %153 : vector<16x64xf32>
    %c0_161 = arith.constant 0 : index
    %c0_162 = arith.constant 0 : index
    %155 = vector.load %arg10[%c0_161, %c0_162] : memref<16x1xf32, #tpu.memory_space<vmem>>, vector<16x1xf32>
    %156 = vector.broadcast %155 : vector<16x1xf32> to vector<16x64xf32>
    %157 = arith.addf %154, %156 : vector<16x64xf32>
    %cst_163 = arith.constant 0.000000e+00 : f32
    %158 = vector.broadcast %cst_163 : f32 to vector<16x64xf32>
    %159 = arith.cmpf ogt, %157, %158 : vector<16x64xf32>
    %cst_164 = arith.constant 1.000000e-01 : f32
    %160 = vector.broadcast %cst_164 : f32 to vector<16x64xf32>
    %161 = arith.mulf %160, %157 : vector<16x64xf32>
    %162 = arith.select %159, %157, %161 : vector<16x64xi1>, vector<16x64xf32>
    %c0_165 = arith.constant 0 : index
    %c0_166 = arith.constant 0 : index
    %163 = vector.load %arg11[%c0_165, %c0_166] : memref<20x16xf32, #tpu.memory_space<vmem>>, vector<20x16xf32>
    %cst_167 = arith.constant dense<0.000000e+00> : vector<20x64xf32>
    %164 = tpu.matmul %163, %162, %cst_167 {dimension_numbers = #tpu.dot_dimension_numbers<[1], [0], [0], [1], [0, 0, 1, 1], [], []>} : vector<20x16xf32>, vector<16x64xf32>, vector<20x64xf32> -> vector<20x64xf32>
    %c0_168 = arith.constant 0 : index
    %c0_169 = arith.constant 0 : index
    %165 = vector.load %arg12[%c0_168, %c0_169] : memref<20x1xf32, #tpu.memory_space<vmem>>, vector<20x1xf32>
    %166 = vector.broadcast %165 : vector<20x1xf32> to vector<20x64xf32>
    %167 = arith.addf %164, %166 : vector<20x64xf32>
    %cst_170 = arith.constant 0.000000e+00 : f32
    %168 = vector.broadcast %cst_170 : f32 to vector<20x64xf32>
    %169 = arith.subf %168, %167 : vector<20x64xf32>
    %170 = math.exp %169 : vector<20x64xf32>
    %cst_171 = arith.constant 1.000000e+00 : f32
    %171 = vector.broadcast %cst_171 : f32 to vector<20x64xf32>
    %172 = arith.addf %171, %170 : vector<20x64xf32>
    %173 = tpu.reciprocal %172 : vector<20x64xf32> -> vector<20x64xf32>
    %c0_172 = arith.constant 0 : index
    %c0_173 = arith.constant 0 : index
    %174 = vector.load %arg16[%c0_172, %c0_173] : memref<20x1xf32, #tpu.memory_space<vmem>>, vector<20x1xf32>
    %175 = vector.broadcast %174 : vector<20x1xf32> to vector<20x64xf32>
    %176 = arith.mulf %167, %175 : vector<20x64xf32>
    %177 = math.exp %176 : vector<20x64xf32>
    %c0_174 = arith.constant 0 : index
    %c0_175 = arith.constant 0 : index
    %178 = vector.load %arg13[%c0_174, %c0_175] : memref<20x1xf32, #tpu.memory_space<vmem>>, vector<20x1xf32>
    %179 = vector.broadcast %178 : vector<20x1xf32> to vector<20x64xf32>
    %180 = arith.mulf %179, %173 : vector<20x64xf32>
    %c0_176 = arith.constant 0 : index
    %c0_177 = arith.constant 0 : index
    %181 = vector.load %arg14[%c0_176, %c0_177] : memref<20x1xf32, #tpu.memory_space<vmem>>, vector<20x1xf32>
    %182 = vector.broadcast %181 : vector<20x1xf32> to vector<20x64xf32>
    %183 = arith.mulf %182, %177 : vector<20x64xf32>
    %184 = arith.addf %180, %183 : vector<20x64xf32>
    %c0_178 = arith.constant 0 : index
    %c0_179 = arith.constant 0 : index
    %185 = vector.load %arg15[%c0_178, %c0_179] : memref<20x1xf32, #tpu.memory_space<vmem>>, vector<20x1xf32>
    %186 = vector.broadcast %185 : vector<20x1xf32> to vector<20x64xf32>
    %187 = arith.mulf %186, %167 : vector<20x64xf32>
    %188 = arith.addf %184, %187 : vector<20x64xf32>
    %c0_180 = arith.constant 0 : index
    %c0_181 = arith.constant 0 : index
    %189 = vector.load %arg17[%c0_180, %c0_181] : memref<20x64xf32, #tpu.memory_space<vmem>>, vector<20x64xf32>
    %190 = arith.addf %188, %189 : vector<20x64xf32>
    %191 = vector.shape_cast %190 : vector<20x64xf32> to vector<1x20x64xf32>
    %c0_182 = arith.constant 0 : index
    %c0_183 = arith.constant 0 : index
    %c0_184 = arith.constant 0 : index
    %192 = vector.load %arg18[%c0_182, %c0_183, %c0_184] : memref<1x20x64xf32, #tpu.memory_space<vmem>>, vector<1x20x64xf32>
    tpu.vector_store %arg18[%c0_182, %c0_183, %c0_184], %191 {strides = array<i32>} : memref<1x20x64xf32, #tpu.memory_space<vmem>>, vector<1x20x64xf32>,
    return
  }
  func.func @transform_0(%arg0: i32) -> (i32, i32, i32) {
    %c0_i32 = arith.constant 0 : i32
    %c0_i32_0 = arith.constant 0 : i32
    %c0_i32_1 = arith.constant 0 : i32
    return %arg0, %c0_i32, %c0_i32_0 : i32, i32, i32
  }
  func.func @transform_1(%arg0: i32) -> (i32, i32, i32) {
    %c0_i32 = arith.constant 0 : i32
    %c0_i32_0 = arith.constant 0 : i32
    %c0_i32_1 = arith.constant 0 : i32
    %c0_i32_2 = arith.constant 0 : i32
    return %c0_i32, %c0_i32_0, %c0_i32_1 : i32, i32, i32
  }
  func.func @transform_2(%arg0: i32) -> (i32, i32, i32) {
    %c0_i32 = arith.constant 0 : i32
    %c0_i32_0 = arith.constant 0 : i32
    %c0_i32_1 = arith.constant 0 : i32
    %c0_i32_2 = arith.constant 0 : i32
    return %c0_i32, %c0_i32_0, %c0_i32_1 : i32, i32, i32
  }
  func.func @transform_3(%arg0: i32) -> (i32, i32) {
    %c0_i32 = arith.constant 0 : i32
    %c0_i32_0 = arith.constant 0 : i32
    %c0_i32_1 = arith.constant 0 : i32
    return %c0_i32, %c0_i32_0 : i32, i32
  }
  func.func @transform_4(%arg0: i32) -> (i32, i32) {
    %c0_i32 = arith.constant 0 : i32
    %c0_i32_0 = arith.constant 0 : i32
    %c0_i32_1 = arith.constant 0 : i32
    return %c0_i32, %c0_i32_0 : i32, i32
  }
  func.func @transform_5(%arg0: i32) -> (i32, i32, i32) {
    %c0_i32 = arith.constant 0 : i32
    %c0_i32_0 = arith.constant 0 : i32
    %c0_i32_1 = arith.constant 0 : i32
    %c0_i32_2 = arith.constant 0 : i32
    return %c0_i32, %c0_i32_0, %c0_i32_1 : i32, i32, i32
  }
  func.func @transform_6(%arg0: i32) -> (i32, i32, i32) {
    %c0_i32 = arith.constant 0 : i32
    %c0_i32_0 = arith.constant 0 : i32
    %c0_i32_1 = arith.constant 0 : i32
    %c0_i32_2 = arith.constant 0 : i32
    return %c0_i32, %c0_i32_0, %c0_i32_1 : i32, i32, i32
  }
  func.func @transform_7(%arg0: i32) -> (i32, i32, i32) {
    %c0_i32 = arith.constant 0 : i32
    %c0_i32_0 = arith.constant 0 : i32
    %c0_i32_1 = arith.constant 0 : i32
    %c0_i32_2 = arith.constant 0 : i32
    return %c0_i32, %c0_i32_0, %c0_i32_1 : i32, i32, i32
  }
  func.func @transform_8(%arg0: i32) -> (i32, i32) {
    %c0_i32 = arith.constant 0 : i32
    %c0_i32_0 = arith.constant 0 : i32
    %c0_i32_1 = arith.constant 0 : i32
    return %c0_i32, %c0_i32_0 : i32, i32
  }
  func.func @transform_9(%arg0: i32) -> (i32, i32) {
    %c0_i32 = arith.constant 0 : i32
    %c0_i32_0 = arith.constant 0 : i32
    %c0_i32_1 = arith.constant 0 : i32
    return %c0_i32, %c0_i32_0 : i32, i32
  }
  func.func @transform_10(%arg0: i32) -> (i32, i32) {
    %c0_i32 = arith.constant 0 : i32
    %c0_i32_0 = arith.constant 0 : i32
    %c0_i32_1 = arith.constant 0 : i32
    return %c0_i32, %c0_i32_0 : i32, i32
  }
  func.func @transform_11(%arg0: i32) -> (i32, i32) {
    %c0_i32 = arith.constant 0 : i32
    %c0_i32_0 = arith.constant 0 : i32
    %c0_i32_1 = arith.constant 0 : i32
    return %c0_i32, %c0_i32_0 : i32, i32
  }
  func.func @transform_12(%arg0: i32) -> (i32, i32) {
    %c0_i32 = arith.constant 0 : i32
    %c0_i32_0 = arith.constant 0 : i32
    %c0_i32_1 = arith.constant 0 : i32
    return %c0_i32, %c0_i32_0 : i32, i32
  }
  func.func @transform_13(%arg0: i32) -> (i32, i32) {
    %c0_i32 = arith.constant 0 : i32
    %c0_i32_0 = arith.constant 0 : i32
    %c0_i32_1 = arith.constant 0 : i32
    return %c0_i32, %c0_i32_0 : i32, i32
  }
  func.func @transform_14(%arg0: i32) -> (i32, i32) {
    %c0_i32 = arith.constant 0 : i32
    %c0_i32_0 = arith.constant 0 : i32
    %c0_i32_1 = arith.constant 0 : i32
    return %c0_i32, %c0_i32_0 : i32, i32
  }
  func.func @transform_15(%arg0: i32) -> (i32, i32) {
    %c0_i32 = arith.constant 0 : i32
    %c0_i32_0 = arith.constant 0 : i32
    %c0_i32_1 = arith.constant 0 : i32
    return %c0_i32, %c0_i32_0 : i32, i32
  }
  func.func @transform_16(%arg0: i32) -> (i32, i32) {
    %c0_i32 = arith.constant 0 : i32
    %c0_i32_0 = arith.constant 0 : i32
    %c0_i32_1 = arith.constant 0 : i32
    return %c0_i32, %c0_i32_0 : i32, i32
  }
  func.func @transform_17(%arg0: i32) -> (i32, i32, i32) {
    %c0_i32 = arith.constant 0 : i32
    %c0_i32_0 = arith.constant 0 : i32
    %c0_i32_1 = arith.constant 0 : i32
    return %arg0, %c0_i32, %c0_i32_0 : i32, i32, i32
  }
}

</mosaic_0001>

<bundles_post_ra>
// kernel: tpu_custom_call.1
= control target key start
LH: loop header
LB: loop body
LE: loop exit
PB: predicated region body
PF: predicated region fallthrough
CT: control target
= control target key end

     0   :  { %s7165_s0 = inlined_call_operand.hbm [shape: f32[2,4,256], index: 0, kind: input, shape index: {}]   ;;  %s7166_s1 = inlined_call_operand.vmem [shape: f32[9,16,4], index: 1, kind: input, shape index: {}]   ;;  %s7167_s2 = inlined_call_operand.hbm [shape: f32[9,256,256], index: 2, kind: input, shape index: {}]   ;;  %s7168_s3 = inlined_call_operand.vmem [shape: f32[16,1], index: 3, kind: input, shape index: {}]   ;;  %s7169_s4 = inlined_call_operand.vmem [shape: f32[16,1], index: 4, kind: input, shape index: {}]   ;;  %s7170_s5 = inlined_call_operand.vmem [shape: f32[4,256,64], index: 5, kind: input, shape index: {}]   ;;  %s7171_s6 = inlined_call_operand.hbm [shape: f32[9,16,16], index: 6, kind: input, shape index: {}]   ;;  %s7172_s7 = inlined_call_operand.hbm [shape: f32[9,64,64], index: 7, kind: input, shape index: {}]   ;;  %s7173_s8 = inlined_call_operand.vmem [shape: f32[16,1], index: 8, kind: input, shape index: {}]   ;;  %s7174_s9 = inlined_call_operand.vmem [shape: f32[16,1], index: 9, kind: input, shape index: {}]   ;;  %s7175_s10 = inlined_call_operand.vmem [shape: f32[20,16], index: 10, kind: input, shape index: {}]   ;;  %s7176_s11 = inlined_call_operand.vmem [shape: f32[20,1], index: 11, kind: input, shape index: {}]   ;;  %s7177_s12 = inlined_call_operand.vmem [shape: f32[20,1], index: 12, kind: input, shape index: {}]   ;;  %s7178_s13 = inlined_call_operand.vmem [shape: f32[20,1], index: 13, kind: input, shape index: {}]   ;;  %s7179_s14 = inlined_call_operand.vmem [shape: f32[20,1], index: 14, kind: input, shape index: {}]   ;;  %s7180_s15 = inlined_call_operand.vmem [shape: f32[20,1], index: 15, kind: input, shape index: {}]   ;;  %s7181_s16 = inlined_call_operand.hbm [shape: f32[20,64], index: 16, kind: input, shape index: {}]   ;;  %s7182_s17 = inlined_call_operand.vmem [shape: f32[2,20,64], index: 17, kind: output, shape index: {}]  }
   0x1   :  { %7189 = sst [smem:[#allocation14_spill]] %s7165_s0 }
   0x2   :  { %7190 = sst [smem:[#allocation15_spill]] %s7166_s1 }
   0x3   :  { %7191 = sst [smem:[#allocation16_spill]] %s7167_s2 }
   0x4   :  { %7192 = sst [smem:[#allocation17_spill]] %s7171_s6 }
   0x5   :  { %7193 = sst [smem:[#allocation18_spill]] %s7172_s7 }
   0x6   :  { %7194 = sst [smem:[#allocation19_spill]] %s7175_s10 }
   0x7   :  { %7195 = sst [smem:[#allocation20_spill]] %s7181_s16 }
   0x8   :  { %7196 = sst [smem:[#allocation21_spill]] %s7182_s17 }
   0x9   :  { %22 = vsyncpa [#allocation3], 0 }
   0xa   :  { %24 = vsyncpa [#allocation3 + $0x1], 0 }
   0xb   :  { %25 = vsyncpa [#allocation5], 0 }
   0xc   :  { %26 = vsyncpa [#allocation8], 0  ;;  %s6217_s24 = smov 0   ;;  %s6219_s25 = smov 0  }
   0xd   :  { %s6221_s26 = smov 0   ;;  %s6223_s27 = smov 0  }
   0xe LB: > { %s6115_s28 = smov [#allocation4]   ;;  %s6238_s0 = sadd.s32 4294967295, %s6113_s27   ;;  %s6113_s27 = sphi %s6223_s27, %s7220_s27   ;;  %s6109_s26 = sphi %s6221_s26, %s7219_s26   ;;  %s6105_s25 = sphi %s6219_s25, %s7218_s25   ;;  %s6101_s24 = sphi %s6217_s24, %s7217_s24  }
   0xf   : > { %s440_s29 = sshll.u32 %s6115_s28, 4  ;;  %p5093_p0 = scmp.ge.s32.totalorder %s6113_s27, 1  ;;  %s441_s29 = int_to_ptr.vmem [resolvable:$true] %s440_s29 }
  0x10   : > { %p7186_p1 = scmp.eq.s32.totalorder %s6238_s0, 0  ;;  %p425_p2 = scmp.lt.s32.totalorder %s6113_s27, 3 }
  0x11   : > { %s6116_s19 = smov [#allocation7]   ;;  %s6117_s20 = smov [#allocation6]  }
  0x12   : > { %p6243_p3 = pnand %p5093_p0, %p425_p2  ;;  %s475_s1 = sshll.u32 %s6116_s19, 4  ;;  %s6255_s1 = int_to_ptr.vmem [resolvable:$true] %s475_s1 }
  0x13   : > { %s6257_s21 = sshll.u32 %s6117_s20, 4  ;;  %s5950_s22 = scalar_lea.vmem %s441_s29, 73728  ;;  %s463_s21 = int_to_ptr.vmem [resolvable:$true] %s6257_s21 }
  0x14   : > { %s7197_s30 = scalar_select %p6243_p3, 1, 0 }
  0x15   : > { %p5848_p4 = pneg %p6243_p3  ;;  %p5951_p7 = scmp.ne.s32.totalorder %s441_s29, %s5950_s22 }
  0x16   : > { %p5958_p10 = scmp.lt.s32.totalorder %s441_s29, %s441_s29  ;;  %p5959_p11 = scmp.lt.s32.totalorder %s5950_s22, %s5950_s22 }
  0x17   : > { %p6251_p5 = pnand %p5848_p4, %p7186_p1 }
  0x18   : > { %p5960_p12 = por %p5959_p11, %p5958_p10 }
  0x19   : > { %p5941_p6 = pneg %p6251_p5 }
  0x1b   : > { %p5953_p8 = pnand %p5951_p7, %p5941_p6 }
  0x1d   : > { %p5954_p9 = pneg %p5953_p8 }
  0x1f   : > { %p5961_p13 = pnand %p5960_p12, %p5954_p9 }
  0x21   : > { %5964 = shalt.err (!%p5961_p13)
}
  0x22   : > { %s6118_s23 = smov 256   ;;  %s6119_s28 = smov 16  }
  0x23   : > { %s7199_s2 = sld [smem:[#allocation16_spill]]  ;;  %s5976_s17 = scalar_lea.vmem %s6255_s1, 9216 }
  0x24   : > { %p5977_p0 = scmp.ne.s32.totalorder %s6255_s1, %s5976_s17  ;;  %p5984_p7 = scmp.lt.s32.totalorder %s6255_s1, %s6255_s1 }
  0x25   : > { %p5985_p8 = scmp.lt.s32.totalorder %s5976_s17, %s5976_s17 }
  0x26   : > { %p5979_p2 = pnand %p5977_p0, %p5941_p6 }
  0x27   : > { %p5986_p9 = por %p5985_p8, %p5984_p7 }
  0x28   : > { %p5980_p4 = pneg %p5979_p2 }
  0x29   : > { %5851 = dma.hbm_to_vmem [thread:$0]  (!%p6251_p5), %s7199_s2, 73728, %s441_s29, [#allocation5], %s6118_s23, %s6118_s23, %s6119_s28  }
  0x2a   : > { %p5987_p10 = pnand %p5986_p9, %p5980_p4 }
  0x2c   : > { %5990 = shalt.err (!%p5987_p10)
}
  0x2d   : > { %s6120_s22 = smov 128   ;;  %s6121_s10 = smov 8  }
  0x2e   : > { %s7200_s7 = sld [smem:[#allocation18_spill]]  ;;  %s6002_s28 = scalar_lea.vmem %s463_s21, 2304 }
  0x2f   : > { %p6003_p11 = scmp.ne.s32.totalorder %s463_s21, %s6002_s28  ;;  %p6010_p0 = scmp.lt.s32.totalorder %s463_s21, %s463_s21 }
  0x30   : > { %p6011_p2 = scmp.lt.s32.totalorder %s6002_s28, %s6002_s28 }
  0x31   : > { %p6005_p12 = pnand %p6003_p11, %p5941_p6 }
  0x32   : > { %p6012_p4 = por %p6011_p2, %p6010_p0 }
  0x33   : > { %p6006_p13 = pneg %p6005_p12 }
  0x34   : > { %5857 = dma.hbm_to_vmem [thread:$0]  (!%p6251_p5), %s7200_s7, 9216, %s6255_s1, [#allocation8], %s6120_s22, %s6120_s22, %s6121_s10  }
  0x35   : > { %p6013_p7 = pnand %p6012_p4, %p6006_p13 }
  0x37   : > { %6016 = shalt.err (!%p6013_p7)
}
  0x38   : > { %s7201_s6 = sld [smem:[#allocation17_spill]]  ;;  %s6122_s1 = smov [#allocation9]  }
  0x39   : > { %s512_s20 = sshll.u32 %s6122_s1, 4  ;;  %s513_s20 = int_to_ptr.vmem [resolvable:$true] %s512_s20 }
  0x3a   : > { %s6028_s29 = scalar_lea.vmem %s513_s20, 384  ;;  %p6036_p11 = scmp.lt.s32.totalorder %s513_s20, %s513_s20 }
  0x3b   : > { %p6029_p8 = scmp.ne.s32.totalorder %s513_s20, %s6028_s29  ;;  %p6037_p12 = scmp.lt.s32.totalorder %s6028_s29, %s6028_s29 }
  0x3d   : > { %p6031_p9 = pnand %p6029_p8, %p5941_p6  ;;  %p6038_p13 = por %p6037_p12, %p6036_p11 }
  0x3e   : > { %5854 = dma.hbm_to_vmem [thread:$0]  (!%p6251_p5), %s7201_s6, 2304, %s463_s21, [#allocation5], %s6120_s22, %s6120_s22, %s6121_s10  }
  0x3f   : > { %p6032_p10 = pneg %p6031_p9 }
  0x41   : > { %p6039_p0 = pnand %p6038_p13, %p6032_p10 }
  0x43   : > { %6042 = shalt.err (!%p6039_p0)
}
  0x44   : > { %s7202_s16 = sld [smem:[#allocation20_spill]]  ;;  %s6300_s21 = sadd.s32 1, %s6113_s27  }
  0x45   : > { %s39_s18 = sadd.s32 1, %s6109_s26  ;;  %s36_s17 = ssub.s32 %s6113_s27, %s6300_s21 }
  0x46   : > { %p46_p6 = scmp.ne.s32.totalorder %s6109_s26, %s6105_s25  ;;  %p37_p2 = scmp.eq.s32.totalorder %s36_s17, 0 }
  0x47   : > { %p47_p4 = scmp.eq.s32.totalorder %s6113_s27, 0  ;;  %p52_p7 = scmp.ne.s32.totalorder %s6105_s25, %s6101_s24 }
  0x48   : > { %p5869_p8 = scmp.lt.s32.totalorder %s6113_s27, 2  ;;  %s526_s29 = sand.u32 1, %s6109_s26  }
  0x49   : > { %s6312_s19 = scalar_select %p37_p2, %s6109_s26, %s39_s18  }
  0x4a   : > { %5860 = dma.hbm_to_vmem [thread:$0]  (!%p6251_p5), %s7202_s16, 384, %s513_s20, [#allocation8], %s6120_s22, %s6120_s22, %s6121_s10  }
  0x4b   : > { %7203 = sst [smem:[#allocation13_spill]] %s6312_s19  ;;  %p48_p9 = por %p47_p4, %p46_p6 }
  0x4c   : > { %p6316_p10 = por %p7186_p1, %p52_p7  ;;  %s5298_s10 = sshll.u32 %s6113_s27, 7 }
  0x4d   : > { %s5099_s22 = sshll.u32 %s526_s29, 3  ;;  %s7205_s28 = sld [smem:[#allocation14_spill]] }
  0x4e   : > { %s7204_s1 = scalar_select %p6316_p10, 1, 0 }
  0x4f   : > { %s530_s24 = scalar_lea.vmem [#allocation2], %s5099_s22  ;;  %p6327_p5 = pnand %p5869_p8, %p48_p9 }
  0x50   : > { %s538_s18 = sshll.u32 %s530_s24, 4  ;;  %s527_s6 = scalar_lea.sflag [#allocation3], %s526_s29  ;;  %s539_s18 = int_to_ptr.vmem [resolvable:$true] %s538_s18 }
  0x51   : > { %p6045_p12 = pneg %p6327_p5 }
  0x53   : > { %s6325_s2 = scalar_lea.hbm %s7205_s28, %s5298_s10  ;;  %s6048_s20 = scalar_lea.hbm %s7205_s28, 256 }
  0x54   : > { %s6043_s7 = scalar_lea.hbm %s6325_s2, 128  ;;  %p6049_p6 = scmp.lt.s32.totalorder %s6325_s2, %s7205_s28 }
  0x55   : > { %p6044_p11 = scmp.ne.s32.totalorder %s6325_s2, %s6043_s7  ;;  %p6050_p2 = scmp.lt.s32.totalorder %s6048_s20, %s6043_s7 }
  0x57   : > { %p6046_p13 = pnand %p6045_p12, %p6044_p11  ;;  %p6051_p4 = por %p6050_p2, %p6049_p6 }
  0x59   : > { %p6047_p0 = pneg %p6046_p13 }
  0x5b   : > { %p6052_p7 = pnand %p6051_p4, %p6047_p0 }
  0x5d   : > { %6055 = shalt.err (!%p6052_p7)
}
  0x5e   : > { %s6056_s24 = scalar_lea.vmem %s539_s18, 128  ;;  %s6123_s29 = smov [#allocation2]  }
  0x5f   : > { %p6057_p8 = scmp.ne.s32.totalorder %s539_s18, %s6056_s24  ;;  %s6061_s16 = sshll.u32 %s6123_s29, 4  ;;  %s6062_s16 = int_to_ptr.vmem [resolvable:$false] %s6061_s16 }
  0x60   : > { %s6063_s19 = scalar_lea.vmem %s6062_s16, 256  ;;  %p6064_p11 = scmp.lt.s32.totalorder %s539_s18, %s6062_s16 }
  0x61   : > { %p6059_p9 = pnand %p6057_p8, %p6045_p12  ;;  %p6065_p13 = scmp.lt.s32.totalorder %s6063_s19, %s6056_s24 }
  0x63   : > { %p6060_p1 = pneg %p6059_p9  ;;  %p6066_p10 = por %p6065_p13, %p6064_p11 }
  0x65   : > { %p6067_p3 = pnand %p6066_p10, %p6060_p1 }
  0x67   : > { %6070 = shalt.err (!%p6067_p3)
}
  0x68   : > { %5864 = dma.hbm_to_vmem [thread:$0]  (!%p6327_p5), %s6325_s2, 128, %s539_s18, %s527_s6  }
  0x69   : > { %p7207_p0 = scmp.ne.s32.totalorder %s7197_s30, 0 }
  0x6a   : > { %s549_s7 = sand.u32 (!%p7207_p0), 1, %s6105_s25   ;;  %p7208_p12 = scmp.ne.s32.totalorder (!%p7207_p0), %s7204_s1, 0 }
  0x6b   : > { %547 = sbr.rel (%p7207_p0) target bundleno = 4826 (0x12da), region = 88  ;;  %s6348_s27 = sshll.u32 (!%p7207_p0), %s549_s7, 3 }
  0x6c   : > { %s550_s10 = scalar_lea.sflag (!%p7207_p0), [#allocation3], %s549_s7  ;;  %s553_s20 = scalar_lea.vmem (!%p7207_p0), [#allocation2], %s6348_s27 }
  0x70   : > { %6088 = dma.done.wait (%p7208_p12), %s550_s10, 128  }
  0x71   : > { %6090 = vsyncadd (%p7208_p12), %s550_s10, 4294967168  ;;  %p7209_p1 = scmp.eq.s32.totalorder %s6238_s0, 0 }
  0x73   : > { %6092 = dma.done.wait (%p7209_p1), [#allocation5], 76032   ;;  %p7210_p3 = pmov %p7209_p1 }
  0x74   : > { %p7211_p10 = pmov %p7209_p1 }
  0x75   : > { %6094 = vsyncadd (%p7210_p3), [#allocation5], 4294891264 }
  0x76   : > { %6096 = dma.done.wait (%p7211_p10), [#allocation8], 9600   ;;  %p7212_p5 = pmov %p7209_p1 }
  0x77   : > { %v657_v0 = vld [vmem:[#allocation4 + $0xf8] sm:$0xff]  ;;  %v656_v2 = vld [vmem:[#allocation4 + $0xf0] sm:$0xff]  ;;  %v655_v4 = vld [vmem:[#allocation4 + $0xe8] sm:$0xff]  ;;  %vm912_vm0 = vcmask 1043456   ;;  %s7213_s16 = sld [smem:[#allocation15_spill]]  ;;  %vm905_vm1 = vcmask 31744  }
  0x78   : > { %6098 = vsyncadd (%p7212_p5), [#allocation8], 4294957696  ;;  %v798_v1 = vld [vmem:[#allocation4 + $0x2f8] sm:$0xff]  ;;  %693 = vmatprep.subr.mxu0 %v657_v0  ;;  %v797_v3 = vld [vmem:[#allocation4 + $0x2f0] sm:$0xff]  ;;  %vm3198_vm6 = vcmask 523264   ;;  %vm3369_vm7 = vcmask 130048  }
  0x79   : > { %831 = vmatprep.subr.mxu1 %v798_v1  ;;  %v796_v5 = vld [vmem:[#allocation4 + $0x2e8] sm:$0xff]  ;;  %694 = vmatpush1.msra.mxu0 %v656_v2  ;;  %v654_v6 = vld [vmem:[#allocation4 + $0xe0] sm:$0xff]  ;;  %v653_v8 = vld [vmem:[#allocation4 + $0xd8] sm:$0xff]  ;;  %vm6126_vm8 = vmmov 0   ;;  %s7214_s29 = sld [smem:[#allocation19_spill]]  ;;  %p620_p6 = scmp.lt.s32.totalorder %s6238_s0, 1 }
  0x7a   : > { %832 = vmatpush1.msra.mxu1 %v797_v3  ;;  %v795_v7 = vld [vmem:[#allocation4 + $0x2e0] sm:$0xff]  ;;  %695 = vmatprep.subr.mxu0 %v655_v4  ;;  %v794_v9 = vld [vmem:[#allocation4 + $0x2d8] sm:$0xff]  ;;  %v652_v10 = vld [vmem:[#allocation4 + $0xd0] sm:$0xff]  ;;  %s7215_s18 = sld [smem:[#allocation21_spill]]  ;;  %vm4985_vm11 = vcmask 519168  }
  0x7b   : > { %833 = vmatprep.subr.mxu1 %v796_v5  ;;  %v793_v11 = vld [vmem:[#allocation4 + $0x2d0] sm:$0xff]  ;;  %696 = vmatpush1.msra.mxu0 %v654_v6  ;;  %v651_v12 = vld [vmem:[#allocation4 + $0xc8] sm:$0xff]  ;;  %v650_v14 = vld [vmem:[#allocation4 + $0xc0] sm:$0xff]  ;;  %s7222_s0 = smov (!%p620_p6, %s6238_s0), 1 }
  0x7c   : > { %834 = vmatpush1.msra.mxu1 %v795_v7  ;;  %v792_v13 = vld [vmem:[#allocation4 + $0x2c8] sm:$0xff]  ;;  %697 = vmatprep.subr.mxu0 %v653_v8  ;;  %v791_v15 = vld [vmem:[#allocation4 + $0x2c0] sm:$0xff]  ;;  %v649_v16 = vld [vmem:[#allocation4 + $0xb8] sm:$0xff]  ;;  %s5829_s30 = smul.u32 24, %s7222_s0 }
  0x7d   : > { %835 = vmatprep.subr.mxu1 %v794_v9  ;;  %698 = vmatpush1.msra.mxu0 %v652_v10  ;;  %v790_v17 = vld [vmem:[#allocation4 + $0x2b8] sm:$0xff]  ;;  %v648_v18 = vld [vmem:[#allocation4 + $0xb0] sm:$0xff]  ;;  %v647_v20 = vld [vmem:[#allocation4 + $0xa8] sm:$0xff] }
  0x7e   : > { %836 = vmatpush1.msra.mxu1 %v793_v11  ;;  %699 = vmatprep.subr.mxu0 %v651_v12  ;;  %v789_v19 = vld [vmem:[#allocation4 + $0x2b0] sm:$0xff]  ;;  %v788_v21 = vld [vmem:[#allocation4 + $0x2a8] sm:$0xff]  ;;  %v646_v22 = vld [vmem:[#allocation4 + $0xa0] sm:$0xff] }
  0x7f   : > { %837 = vmatprep.subr.mxu1 %v792_v13  ;;  %700 = vmatpush1.msra.mxu0 %v650_v14  ;;  %v787_v23 = vld [vmem:[#allocation4 + $0x2a0] sm:$0xff]  ;;  %v645_v24 = vld [vmem:[#allocation4 + $0x98] sm:$0xff]  ;;  %v644_v26 = vld [vmem:[#allocation4 + $0x90] sm:$0xff] }
  0x80   : > { %838 = vmatpush1.msra.mxu1 %v791_v15  ;;  %701 = vmatprep.subr.mxu0 %v649_v16  ;;  %v786_v25 = vld [vmem:[#allocation4 + $0x298] sm:$0xff]  ;;  %v785_v27 = vld [vmem:[#allocation4 + $0x290] sm:$0xff]  ;;  %v643_v28 = vld [vmem:[#allocation4 + $0x88] sm:$0xff]  ;;  %s624_s17 = scalar_lea.vmem %s7215_s18, %s5829_s30 }
  0x81   : > { %839 = vmatprep.subr.mxu1 %v790_v17  ;;  %702 = vmatpush1.msra.mxu0 %v648_v18  ;;  %v784_v29 = vld [vmem:[#allocation4 + $0x288] sm:$0xff]  ;;  %v642_v30 = vld [vmem:[#allocation4 + $0x80] sm:$0xff]  ;;  %v641_v32 = vld [vmem:[#allocation4 + $0x78] sm:$0xff] }
  0x82   : > { %840 = vmatpush1.msra.mxu1 %v789_v19  ;;  %703 = vmatprep.subr.mxu0 %v647_v20  ;;  %v783_v31 = vld [vmem:[#allocation4 + $0x280] sm:$0xff]  ;;  %v782_v33 = vld [vmem:[#allocation4 + $0x278] sm:$0xff]  ;;  %v640_v34 = vld [vmem:[#allocation4 + $0x70] sm:$0xff] }
  0x83   : > { %841 = vmatprep.subr.mxu1 %v788_v21  ;;  %704 = vmatpush1.msra.mxu0 %v646_v22  ;;  %v781_v35 = vld [vmem:[#allocation4 + $0x270] sm:$0xff]  ;;  %v639_v36 = vld [vmem:[#allocation4 + $0x68] sm:$0xff]  ;;  %v638_v38 = vld [vmem:[#allocation4 + $0x60] sm:$0xff] }
  0x84   : > { %842 = vmatpush1.msra.mxu1 %v787_v23  ;;  %705 = vmatprep.subr.mxu0 %v645_v24  ;;  %v780_v37 = vld [vmem:[#allocation4 + $0x268] sm:$0xff]  ;;  %v779_v39 = vld [vmem:[#allocation4 + $0x260] sm:$0xff]  ;;  %v637_v40 = vld [vmem:[#allocation4 + $0x58] sm:$0xff] }
  0x85   : > { %843 = vmatprep.subr.mxu1 %v786_v25  ;;  %706 = vmatpush1.msra.mxu0 %v644_v26  ;;  %v778_v41 = vld [vmem:[#allocation4 + $0x258] sm:$0xff]  ;;  %v636_v42 = vld [vmem:[#allocation4 + $0x50] sm:$0xff]  ;;  %v635_v44 = vld [vmem:[#allocation4 + $0x48] sm:$0xff] }
  0x86   : > { %844 = vmatpush1.msra.mxu1 %v785_v27  ;;  %707 = vmatprep.subr.mxu0 %v643_v28  ;;  %v777_v43 = vld [vmem:[#allocation4 + $0x250] sm:$0xff]  ;;  %v776_v45 = vld [vmem:[#allocation4 + $0x248] sm:$0xff]  ;;  %v634_v46 = vld [vmem:[#allocation4 + $0x40] sm:$0xff] }
  0x87   : > { %845 = vmatprep.subr.mxu1 %v784_v29  ;;  %708 = vmatpush1.msra.mxu0 %v642_v30  ;;  %v775_v47 = vld [vmem:[#allocation4 + $0x240] sm:$0xff]  ;;  %v633_v48 = vld [vmem:[#allocation4 + $0x38] sm:$0xff]  ;;  %v632_v50 = vld [vmem:[#allocation4 + $0x30] sm:$0xff] }
  0x88   : > { %846 = vmatpush1.msra.mxu1 %v783_v31  ;;  %709 = vmatprep.subr.mxu0 %v641_v32  ;;  %v774_v49 = vld [vmem:[#allocation4 + $0x238] sm:$0xff]  ;;  %v773_v51 = vld [vmem:[#allocation4 + $0x230] sm:$0xff]  ;;  %v631_v52 = vld [vmem:[#allocation4 + $0x28] sm:$0xff] }
  0x89   : > { %847 = vmatprep.subr.mxu1 %v782_v33  ;;  %710 = vmatpush1.msra.mxu0 %v640_v34  ;;  %v772_v53 = vld [vmem:[#allocation4 + $0x228] sm:$0xff]  ;;  %v630_v54 = vld [vmem:[#allocation4 + $0x20] sm:$0xff]  ;;  %v629_v56 = vld [vmem:[#allocation4 + $0x18] sm:$0xff] }
  0x8a   : > { %848 = vmatpush1.msra.mxu1 %v781_v35  ;;  %711 = vmatprep.subr.mxu0 %v639_v36  ;;  %v771_v55 = vld [vmem:[#allocation4 + $0x220] sm:$0xff]  ;;  %v770_v57 = vld [vmem:[#allocation4 + $0x218] sm:$0xff]  ;;  %v628_v58 = vld [vmem:[#allocation4 + $0x10] sm:$0xff] }
  0x8b   : > { %849 = vmatprep.subr.mxu1 %v780_v37  ;;  %712 = vmatpush1.msra.mxu0 %v638_v38  ;;  %v769_v59 = vld [vmem:[#allocation4 + $0x210] sm:$0xff]  ;;  %v627_v60 = vld [vmem:[#allocation4 + $0x8] sm:$0xff]  ;;  %v626_v62 = vld [vmem:[#allocation4] sm:$0xff] }
  0x8c   : > { %850 = vmatpush1.msra.mxu1 %v779_v39  ;;  %713 = vmatprep.subr.mxu0 %v637_v40  ;;  %v768_v61 = vld [vmem:[#allocation4 + $0x208] sm:$0xff]  ;;  %v767_v63 = vld [vmem:[#allocation4 + $0x200] sm:$0xff]  ;;  %v689_v0 = vld [vmem:[#allocation4 + $0x1f8] sm:$0xff] }
  0x8d   : > { %851 = vmatprep.subr.mxu1 %v778_v41  ;;  %714 = vmatpush1.msra.mxu0 %v636_v42  ;;  %v830_v1 = vld [vmem:[#allocation4 + $0x3f8] sm:$0xff]  ;;  %v688_v2 = vld [vmem:[#allocation4 + $0x1f0] sm:$0xff]  ;;  %v687_v4 = vld [vmem:[#allocation4 + $0x1e8] sm:$0xff] }
  0x8e   : > { %852 = vmatpush1.msra.mxu1 %v777_v43  ;;  %715 = vmatprep.subr.mxu0 %v635_v44  ;;  %v829_v3 = vld [vmem:[#allocation4 + $0x3f0] sm:$0xff]  ;;  %v828_v5 = vld [vmem:[#allocation4 + $0x3e8] sm:$0xff]  ;;  %v686_v6 = vld [vmem:[#allocation4 + $0x1e0] sm:$0xff] }
  0x8f   : > { %853 = vmatprep.subr.mxu1 %v776_v45  ;;  %716 = vmatpush1.msra.mxu0 %v634_v46  ;;  %v827_v7 = vld [vmem:[#allocation4 + $0x3e0] sm:$0xff]  ;;  %v685_v8 = vld [vmem:[#allocation4 + $0x1d8] sm:$0xff]  ;;  %v684_v10 = vld [vmem:[#allocation4 + $0x1d0] sm:$0xff] }
  0x90   : > { %854 = vmatpush1.msra.mxu1 %v775_v47  ;;  %717 = vmatprep.subr.mxu0 %v633_v48  ;;  %v826_v9 = vld [vmem:[#allocation4 + $0x3d8] sm:$0xff]  ;;  %v825_v11 = vld [vmem:[#allocation4 + $0x3d0] sm:$0xff]  ;;  %v683_v12 = vld [vmem:[#allocation4 + $0x1c8] sm:$0xff] }
  0x91   : > { %855 = vmatprep.subr.mxu1 %v774_v49  ;;  %718 = vmatpush1.msra.mxu0 %v632_v50  ;;  %v824_v13 = vld [vmem:[#allocation4 + $0x3c8] sm:$0xff]  ;;  %v682_v14 = vld [vmem:[#allocation4 + $0x1c0] sm:$0xff]  ;;  %v681_v16 = vld [vmem:[#allocation4 + $0x1b8] sm:$0xff] }
  0x92   : > { %856 = vmatpush1.msra.mxu1 %v773_v51  ;;  %719 = vmatprep.subr.mxu0 %v631_v52  ;;  %v823_v15 = vld [vmem:[#allocation4 + $0x3c0] sm:$0xff]  ;;  %v822_v17 = vld [vmem:[#allocation4 + $0x3b8] sm:$0xff]  ;;  %v680_v18 = vld [vmem:[#allocation4 + $0x1b0] sm:$0xff] }
  0x93   : > { %857 = vmatprep.subr.mxu1 %v772_v53  ;;  %720 = vmatpush1.msra.mxu0 %v630_v54  ;;  %v821_v19 = vld [vmem:[#allocation4 + $0x3b0] sm:$0xff]  ;;  %v679_v20 = vld [vmem:[#allocation4 + $0x1a8] sm:$0xff]  ;;  %v678_v22 = vld [vmem:[#allocation4 + $0x1a0] sm:$0xff] }
  0x94   : > { %858 = vmatpush1.msra.mxu1 %v771_v55  ;;  %721 = vmatprep.subr.mxu0 %v629_v56  ;;  %v820_v21 = vld [vmem:[#allocation4 + $0x3a8] sm:$0xff]  ;;  %v819_v23 = vld [vmem:[#allocation4 + $0x3a0] sm:$0xff]  ;;  %v677_v24 = vld [vmem:[#allocation4 + $0x198] sm:$0xff] }
  0x95   : > { %859 = vmatprep.subr.mxu1 %v770_v57  ;;  %722 = vmatpush1.msra.mxu0 %v628_v58  ;;  %v818_v25 = vld [vmem:[#allocation4 + $0x398] sm:$0xff]  ;;  %v676_v26 = vld [vmem:[#allocation4 + $0x190] sm:$0xff]  ;;  %v675_v28 = vld [vmem:[#allocation4 + $0x188] sm:$0xff] }
  0x96   : > { %860 = vmatpush1.msra.mxu1 %v769_v59  ;;  %723 = vmatprep.subr.mxu0 %v627_v60  ;;  %v817_v27 = vld [vmem:[#allocation4 + $0x390] sm:$0xff]  ;;  %v816_v29 = vld [vmem:[#allocation4 + $0x388] sm:$0xff]  ;;  %v674_v30 = vld [vmem:[#allocation4 + $0x180] sm:$0xff] }
  0x97   : > { %861 = vmatprep.subr.mxu1 %v768_v61  ;;  %724 = vmatpush1.msra.mxu0 %v626_v62  ;;  %v815_v31 = vld [vmem:[#allocation4 + $0x380] sm:$0xff]  ;;  %v673_v32 = vld [vmem:[#allocation4 + $0x178] sm:$0xff]  ;;  %v672_v34 = vld [vmem:[#allocation4 + $0x170] sm:$0xff] }
  0x98   : > { %862 = vmatpush1.msra.mxu1 %v767_v63  ;;  %725 = vmatprep.subr.mxu0 %v689_v0  ;;  %v814_v33 = vld [vmem:[#allocation4 + $0x378] sm:$0xff]  ;;  %v813_v35 = vld [vmem:[#allocation4 + $0x370] sm:$0xff]  ;;  %v671_v36 = vld [vmem:[#allocation4 + $0x168] sm:$0xff] }
  0x99   : > { %863 = vmatprep.subr.mxu1 %v830_v1  ;;  %726 = vmatpush2.msra.mxu0 %v688_v2  ;;  %v812_v37 = vld [vmem:[#allocation4 + $0x368] sm:$0xff]  ;;  %v670_v38 = vld [vmem:[#allocation4 + $0x160] sm:$0xff]  ;;  %v669_v40 = vld [vmem:[#allocation4 + $0x158] sm:$0xff]  ;;  %v6124_v2 = vmov 0.0  }
  0x9a   : > { %864 = vmatpush2.msra.mxu1 %v829_v3  ;;  %727 = vmatprep.subr.mxu0 %v687_v4  ;;  %v811_v39 = vld [vmem:[#allocation4 + $0x360] sm:$0xff]  ;;  %v810_v41 = vld [vmem:[#allocation4 + $0x358] sm:$0xff]  ;;  %v668_v42 = vld [vmem:[#allocation4 + $0x150] sm:$0xff] }
  0x9b   : > { %865 = vmatprep.subr.mxu1 %v828_v5  ;;  %728 = vmatpush2.msra.mxu0 %v686_v6  ;;  %v809_v43 = vld [vmem:[#allocation4 + $0x350] sm:$0xff]  ;;  %v667_v44 = vld [vmem:[#allocation4 + $0x148] sm:$0xff]  ;;  %v666_v46 = vld [vmem:[#allocation4 + $0x140] sm:$0xff] }
  0x9c   : > { %866 = vmatpush2.msra.mxu1 %v827_v7  ;;  %729 = vmatprep.subr.mxu0 %v685_v8  ;;  %v808_v45 = vld [vmem:[#allocation4 + $0x348] sm:$0xff]  ;;  %v807_v47 = vld [vmem:[#allocation4 + $0x340] sm:$0xff]  ;;  %v665_v48 = vld [vmem:[#allocation4 + $0x138] sm:$0xff] }
  0x9d   : > { %867 = vmatprep.subr.mxu1 %v826_v9  ;;  %730 = vmatpush2.msra.mxu0 %v684_v10  ;;  %v806_v49 = vld [vmem:[#allocation4 + $0x338] sm:$0xff]  ;;  %v664_v50 = vld [vmem:[#allocation4 + $0x130] sm:$0xff]  ;;  %v663_v52 = vld [vmem:[#allocation4 + $0x128] sm:$0xff] }
  0x9e   : > { %868 = vmatpush2.msra.mxu1 %v825_v11  ;;  %731 = vmatprep.subr.mxu0 %v683_v12  ;;  %v805_v51 = vld [vmem:[#allocation4 + $0x330] sm:$0xff]  ;;  %v804_v53 = vld [vmem:[#allocation4 + $0x328] sm:$0xff]  ;;  %v662_v54 = vld [vmem:[#allocation4 + $0x120] sm:$0xff] }
  0x9f   : > { %869 = vmatprep.subr.mxu1 %v824_v13  ;;  %732 = vmatpush2.msra.mxu0 %v682_v14  ;;  %v803_v55 = vld [vmem:[#allocation4 + $0x320] sm:$0xff]  ;;  %v6365_v56 = vld [vmem:[%s553_s20] sm:$0xff]  ;;  %v659_v61 = vld [vmem:[#allocation4 + $0x108] sm:$0xff] }
  0xa0   : > { %870 = vmatpush2.msra.mxu1 %v823_v15  ;;  %733 = vmatprep.subr.mxu0 %v681_v16  ;;  %v661_v57 = vld [vmem:[#allocation4 + $0x118] sm:$0xff]  ;;  %v660_v59 = vld [vmem:[#allocation4 + $0x110] sm:$0xff]  ;;  %v800_v62 = vld [vmem:[#allocation4 + $0x308] sm:$0xff]  ;;  %v6369_v63 = vcombine.high %v6365_v56, %v6365_v56 }
  0xa1   : > { %871 = vmatprep.subr.mxu1 %v822_v17  ;;  %734 = vmatpush2.msra.mxu0 %v680_v18  ;;  %v802_v58 = vld [vmem:[#allocation4 + $0x318] sm:$0xff]  ;;  %v801_v60 = vld [vmem:[#allocation4 + $0x310] sm:$0xff]  ;;  %v658_v0 = vld [vmem:[#allocation4 + $0x100] sm:$0xff] }
  0xa2   : > { %872 = vmatpush2.msra.mxu1 %v821_v19  ;;  %735 = vmatprep.subr.mxu0 %v679_v20  ;;  %v799_v1 = vld [vmem:[#allocation4 + $0x300] sm:$0xff]  ;;  %v764_v8 = vld [vmem:[%s7213_s16] sm:$0xff]  ;;  %v1117_v9 = vld [vmem:[#allocation4 + $0x4f8] sm:$0xff] }
  0xa3   : > { %873 = vmatprep.subr.mxu1 %v820_v21  ;;  %736 = vmatpush2.msra.mxu0 %v678_v22  ;;  %v5109_v7 = vld [vmem:[%s7213_s16 + $0x10] sm:$0xff]  ;;  %v1116_v10 = vld [vmem:[#allocation4 + $0x4f0] sm:$0xff]  ;;  %v1115_v11 = vld [vmem:[#allocation4 + $0x4e8] sm:$0xff] }
  0xa4   : > { %874 = vmatpush2.msra.mxu1 %v819_v23  ;;  %737 = vmatprep.subr.mxu0 %v677_v24  ;;  %v1114_v12 = vld [vmem:[#allocation4 + $0x4e0] sm:$0xff]  ;;  %v765_v13 = vld [vmem:[%s7213_s16 + $0x8] sm:$0xff]  ;;  %v5110_v15 = vld [vmem:[%s7213_s16 + $0x18] sm:$0xff] }
  0xa5   : > { %875 = vmatprep.subr.mxu1 %v818_v25  ;;  %738 = vmatpush2.msra.mxu0 %v676_v26  ;;  %v1113_v14 = vld [vmem:[#allocation4 + $0x4d8] sm:$0xff]  ;;  %v1112_v16 = vld [vmem:[#allocation4 + $0x4d0] sm:$0xff]  ;;  %v1111_v17 = vld [vmem:[#allocation4 + $0x4c8] sm:$0xff] }
  0xa6   : > { %876 = vmatpush2.msra.mxu1 %v817_v27  ;;  %739 = vmatprep.subr.mxu0 %v675_v28  ;;  %v1110_v18 = vld [vmem:[#allocation4 + $0x4c0] sm:$0xff]  ;;  %v1109_v19 = vld [vmem:[#allocation4 + $0x4b8] sm:$0xff]  ;;  %v1108_v20 = vld [vmem:[#allocation4 + $0x4b0] sm:$0xff] }
  0xa7   : > { %877 = vmatprep.subr.mxu1 %v816_v29  ;;  %740 = vmatpush2.msra.mxu0 %v674_v30  ;;  %v1107_v21 = vld [vmem:[#allocation4 + $0x4a8] sm:$0xff]  ;;  %v1106_v22 = vld [vmem:[#allocation4 + $0x4a0] sm:$0xff]  ;;  %v1105_v23 = vld [vmem:[#allocation4 + $0x498] sm:$0xff] }
  0xa8   : > { %878 = vmatpush2.msra.mxu1 %v815_v31  ;;  %741 = vmatprep.subr.mxu0 %v673_v32  ;;  %v1104_v24 = vld [vmem:[#allocation4 + $0x490] sm:$0xff]  ;;  %v1103_v25 = vld [vmem:[#allocation4 + $0x488] sm:$0xff]  ;;  %v1102_v26 = vld [vmem:[#allocation4 + $0x480] sm:$0xff] }
  0xa9   : > { %879 = vmatprep.subr.mxu1 %v814_v33  ;;  %742 = vmatpush2.msra.mxu0 %v672_v34  ;;  %v1101_v27 = vld [vmem:[#allocation4 + $0x478] sm:$0xff]  ;;  %v1100_v28 = vld [vmem:[#allocation4 + $0x470] sm:$0xff]  ;;  %v1099_v29 = vld [vmem:[#allocation4 + $0x468] sm:$0xff] }
  0xaa   : > { %880 = vmatpush2.msra.mxu1 %v813_v35  ;;  %743 = vmatprep.subr.mxu0 %v671_v36  ;;  %v1098_v30 = vld [vmem:[#allocation4 + $0x460] sm:$0xff]  ;;  %v1097_v31 = vld [vmem:[#allocation4 + $0x458] sm:$0xff]  ;;  %v1096_v32 = vld [vmem:[#allocation4 + $0x450] sm:$0xff] }
  0xab   : > { %881 = vmatprep.subr.mxu1 %v812_v37  ;;  %744 = vmatpush2.msra.mxu0 %v670_v38  ;;  %v1095_v33 = vld [vmem:[#allocation4 + $0x448] sm:$0xff]  ;;  %v1094_v34 = vld [vmem:[#allocation4 + $0x440] sm:$0xff]  ;;  %v1093_v35 = vld [vmem:[#allocation4 + $0x438] sm:$0xff] }
  0xac   : > { %882 = vmatpush2.msra.mxu1 %v811_v39  ;;  %745 = vmatprep.subr.mxu0 %v669_v40  ;;  %v1092_v36 = vld [vmem:[#allocation4 + $0x430] sm:$0xff]  ;;  %v1091_v37 = vld [vmem:[#allocation4 + $0x428] sm:$0xff]  ;;  %v1090_v38 = vld [vmem:[#allocation4 + $0x420] sm:$0xff] }
  0xad   : > { %883 = vmatprep.subr.mxu1 %v810_v41  ;;  %746 = vmatpush2.msra.mxu0 %v668_v42  ;;  %v1089_v39 = vld [vmem:[#allocation4 + $0x418] sm:$0xff]  ;;  %v1088_v40 = vld [vmem:[#allocation4 + $0x410] sm:$0xff]  ;;  %v1087_v41 = vld [vmem:[#allocation4 + $0x408] sm:$0xff] }
  0xae   : > { %884 = vmatpush2.msra.mxu1 %v809_v43  ;;  %747 = vmatprep.subr.mxu0 %v667_v44  ;;  %v1086_v42 = vld [vmem:[#allocation4 + $0x400] sm:$0xff]  ;;  %v1149_v43 = vld [vmem:[#allocation4 + $0x5f8] sm:$0xff]  ;;  %v1148_v44 = vld [vmem:[#allocation4 + $0x5f0] sm:$0xff] }
  0xaf   : > { %885 = vmatprep.subr.mxu1 %v808_v45  ;;  %748 = vmatpush2.msra.mxu0 %v666_v46  ;;  %v1147_v45 = vld [vmem:[#allocation4 + $0x5e8] sm:$0xff]  ;;  %v1146_v46 = vld [vmem:[#allocation4 + $0x5e0] sm:$0xff] }
  0xb0   : > { %886 = vmatpush2.msra.mxu1 %v807_v47  ;;  %749 = vmatprep.subr.mxu0 %v665_v48  ;;  %v1145_v47 = vld [vmem:[#allocation4 + $0x5d8] sm:$0xff]  ;;  %v1144_v48 = vld [vmem:[#allocation4 + $0x5d0] sm:$0xff] }
  0xb1   : > { %887 = vmatprep.subr.mxu1 %v806_v49  ;;  %750 = vmatpush2.msra.mxu0 %v664_v50  ;;  %v1143_v49 = vld [vmem:[#allocation4 + $0x5c8] sm:$0xff]  ;;  %v1142_v50 = vld [vmem:[#allocation4 + $0x5c0] sm:$0xff] }
  0xb2   : > { %888 = vmatpush2.msra.mxu1 %v805_v51  ;;  %751 = vmatprep.subr.mxu0 %v663_v52  ;;  %v1141_v51 = vld [vmem:[#allocation4 + $0x5b8] sm:$0xff]  ;;  %v1140_v52 = vld [vmem:[#allocation4 + $0x5b0] sm:$0xff] }
  0xb3   : > { %889 = vmatprep.subr.mxu1 %v804_v53  ;;  %752 = vmatpush2.msra.mxu0 %v662_v54  ;;  %v1139_v53 = vld [vmem:[#allocation4 + $0x5a8] sm:$0xff]  ;;  %v1138_v54 = vld [vmem:[#allocation4 + $0x5a0] sm:$0xff] }
  0xb4   : > { %890 = vmatpush2.msra.mxu1 %v803_v55  ;;  %753 = vmatprep.subr.mxu0 %v661_v57  ;;  %v1137_v55 = vld [vmem:[#allocation4 + $0x598] sm:$0xff]  ;;  %v1136_v57 = vld [vmem:[#allocation4 + $0x590] sm:$0xff] }
  0xb5   : > { %891 = vmatprep.subr.mxu1 %v802_v58  ;;  %754 = vmatpush2.msra.mxu0 %v660_v59  ;;  %v1135_v58 = vld [vmem:[#allocation4 + $0x588] sm:$0xff]  ;;  %v1134_v59 = vld [vmem:[#allocation4 + $0x580] sm:$0xff] }
  0xb6   : > { %892 = vmatpush2.msra.mxu1 %v801_v60  ;;  %755 = vmatprep.subr.mxu0 %v659_v61  ;;  %v1133_v60 = vld [vmem:[#allocation4 + $0x578] sm:$0xff]  ;;  %v1132_v61 = vld [vmem:[#allocation4 + $0x570] sm:$0xff] }
  0xb7   : > { %893 = vmatprep.subr.mxu1 %v800_v62  ;;  %756 = vmatpush2.msra.mxu0 %v658_v0  ;;  %v1131_v62 = vld [vmem:[#allocation4 + $0x568] sm:$0xff]  ;;  %v1130_v0 = vld [vmem:[#allocation4 + $0x560] sm:$0xff] }
  0xb8   : > { %757 = vmatprep.mubr.f32.mxu0 %v6369_v63  ;;  %894 = vmatpush2.msra.mxu1 %v799_v1  ;;  %v1129_v1 = vld [vmem:[#allocation4 + $0x558] sm:$0xff] }
  0xb9   : > { %895 = vmatprep.mubr.f32.mxu1 %v6369_v63  ;;  %758 = vmatmul.mubr.f32.vlgmr.msra.gmra.mxu0 %v6365_v56 }
  0xba   : > { %896 = vmatmul.mubr.f32.vlgmr.msra.gmra.mxu1 %v6365_v56  ;;  %983 = vmatprep.mubr.f32.mxu0 %v6124_v2 }
  0xbb   : > { %1072 = vmatprep.mubr.f32.mxu1 %v6124_v2 }
 0x179   : > { %v759_v3 = vpop.f32.mrf.mxu0 }
 0x17a   : > { %v897_v4 = vpop.f32.mrf.mxu1 }
 0x17b   : > { %v761_v5 = vpop.f32.mrf.mxu0 }
 0x17c   : > { %v899_v6 = vpop.f32.mrf.mxu1  ;;  %5115 = vmatprep.subr.msk.mxu1 %vm912_vm0, %v761_v5  ;;  %v1126_v5 = vld [vmem:[#allocation4 + $0x540] sm:$0xff] }
 0x17d   : > { %5111 = vmatprep.subr.msk.mxu0 %vm912_vm0, %v899_v6  ;;  %5116 = vmatpush1.msk.msra.mxu1 %vm912_vm0, %v759_v3  ;;  %v1128_v3 = vld [vmem:[#allocation4 + $0x550] sm:$0xff]  ;;  %v1125_v6 = vld [vmem:[#allocation4 + $0x538] sm:$0xff] }
 0x17e   : > { %5112 = vmatpush1.msk.msra.mxu0 %vm912_vm0, %v897_v4  ;;  %5117 = vmatmul.mubr.msk.f32.vlgmr.msra.gmra.mxu1 %vm905_vm1, %v764_v8  ;;  %v1127_v4 = vld [vmem:[#allocation4 + $0x548] sm:$0xff] }
 0x17f   : > { %5113 = vmatmul.mubr.msk.f32.vlgmr.msra.gmra.mxu0 %vm905_vm1, %v5109_v7  ;;  %1150 = vmatprep.subr.mxu0 %v1117_v9  ;;  %v1124_v7 = vld [vmem:[#allocation4 + $0x530] sm:$0xff]  ;;  %v1123_v8 = vld [vmem:[#allocation4 + $0x528] sm:$0xff]  ;;  %v1122_v9 = vld [vmem:[#allocation4 + $0x520] sm:$0xff] }
 0x180   : > { %989 = vmatprep.mubr.f32.mxu0 %v6124_v2  ;;  %1151 = vmatpush1.msra.mxu0 %v1116_v10  ;;  %v1121_v10 = vld [vmem:[#allocation4 + $0x518] sm:$0xff] }
 0x181   : > { %1078 = vmatprep.mubr.f32.mxu1 %v6124_v2  ;;  %1152 = vmatprep.subr.mxu0 %v1115_v11  ;;  %v1120_v11 = vld [vmem:[#allocation4 + $0x510] sm:$0xff] }
 0x182   : > { %1153 = vmatpush1.msra.mxu0 %v1114_v12  ;;  %5118 = vmatmul.mubr.msk.f32.gmra.mxu1 %vm905_vm1, %v765_v13  ;;  %v1119_v12 = vld [vmem:[#allocation4 + $0x508] sm:$0xff]  ;;  %v1118_v13 = vld [vmem:[#allocation4 + $0x500] sm:$0xff] }
 0x183   : > { %1154 = vmatprep.subr.mxu0 %v1113_v14  ;;  %5114 = vmatmul.mubr.msk.f32.gmra.mxu0 %vm905_vm1, %v5110_v15 }
 0x184   : > { %1155 = vmatpush1.msra.mxu0 %v1112_v16  ;;  %1214 = vmatprep.mubr.f32.mxu0 %v6369_v63 }
 0x185   : > { %1156 = vmatprep.subr.mxu0 %v1111_v17  ;;  %1300 = vmatprep.mubr.f32.mxu1 %v6124_v2 }
 0x186   : > { %1157 = vmatpush1.msra.mxu0 %v1110_v18 }
 0x187   : > { %1158 = vmatprep.subr.mxu0 %v1109_v19 }
 0x188   : > { %1159 = vmatpush1.msra.mxu0 %v1108_v20 }
 0x189   : > { %1160 = vmatprep.subr.mxu0 %v1107_v21 }
 0x18a   : > { %1161 = vmatpush1.msra.mxu0 %v1106_v22 }
 0x18b   : > { %1162 = vmatprep.subr.mxu0 %v1105_v23 }
 0x18c   : > { %1163 = vmatpush1.msra.mxu0 %v1104_v24 }
 0x18d   : > { %1164 = vmatprep.subr.mxu0 %v1103_v25 }
 0x18e   : > { %1165 = vmatpush1.msra.mxu0 %v1102_v26  ;;  %v5119_v26 = vld [vmem:[%s7213_s16 + $0x20] sm:$0xff] }
 0x18f   : > { %1166 = vmatprep.subr.mxu0 %v1101_v27  ;;  %v1349_v27 = vld [vmem:[#allocation4 + $0x6f8] sm:$0xff] }
 0x190   : > { %1167 = vmatpush1.msra.mxu0 %v1100_v28  ;;  %v1348_v28 = vld [vmem:[#allocation4 + $0x6f0] sm:$0xff] }
 0x191   : > { %1168 = vmatprep.subr.mxu0 %v1099_v29  ;;  %v1347_v29 = vld [vmem:[#allocation4 + $0x6e8] sm:$0xff] }
 0x192   : > { %1169 = vmatpush1.msra.mxu0 %v1098_v30  ;;  %v1346_v30 = vld [vmem:[#allocation4 + $0x6e0] sm:$0xff] }
 0x193   : > { %1170 = vmatprep.subr.mxu0 %v1097_v31  ;;  %v5120_v31 = vld [vmem:[%s7213_s16 + $0x28] sm:$0xff] }
 0x194   : > { %1171 = vmatpush1.msra.mxu0 %v1096_v32  ;;  %v1345_v32 = vld [vmem:[#allocation4 + $0x6d8] sm:$0xff] }
 0x195   : > { %1172 = vmatprep.subr.mxu0 %v1095_v33  ;;  %v1344_v33 = vld [vmem:[#allocation4 + $0x6d0] sm:$0xff] }
 0x196   : > { %1173 = vmatpush1.msra.mxu0 %v1094_v34  ;;  %v1343_v34 = vld [vmem:[#allocation4 + $0x6c8] sm:$0xff] }
 0x197   : > { %1174 = vmatprep.subr.mxu0 %v1093_v35  ;;  %v1342_v35 = vld [vmem:[#allocation4 + $0x6c0] sm:$0xff] }
 0x198   : > { %1175 = vmatpush1.msra.mxu0 %v1092_v36  ;;  %v1341_v36 = vld [vmem:[#allocation4 + $0x6b8] sm:$0xff] }
 0x199   : > { %1176 = vmatprep.subr.mxu0 %v1091_v37  ;;  %v1340_v37 = vld [vmem:[#allocation4 + $0x6b0] sm:$0xff] }
 0x19a   : > { %1177 = vmatpush1.msra.mxu0 %v1090_v38  ;;  %v1339_v38 = vld [vmem:[#allocation4 + $0x6a8] sm:$0xff] }
 0x19b   : > { %1178 = vmatprep.subr.mxu0 %v1089_v39  ;;  %v1338_v39 = vld [vmem:[#allocation4 + $0x6a0] sm:$0xff] }
 0x19c   : > { %1179 = vmatpush1.msra.mxu0 %v1088_v40  ;;  %v1337_v40 = vld [vmem:[#allocation4 + $0x698] sm:$0xff] }
 0x19d   : > { %1180 = vmatprep.subr.mxu0 %v1087_v41  ;;  %v1336_v41 = vld [vmem:[#allocation4 + $0x690] sm:$0xff] }
 0x19e   : > { %1181 = vmatpush1.msra.mxu0 %v1086_v42  ;;  %v1335_v42 = vld [vmem:[#allocation4 + $0x688] sm:$0xff] }
 0x19f   : > { %1182 = vmatprep.subr.mxu0 %v1149_v43  ;;  %v1334_v43 = vld [vmem:[#allocation4 + $0x680] sm:$0xff] }
 0x1a0   : > { %1183 = vmatpush2.msra.mxu0 %v1148_v44  ;;  %v1333_v44 = vld [vmem:[#allocation4 + $0x678] sm:$0xff] }
 0x1a1   : > { %1184 = vmatprep.subr.mxu0 %v1147_v45  ;;  %v1332_v45 = vld [vmem:[#allocation4 + $0x670] sm:$0xff] }
 0x1a2   : > { %1185 = vmatpush2.msra.mxu0 %v1146_v46  ;;  %v1331_v46 = vld [vmem:[#allocation4 + $0x668] sm:$0xff] }
 0x1a3   : > { %1186 = vmatprep.subr.mxu0 %v1145_v47  ;;  %v1330_v47 = vld [vmem:[#allocation4 + $0x660] sm:$0xff] }
 0x1a4   : > { %1187 = vmatpush2.msra.mxu0 %v1144_v48  ;;  %v1329_v48 = vld [vmem:[#allocation4 + $0x658] sm:$0xff] }
 0x1a5   : > { %1188 = vmatprep.subr.mxu0 %v1143_v49  ;;  %v1328_v49 = vld [vmem:[#allocation4 + $0x650] sm:$0xff] }
 0x1a6   : > { %1189 = vmatpush2.msra.mxu0 %v1142_v50  ;;  %v1327_v50 = vld [vmem:[#allocation4 + $0x648] sm:$0xff] }
 0x1a7   : > { %1190 = vmatprep.subr.mxu0 %v1141_v51  ;;  %v1326_v51 = vld [vmem:[#allocation4 + $0x640] sm:$0xff] }
 0x1a8   : > { %1191 = vmatpush2.msra.mxu0 %v1140_v52  ;;  %v1325_v52 = vld [vmem:[#allocation4 + $0x638] sm:$0xff] }
 0x1a9   : > { %1192 = vmatprep.subr.mxu0 %v1139_v53  ;;  %v1324_v53 = vld [vmem:[#allocation4 + $0x630] sm:$0xff] }
 0x1aa   : > { %1193 = vmatpush2.msra.mxu0 %v1138_v54  ;;  %v1323_v54 = vld [vmem:[#allocation4 + $0x628] sm:$0xff] }
 0x1ab   : > { %1194 = vmatprep.subr.mxu0 %v1137_v55  ;;  %v1322_v55 = vld [vmem:[#allocation4 + $0x620] sm:$0xff] }
 0x1ac   : > { %1195 = vmatpush2.msra.mxu0 %v1136_v57  ;;  %v1321_v57 = vld [vmem:[#allocation4 + $0x618] sm:$0xff] }
 0x1ad   : > { %1196 = vmatprep.subr.mxu0 %v1135_v58  ;;  %v1320_v58 = vld [vmem:[#allocation4 + $0x610] sm:$0xff] }
 0x1ae   : > { %1197 = vmatpush2.msra.mxu0 %v1134_v59  ;;  %v1319_v59 = vld [vmem:[#allocation4 + $0x608] sm:$0xff] }
 0x1af   : > { %1198 = vmatprep.subr.mxu0 %v1133_v60  ;;  %v1318_v60 = vld [vmem:[#allocation4 + $0x600] sm:$0xff] }
 0x1b0   : > { %1199 = vmatpush2.msra.mxu0 %v1132_v61  ;;  %v1381_v61 = vld [vmem:[#allocation4 + $0x7f8] sm:$0xff] }
 0x1b1   : > { %1200 = vmatprep.subr.mxu0 %v1131_v62  ;;  %v1380_v62 = vld [vmem:[#allocation4 + $0x7f0] sm:$0xff] }
 0x1b2   : > { %1201 = vmatpush2.msra.mxu0 %v1130_v0  ;;  %v1379_v0 = vld [vmem:[#allocation4 + $0x7e8] sm:$0xff] }
 0x1b3   : > { %1202 = vmatprep.subr.mxu0 %v1129_v1  ;;  %v1378_v1 = vld [vmem:[#allocation4 + $0x7e0] sm:$0xff] }
 0x1b4   : > { %1203 = vmatpush2.msra.mxu0 %v1128_v3  ;;  %v1377_v3 = vld [vmem:[#allocation4 + $0x7d8] sm:$0xff] }
 0x1b5   : > { %1204 = vmatprep.subr.mxu0 %v1127_v4  ;;  %v1376_v4 = vld [vmem:[#allocation4 + $0x7d0] sm:$0xff] }
 0x1b6   : > { %1205 = vmatpush2.msra.mxu0 %v1126_v5  ;;  %v1375_v5 = vld [vmem:[#allocation4 + $0x7c8] sm:$0xff] }
 0x1b7   : > { %1206 = vmatprep.subr.mxu0 %v1125_v6  ;;  %v1374_v6 = vld [vmem:[#allocation4 + $0x7c0] sm:$0xff] }
 0x1b8   : > { %1207 = vmatpush2.msra.mxu0 %v1124_v7  ;;  %v1373_v7 = vld [vmem:[#allocation4 + $0x7b8] sm:$0xff] }
 0x1b9   : > { %1208 = vmatprep.subr.mxu0 %v1123_v8  ;;  %v1372_v8 = vld [vmem:[#allocation4 + $0x7b0] sm:$0xff] }
 0x1ba   : > { %1209 = vmatpush2.msra.mxu0 %v1122_v9  ;;  %v1371_v9 = vld [vmem:[#allocation4 + $0x7a8] sm:$0xff] }
 0x1bb   : > { %1210 = vmatprep.subr.mxu0 %v1121_v10  ;;  %v1370_v10 = vld [vmem:[#allocation4 + $0x7a0] sm:$0xff] }
 0x1bc   : > { %1211 = vmatpush2.msra.mxu0 %v1120_v11  ;;  %v1369_v11 = vld [vmem:[#allocation4 + $0x798] sm:$0xff] }
 0x1bd   : > { %1212 = vmatprep.subr.mxu0 %v1119_v12  ;;  %v1368_v12 = vld [vmem:[#allocation4 + $0x790] sm:$0xff] }
 0x1be   : > { %1213 = vmatpush2.msra.mxu0 %v1118_v13  ;;  %v1367_v13 = vld [vmem:[#allocation4 + $0x788] sm:$0xff] }
 0x1bf   : > { %1215 = vmatmul.mubr.f32.vlgmr.msra.gmra.mxu0 %v6365_v56 }
 0x1c0   : > { %1532 = vmatprep.mubr.f32.mxu0 %v6124_v2 }
 0x23e   : > { %v1074_v15 = vpop.f32.mrf.mxu1 }
 0x23f   : > { %v985_v14 = vpop.f32.mrf.mxu0 }
 0x240   : > { %v6403_v16 = vadd.f32 %v1074_v15, %v985_v14  ;;  %v1076_v18 = vpop.f32.mrf.mxu1  ;;  %v1366_v14 = vld [vmem:[#allocation4 + $0x780] sm:$0xff]  ;;  %v1365_v15 = vld [vmem:[#allocation4 + $0x778] sm:$0xff] }
 0x241   : > { %v987_v17 = vpop.f32.mrf.mxu0 }
 0x242   : > { %v6405_v19 = vadd.f32 %v1076_v18, %v987_v17  ;;  %v1080_v21 = vpop.f32.mrf.mxu1  ;;  %v1364_v17 = vld [vmem:[#allocation4 + $0x770] sm:$0xff]  ;;  %v1363_v18 = vld [vmem:[#allocation4 + $0x768] sm:$0xff] }
 0x243   : > { %v991_v20 = vpop.f32.mrf.mxu0 }
 0x244   : > { %v6407_v22 = vadd.f32 %v1080_v21, %v991_v20  ;;  %v1362_v20 = vld [vmem:[#allocation4 + $0x760] sm:$0xff]  ;;  %v1361_v21 = vld [vmem:[#allocation4 + $0x758] sm:$0xff] }
 0x245   : > { %v6409_v23 = vpop.f32.mrf.mxu0 }
 0x27f   : > { %v1216_v24 = vpop.f32.mrf.mxu0 }
 0x281   : > { %v1218_v25 = vpop.f32.mrf.mxu0 }
 0x282   : > { %5121 = vmatprep.subr.msk.mxu1 %vm912_vm0, %v1218_v25  ;;  %v1359_v25 = vld [vmem:[#allocation4 + $0x748] sm:$0xff] }
 0x283   : > { %5122 = vmatpush1.msk.msra.mxu1 %vm912_vm0, %v1216_v24  ;;  %v1360_v24 = vld [vmem:[#allocation4 + $0x750] sm:$0xff] }
 0x284   : > { %5123 = vmatmul.mubr.msk.f32.vlgmr.msra.gmra.mxu1 %vm905_vm1, %v5119_v26  ;;  %1382 = vmatprep.subr.mxu1 %v1349_v27  ;;  %v1358_v26 = vld [vmem:[#allocation4 + $0x740] sm:$0xff]  ;;  %v1357_v27 = vld [vmem:[#allocation4 + $0x738] sm:$0xff] }
 0x285   : > { %1383 = vmatpush1.msra.mxu1 %v1348_v28  ;;  %1306 = vmatprep.mubr.f32.mxu1 %v6124_v2  ;;  %v1356_v28 = vld [vmem:[#allocation4 + $0x730] sm:$0xff] }
 0x286   : > { %1384 = vmatprep.subr.mxu1 %v1347_v29  ;;  %v1355_v29 = vld [vmem:[#allocation4 + $0x728] sm:$0xff] }
 0x287   : > { %1385 = vmatpush1.msra.mxu1 %v1346_v30  ;;  %v1354_v30 = vld [vmem:[#allocation4 + $0x720] sm:$0xff] }
 0x288   : > { %5124 = vmatmul.mubr.msk.f32.gmra.mxu1 %vm905_vm1, %v5120_v31  ;;  %1386 = vmatprep.subr.mxu1 %v1345_v32  ;;  %v1353_v31 = vld [vmem:[#allocation4 + $0x718] sm:$0xff]  ;;  %v1352_v32 = vld [vmem:[#allocation4 + $0x710] sm:$0xff] }
 0x289   : > { %1387 = vmatpush1.msra.mxu1 %v1344_v33  ;;  %1446 = vmatprep.mubr.f32.mxu1 %v6369_v63  ;;  %v1351_v33 = vld [vmem:[#allocation4 + $0x708] sm:$0xff] }
 0x28a   : > { %1388 = vmatprep.subr.mxu1 %v1343_v34  ;;  %v1350_v34 = vld [vmem:[#allocation4 + $0x700] sm:$0xff] }
 0x28b   : > { %1389 = vmatpush1.msra.mxu1 %v1342_v35  ;;  %v1082_v35 = vpop.f32.mrf.mxu1 }
 0x28c   : > { %1390 = vmatprep.subr.mxu1 %v1341_v36 }
 0x28d   : > { %1391 = vmatpush1.msra.mxu1 %v1340_v37 }
 0x28e   : > { %1392 = vmatprep.subr.mxu1 %v1339_v38 }
 0x28f   : > { %1393 = vmatpush1.msra.mxu1 %v1338_v39 }
 0x290   : > { %1394 = vmatprep.subr.mxu1 %v1337_v40 }
 0x291   : > { %1395 = vmatpush1.msra.mxu1 %v1336_v41  ;;  %v1083_v41 = vadd.f32 %v1082_v35, %v6409_v23  ;;  %v5126_v23 = vld [vmem:[%s7213_s16 + $0x38] sm:$0xff]  ;;  %v1598_v35 = vld [vmem:[#allocation4 + $0x980] sm:$0xff] }
 0x292   : > { %1396 = vmatprep.subr.mxu1 %v1335_v42 }
 0x293   : > { %1397 = vmatpush1.msra.mxu1 %v1334_v43 }
 0x294   : > { %1398 = vmatprep.subr.mxu1 %v1333_v44 }
 0x295   : > { %1399 = vmatpush1.msra.mxu1 %v1332_v45 }
 0x296   : > { %1400 = vmatprep.subr.mxu1 %v1331_v46 }
 0x297   : > { %1401 = vmatpush1.msra.mxu1 %v1330_v47  ;;  %v1581_v47 = vld [vmem:[#allocation4 + $0x8f8] sm:$0xff] }
 0x298   : > { %1402 = vmatprep.subr.mxu1 %v1329_v48  ;;  %v1579_v48 = vld [vmem:[#allocation4 + $0x8e8] sm:$0xff] }
 0x299   : > { %1403 = vmatpush1.msra.mxu1 %v1328_v49  ;;  %v1577_v49 = vld [vmem:[#allocation4 + $0x8d8] sm:$0xff] }
 0x29a   : > { %1404 = vmatprep.subr.mxu1 %v1327_v50  ;;  %v1576_v50 = vld [vmem:[#allocation4 + $0x8d0] sm:$0xff] }
 0x29b   : > { %1405 = vmatpush1.msra.mxu1 %v1326_v51  ;;  %v1575_v51 = vld [vmem:[#allocation4 + $0x8c8] sm:$0xff] }
 0x29c   : > { %1406 = vmatprep.subr.mxu1 %v1325_v52  ;;  %v1574_v52 = vld [vmem:[#allocation4 + $0x8c0] sm:$0xff] }
 0x29d   : > { %1407 = vmatpush1.msra.mxu1 %v1324_v53  ;;  %v1573_v53 = vld [vmem:[#allocation4 + $0x8b8] sm:$0xff] }
 0x29e   : > { %1408 = vmatprep.subr.mxu1 %v1323_v54  ;;  %v1572_v54 = vld [vmem:[#allocation4 + $0x8b0] sm:$0xff] }
 0x29f   : > { %1409 = vmatpush1.msra.mxu1 %v1322_v55  ;;  %v1571_v55 = vld [vmem:[#allocation4 + $0x8a8] sm:$0xff] }
 0x2a0   : > { %1410 = vmatprep.subr.mxu1 %v1321_v57  ;;  %v1570_v57 = vld [vmem:[#allocation4 + $0x8a0] sm:$0xff] }
 0x2a1   : > { %1411 = vmatpush1.msra.mxu1 %v1320_v58  ;;  %v1569_v58 = vld [vmem:[#allocation4 + $0x898] sm:$0xff] }
 0x2a2   : > { %1412 = vmatprep.subr.mxu1 %v1319_v59  ;;  %v1568_v59 = vld [vmem:[#allocation4 + $0x890] sm:$0xff] }
 0x2a3   : > { %1413 = vmatpush1.msra.mxu1 %v1318_v60  ;;  %v1567_v60 = vld [vmem:[#allocation4 + $0x888] sm:$0xff] }
 0x2a4   : > { %1414 = vmatprep.subr.mxu1 %v1381_v61  ;;  %v1566_v61 = vld [vmem:[#allocation4 + $0x880] sm:$0xff] }
 0x2a5   : > { %1415 = vmatpush2.msra.mxu1 %v1380_v62  ;;  %v1565_v62 = vld [vmem:[#allocation4 + $0x878] sm:$0xff] }
 0x2a6   : > { %1416 = vmatprep.subr.mxu1 %v1379_v0  ;;  %v1564_v0 = vld [vmem:[#allocation4 + $0x870] sm:$0xff] }
 0x2a7   : > { %1417 = vmatpush2.msra.mxu1 %v1378_v1  ;;  %v1563_v1 = vld [vmem:[#allocation4 + $0x868] sm:$0xff] }
 0x2a8   : > { %1418 = vmatprep.subr.mxu1 %v1377_v3  ;;  %v1562_v3 = vld [vmem:[#allocation4 + $0x860] sm:$0xff] }
 0x2a9   : > { %1419 = vmatpush2.msra.mxu1 %v1376_v4  ;;  %v1561_v4 = vld [vmem:[#allocation4 + $0x858] sm:$0xff] }
 0x2aa   : > { %1420 = vmatprep.subr.mxu1 %v1375_v5  ;;  %v1560_v5 = vld [vmem:[#allocation4 + $0x850] sm:$0xff] }
 0x2ab   : > { %1421 = vmatpush2.msra.mxu1 %v1374_v6  ;;  %v1559_v6 = vld [vmem:[#allocation4 + $0x848] sm:$0xff] }
 0x2ac   : > { %1422 = vmatprep.subr.mxu1 %v1373_v7  ;;  %v1558_v7 = vld [vmem:[#allocation4 + $0x840] sm:$0xff] }
 0x2ad   : > { %1423 = vmatpush2.msra.mxu1 %v1372_v8  ;;  %v1557_v8 = vld [vmem:[#allocation4 + $0x838] sm:$0xff] }
 0x2ae   : > { %1424 = vmatprep.subr.mxu1 %v1371_v9  ;;  %v1556_v9 = vld [vmem:[#allocation4 + $0x830] sm:$0xff] }
 0x2af   : > { %1425 = vmatpush2.msra.mxu1 %v1370_v10  ;;  %v1555_v10 = vld [vmem:[#allocation4 + $0x828] sm:$0xff] }
 0x2b0   : > { %1426 = vmatprep.subr.mxu1 %v1369_v11  ;;  %v1554_v11 = vld [vmem:[#allocation4 + $0x820] sm:$0xff] }
 0x2b1   : > { %1427 = vmatpush2.msra.mxu1 %v1368_v12  ;;  %v1553_v12 = vld [vmem:[#allocation4 + $0x818] sm:$0xff] }
 0x2b2   : > { %1428 = vmatprep.subr.mxu1 %v1367_v13  ;;  %v1552_v13 = vld [vmem:[#allocation4 + $0x810] sm:$0xff] }
 0x2b3   : > { %1429 = vmatpush2.msra.mxu1 %v1366_v14  ;;  %v1551_v14 = vld [vmem:[#allocation4 + $0x808] sm:$0xff] }
 0x2b4   : > { %1430 = vmatprep.subr.mxu1 %v1365_v15  ;;  %v1550_v15 = vld [vmem:[#allocation4 + $0x800] sm:$0xff] }
 0x2b5   : > { %1431 = vmatpush2.msra.mxu1 %v1364_v17  ;;  %v1613_v17 = vld [vmem:[#allocation4 + $0x9f8] sm:$0xff] }
 0x2b6   : > { %1432 = vmatprep.subr.mxu1 %v1363_v18  ;;  %v1612_v18 = vld [vmem:[#allocation4 + $0x9f0] sm:$0xff] }
 0x2b7   : > { %1433 = vmatpush2.msra.mxu1 %v1362_v20  ;;  %v1611_v20 = vld [vmem:[#allocation4 + $0x9e8] sm:$0xff] }
 0x2b8   : > { %1434 = vmatprep.subr.mxu1 %v1361_v21  ;;  %v1610_v21 = vld [vmem:[#allocation4 + $0x9e0] sm:$0xff] }
 0x2b9   : > { %1435 = vmatpush2.msra.mxu1 %v1360_v24  ;;  %v1609_v24 = vld [vmem:[#allocation4 + $0x9d8] sm:$0xff] }
 0x2ba   : > { %1436 = vmatprep.subr.mxu1 %v1359_v25  ;;  %v1608_v25 = vld [vmem:[#allocation4 + $0x9d0] sm:$0xff] }
 0x2bb   : > { %1437 = vmatpush2.msra.mxu1 %v1358_v26  ;;  %v1607_v26 = vld [vmem:[#allocation4 + $0x9c8] sm:$0xff] }
 0x2bc   : > { %1438 = vmatprep.subr.mxu1 %v1357_v27  ;;  %v1606_v27 = vld [vmem:[#allocation4 + $0x9c0] sm:$0xff] }
 0x2bd   : > { %1439 = vmatpush2.msra.mxu1 %v1356_v28  ;;  %v1605_v28 = vld [vmem:[#allocation4 + $0x9b8] sm:$0xff] }
 0x2be   : > { %1440 = vmatprep.subr.mxu1 %v1355_v29  ;;  %v1604_v29 = vld [vmem:[#allocation4 + $0x9b0] sm:$0xff] }
 0x2bf   : > { %1441 = vmatpush2.msra.mxu1 %v1354_v30  ;;  %v1603_v30 = vld [vmem:[#allocation4 + $0x9a8] sm:$0xff] }
 0x2c0   : > { %1442 = vmatprep.subr.mxu1 %v1353_v31  ;;  %v1602_v31 = vld [vmem:[#allocation4 + $0x9a0] sm:$0xff] }
 0x2c1   : > { %1443 = vmatpush2.msra.mxu1 %v1352_v32  ;;  %v1601_v32 = vld [vmem:[#allocation4 + $0x998] sm:$0xff] }
 0x2c2   : > { %1444 = vmatprep.subr.mxu1 %v1351_v33  ;;  %v1600_v33 = vld [vmem:[#allocation4 + $0x990] sm:$0xff] }
 0x2c3   : > { %1445 = vmatpush2.msra.mxu1 %v1350_v34  ;;  %v1599_v34 = vld [vmem:[#allocation4 + $0x988] sm:$0xff] }
 0x2c4   : > { %1447 = vmatmul.mubr.f32.vlgmr.msra.gmra.mxu1 %v6365_v56 }
 0x2c5   : > { %1764 = vmatprep.mubr.f32.mxu1 %v6124_v2 }
 0x344   : > { %v1302_v36 = vpop.f32.mrf.mxu1 }
 0x345   : > { %v6426_v37 = vadd.f32 %v1302_v36, %v6403_v16  ;;  %v5125_v16 = vld [vmem:[%s7213_s16 + $0x30] sm:$0xff]  ;;  %v1597_v36 = vld [vmem:[#allocation4 + $0x978] sm:$0xff] }
 0x346   : > { %v1304_v38 = vpop.f32.mrf.mxu1 }
 0x347   : > { %v6429_v39 = vadd.f32 %v1304_v38, %v6405_v19  ;;  %v1580_v19 = vld [vmem:[#allocation4 + $0x8f0] sm:$0xff] }
 0x348   : > { %v1308_v40 = vpop.f32.mrf.mxu1  ;;  %v1596_v38 = vld [vmem:[#allocation4 + $0x970] sm:$0xff] }
 0x349   : > { %v6433_v42 = vadd.f32 %v1308_v40, %v6407_v22  ;;  %v1578_v22 = vld [vmem:[#allocation4 + $0x8e0] sm:$0xff]  ;;  %v1595_v40 = vld [vmem:[#allocation4 + $0x968] sm:$0xff] }
 0x34a   : > { %v1310_v43 = vpop.f32.mrf.mxu1 }
 0x34b   : > { %v6435_v44 = vadd.f32 %v1310_v43, %v1083_v41  ;;  %v1594_v41 = vld [vmem:[#allocation4 + $0x960] sm:$0xff]  ;;  %v1593_v43 = vld [vmem:[#allocation4 + $0x958] sm:$0xff] }
 0x384   : > { %v1448_v45 = vpop.f32.mrf.mxu1 }
 0x386   : > { %v1450_v46 = vpop.f32.mrf.mxu1 }
 0x387   : > { %5127 = vmatprep.subr.msk.mxu0 %vm912_vm0, %v1450_v46  ;;  %v1591_v46 = vld [vmem:[#allocation4 + $0x948] sm:$0xff] }
 0x388   : > { %5128 = vmatpush1.msk.msra.mxu0 %vm912_vm0, %v1448_v45  ;;  %v1592_v45 = vld [vmem:[#allocation4 + $0x950] sm:$0xff] }
 0x389   : > { %5129 = vmatmul.mubr.msk.f32.vlgmr.msra.gmra.mxu0 %vm905_vm1, %v5125_v16  ;;  %1614 = vmatprep.subr.mxu0 %v1581_v47  ;;  %v1590_v16 = vld [vmem:[#allocation4 + $0x940] sm:$0xff]  ;;  %v1589_v47 = vld [vmem:[#allocation4 + $0x938] sm:$0xff] }
 0x38a   : > { %1615 = vmatpush1.msra.mxu0 %v1580_v19  ;;  %1538 = vmatprep.mubr.f32.mxu0 %v6124_v2  ;;  %v1588_v19 = vld [vmem:[#allocation4 + $0x930] sm:$0xff] }
 0x38b   : > { %1616 = vmatprep.subr.mxu0 %v1579_v48  ;;  %v1587_v48 = vld [vmem:[#allocation4 + $0x928] sm:$0xff] }
 0x38c   : > { %1617 = vmatpush1.msra.mxu0 %v1578_v22  ;;  %v1586_v22 = vld [vmem:[#allocation4 + $0x920] sm:$0xff] }
 0x38d   : > { %5130 = vmatmul.mubr.msk.f32.gmra.mxu0 %vm905_vm1, %v5126_v23  ;;  %1618 = vmatprep.subr.mxu0 %v1577_v49  ;;  %v1585_v23 = vld [vmem:[#allocation4 + $0x918] sm:$0xff]  ;;  %v1584_v49 = vld [vmem:[#allocation4 + $0x910] sm:$0xff] }
 0x38e   : > { %1619 = vmatpush1.msra.mxu0 %v1576_v50  ;;  %1678 = vmatprep.mubr.f32.mxu0 %v6369_v63  ;;  %v1583_v50 = vld [vmem:[#allocation4 + $0x908] sm:$0xff] }
 0x38f   : > { %1620 = vmatprep.subr.mxu0 %v1575_v51  ;;  %v1582_v51 = vld [vmem:[#allocation4 + $0x900] sm:$0xff] }
 0x390   : > { %1621 = vmatpush1.msra.mxu0 %v1574_v52 }
 0x391   : > { %1622 = vmatprep.subr.mxu0 %v1573_v53 }
 0x392   : > { %1623 = vmatpush1.msra.mxu0 %v1572_v54 }
 0x393   : > { %1624 = vmatprep.subr.mxu0 %v1571_v55 }
 0x394   : > { %1625 = vmatpush1.msra.mxu0 %v1570_v57 }
 0x395   : > { %1626 = vmatprep.subr.mxu0 %v1569_v58 }
 0x396   : > { %1627 = vmatpush1.msra.mxu0 %v1568_v59 }
 0x397   : > { %1628 = vmatprep.subr.mxu0 %v1567_v60 }
 0x398   : > { %1629 = vmatpush1.msra.mxu0 %v1566_v61 }
 0x399   : > { %1630 = vmatprep.subr.mxu0 %v1565_v62  ;;  %v5131_v62 = vld [vmem:[%s7213_s16 + $0x40] sm:$0xff] }
 0x39a   : > { %1631 = vmatpush1.msra.mxu0 %v1564_v0  ;;  %v1812_v0 = vld [vmem:[#allocation4 + $0xaf0] sm:$0xff] }
 0x39b   : > { %1632 = vmatprep.subr.mxu0 %v1563_v1  ;;  %v1809_v1 = vld [vmem:[#allocation4 + $0xad8] sm:$0xff] }
 0x39c   : > { %1633 = vmatpush1.msra.mxu0 %v1562_v3  ;;  %v1808_v3 = vld [vmem:[#allocation4 + $0xad0] sm:$0xff] }
 0x39d   : > { %1634 = vmatprep.subr.mxu0 %v1561_v4  ;;  %v1807_v4 = vld [vmem:[#allocation4 + $0xac8] sm:$0xff] }
 0x39e   : > { %1635 = vmatpush1.msra.mxu0 %v1560_v5  ;;  %v1806_v5 = vld [vmem:[#allocation4 + $0xac0] sm:$0xff] }
 0x39f   : > { %1636 = vmatprep.subr.mxu0 %v1559_v6  ;;  %v1805_v6 = vld [vmem:[#allocation4 + $0xab8] sm:$0xff] }
 0x3a0   : > { %1637 = vmatpush1.msra.mxu0 %v1558_v7  ;;  %v1804_v7 = vld [vmem:[#allocation4 + $0xab0] sm:$0xff] }
 0x3a1   : > { %1638 = vmatprep.subr.mxu0 %v1557_v8  ;;  %v1803_v8 = vld [vmem:[#allocation4 + $0xaa8] sm:$0xff] }
 0x3a2   : > { %1639 = vmatpush1.msra.mxu0 %v1556_v9  ;;  %v1802_v9 = vld [vmem:[#allocation4 + $0xaa0] sm:$0xff] }
 0x3a3   : > { %1640 = vmatprep.subr.mxu0 %v1555_v10  ;;  %v1801_v10 = vld [vmem:[#allocation4 + $0xa98] sm:$0xff] }
 0x3a4   : > { %1641 = vmatpush1.msra.mxu0 %v1554_v11  ;;  %v1800_v11 = vld [vmem:[#allocation4 + $0xa90] sm:$0xff] }
 0x3a5   : > { %1642 = vmatprep.subr.mxu0 %v1553_v12  ;;  %v1799_v12 = vld [vmem:[#allocation4 + $0xa88] sm:$0xff] }
 0x3a6   : > { %1643 = vmatpush1.msra.mxu0 %v1552_v13  ;;  %v1798_v13 = vld [vmem:[#allocation4 + $0xa80] sm:$0xff] }
 0x3a7   : > { %1644 = vmatprep.subr.mxu0 %v1551_v14  ;;  %v1797_v14 = vld [vmem:[#allocation4 + $0xa78] sm:$0xff] }
 0x3a8   : > { %1645 = vmatpush1.msra.mxu0 %v1550_v15  ;;  %v1796_v15 = vld [vmem:[#allocation4 + $0xa70] sm:$0xff] }
 0x3a9   : > { %1646 = vmatprep.subr.mxu0 %v1613_v17  ;;  %v1795_v17 = vld [vmem:[#allocation4 + $0xa68] sm:$0xff] }
 0x3aa   : > { %1647 = vmatpush2.msra.mxu0 %v1612_v18  ;;  %v1794_v18 = vld [vmem:[#allocation4 + $0xa60] sm:$0xff] }
 0x3ab   : > { %1648 = vmatprep.subr.mxu0 %v1611_v20  ;;  %v1793_v20 = vld [vmem:[#allocation4 + $0xa58] sm:$0xff] }
 0x3ac   : > { %1649 = vmatpush2.msra.mxu0 %v1610_v21  ;;  %v1792_v21 = vld [vmem:[#allocation4 + $0xa50] sm:$0xff] }
 0x3ad   : > { %1650 = vmatprep.subr.mxu0 %v1609_v24  ;;  %v1791_v24 = vld [vmem:[#allocation4 + $0xa48] sm:$0xff] }
 0x3ae   : > { %1651 = vmatpush2.msra.mxu0 %v1608_v25  ;;  %v1790_v25 = vld [vmem:[#allocation4 + $0xa40] sm:$0xff] }
 0x3af   : > { %1652 = vmatprep.subr.mxu0 %v1607_v26  ;;  %v1789_v26 = vld [vmem:[#allocation4 + $0xa38] sm:$0xff] }
 0x3b0   : > { %1653 = vmatpush2.msra.mxu0 %v1606_v27  ;;  %v1788_v27 = vld [vmem:[#allocation4 + $0xa30] sm:$0xff] }
 0x3b1   : > { %1654 = vmatprep.subr.mxu0 %v1605_v28  ;;  %v1787_v28 = vld [vmem:[#allocation4 + $0xa28] sm:$0xff] }
 0x3b2   : > { %1655 = vmatpush2.msra.mxu0 %v1604_v29  ;;  %v1786_v29 = vld [vmem:[#allocation4 + $0xa20] sm:$0xff] }
 0x3b3   : > { %1656 = vmatprep.subr.mxu0 %v1603_v30  ;;  %v1785_v30 = vld [vmem:[#allocation4 + $0xa18] sm:$0xff] }
 0x3b4   : > { %1657 = vmatpush2.msra.mxu0 %v1602_v31  ;;  %v1784_v31 = vld [vmem:[#allocation4 + $0xa10] sm:$0xff] }
 0x3b5   : > { %1658 = vmatprep.subr.mxu0 %v1601_v32  ;;  %v1783_v32 = vld [vmem:[#allocation4 + $0xa08] sm:$0xff] }
 0x3b6   : > { %1659 = vmatpush2.msra.mxu0 %v1600_v33  ;;  %v1782_v33 = vld [vmem:[#allocation4 + $0xa00] sm:$0xff] }
 0x3b7   : > { %1660 = vmatprep.subr.mxu0 %v1599_v34  ;;  %v1845_v34 = vld [vmem:[#allocation4 + $0xbf8] sm:$0xff] }
 0x3b8   : > { %1661 = vmatpush2.msra.mxu0 %v1598_v35  ;;  %v1844_v35 = vld [vmem:[#allocation4 + $0xbf0] sm:$0xff] }
 0x3b9   : > { %1662 = vmatprep.subr.mxu0 %v1597_v36  ;;  %v1843_v36 = vld [vmem:[#allocation4 + $0xbe8] sm:$0xff] }
 0x3ba   : > { %1663 = vmatpush2.msra.mxu0 %v1596_v38  ;;  %v1842_v38 = vld [vmem:[#allocation4 + $0xbe0] sm:$0xff] }
 0x3bb   : > { %1664 = vmatprep.subr.mxu0 %v1595_v40  ;;  %v1841_v40 = vld [vmem:[#allocation4 + $0xbd8] sm:$0xff] }
 0x3bc   : > { %1665 = vmatpush2.msra.mxu0 %v1594_v41  ;;  %v1840_v41 = vld [vmem:[#allocation4 + $0xbd0] sm:$0xff] }
 0x3bd   : > { %1666 = vmatprep.subr.mxu0 %v1593_v43  ;;  %v1839_v43 = vld [vmem:[#allocation4 + $0xbc8] sm:$0xff] }
 0x3be   : > { %1667 = vmatpush2.msra.mxu0 %v1592_v45  ;;  %v1838_v45 = vld [vmem:[#allocation4 + $0xbc0] sm:$0xff] }
 0x3bf   : > { %1668 = vmatprep.subr.mxu0 %v1591_v46  ;;  %v1837_v46 = vld [vmem:[#allocation4 + $0xbb8] sm:$0xff] }
 0x3c0   : > { %1669 = vmatpush2.msra.mxu0 %v1590_v16  ;;  %v1836_v16 = vld [vmem:[#allocation4 + $0xbb0] sm:$0xff] }
 0x3c1   : > { %1670 = vmatprep.subr.mxu0 %v1589_v47  ;;  %v1835_v47 = vld [vmem:[#allocation4 + $0xba8] sm:$0xff] }
 0x3c2   : > { %1671 = vmatpush2.msra.mxu0 %v1588_v19  ;;  %v1834_v19 = vld [vmem:[#allocation4 + $0xba0] sm:$0xff] }
 0x3c3   : > { %1672 = vmatprep.subr.mxu0 %v1587_v48  ;;  %v1833_v48 = vld [vmem:[#allocation4 + $0xb98] sm:$0xff] }
 0x3c4   : > { %1673 = vmatpush2.msra.mxu0 %v1586_v22  ;;  %v1832_v22 = vld [vmem:[#allocation4 + $0xb90] sm:$0xff] }
 0x3c5   : > { %1674 = vmatprep.subr.mxu0 %v1585_v23  ;;  %v1831_v23 = vld [vmem:[#allocation4 + $0xb88] sm:$0xff] }
 0x3c6   : > { %1675 = vmatpush2.msra.mxu0 %v1584_v49  ;;  %v1830_v49 = vld [vmem:[#allocation4 + $0xb80] sm:$0xff] }
 0x3c7   : > { %1676 = vmatprep.subr.mxu0 %v1583_v50  ;;  %v1829_v50 = vld [vmem:[#allocation4 + $0xb78] sm:$0xff] }
 0x3c8   : > { %1677 = vmatpush2.msra.mxu0 %v1582_v51  ;;  %v1828_v51 = vld [vmem:[#allocation4 + $0xb70] sm:$0xff] }
 0x3c9   : > { %1679 = vmatmul.mubr.f32.vlgmr.msra.gmra.mxu0 %v6365_v56 }
 0x3ca   : > { %1996 = vmatprep.mubr.f32.mxu0 %v6124_v2 }
 0x449   : > { %v1534_v52 = vpop.f32.mrf.mxu0 }
 0x44a   : > { %v6452_v53 = vadd.f32 %v1534_v52, %v6426_v37  ;;  %v1813_v37 = vld [vmem:[#allocation4 + $0xaf8] sm:$0xff]  ;;  %v1827_v52 = vld [vmem:[#allocation4 + $0xb68] sm:$0xff] }
 0x44b   : > { %v1536_v54 = vpop.f32.mrf.mxu0 }
 0x44c   : > { %v6455_v55 = vadd.f32 %v1536_v54, %v6429_v39  ;;  %v1811_v39 = vld [vmem:[#allocation4 + $0xae8] sm:$0xff]  ;;  %v1826_v54 = vld [vmem:[#allocation4 + $0xb60] sm:$0xff] }
 0x44d   : > { %v1540_v57 = vpop.f32.mrf.mxu0 }
 0x44e   : > { %v6458_v58 = vadd.f32 %v1540_v57, %v6433_v42  ;;  %v1810_v42 = vld [vmem:[#allocation4 + $0xae0] sm:$0xff]  ;;  %v1825_v57 = vld [vmem:[#allocation4 + $0xb58] sm:$0xff] }
 0x44f   : > { %v1542_v59 = vpop.f32.mrf.mxu0 }
 0x450   : > { %v6461_v60 = vadd.f32 %v1542_v59, %v6435_v44  ;;  %v5132_v44 = vld [vmem:[%s7213_s16 + $0x48] sm:$0xff]  ;;  %v1824_v59 = vld [vmem:[#allocation4 + $0xb50] sm:$0xff] }
 0x489   : > { %v1680_v61 = vpop.f32.mrf.mxu0 }
 0x48b   : > { %v1682_v56 = vpop.f32.mrf.mxu0 }
 0x48c   : > { %5133 = vmatprep.subr.msk.mxu1 %vm912_vm0, %v1682_v56  ;;  %v1822_v56 = vld [vmem:[#allocation4 + $0xb40] sm:$0xff] }
 0x48d   : > { %5134 = vmatpush1.msk.msra.mxu1 %vm912_vm0, %v1680_v61  ;;  %v1823_v61 = vld [vmem:[#allocation4 + $0xb48] sm:$0xff] }
 0x48e   : > { %5135 = vmatmul.mubr.msk.f32.vlgmr.msra.gmra.mxu1 %vm905_vm1, %v5131_v62  ;;  %1846 = vmatprep.subr.mxu1 %v1813_v37  ;;  %v1821_v62 = vld [vmem:[#allocation4 + $0xb38] sm:$0xff]  ;;  %v1820_v37 = vld [vmem:[#allocation4 + $0xb30] sm:$0xff] }
 0x48f   : > { %1847 = vmatpush1.msra.mxu1 %v1812_v0  ;;  %1770 = vmatprep.mubr.f32.mxu1 %v6124_v2  ;;  %v1819_v0 = vld [vmem:[#allocation4 + $0xb28] sm:$0xff] }
 0x490   : > { %1848 = vmatprep.subr.mxu1 %v1811_v39  ;;  %v1818_v39 = vld [vmem:[#allocation4 + $0xb20] sm:$0xff] }
 0x491   : > { %1849 = vmatpush1.msra.mxu1 %v1810_v42  ;;  %v1817_v42 = vld [vmem:[#allocation4 + $0xb18] sm:$0xff] }
 0x492   : > { %5136 = vmatmul.mubr.msk.f32.gmra.mxu1 %vm905_vm1, %v5132_v44  ;;  %1850 = vmatprep.subr.mxu1 %v1809_v1  ;;  %v1816_v44 = vld [vmem:[#allocation4 + $0xb10] sm:$0xff]  ;;  %v1815_v1 = vld [vmem:[#allocation4 + $0xb08] sm:$0xff] }
 0x493   : > { %1851 = vmatpush1.msra.mxu1 %v1808_v3  ;;  %1910 = vmatprep.mubr.f32.mxu1 %v6369_v63  ;;  %v1814_v3 = vld [vmem:[#allocation4 + $0xb00] sm:$0xff] }
 0x494   : > { %1852 = vmatprep.subr.mxu1 %v1807_v4  ;;  %v6477_v4 = vld [vmem:[%s553_s20] sm:$0xff] }
 0x495   : > { %1853 = vmatpush1.msra.mxu1 %v1806_v5 }
 0x496   : > { %1854 = vmatprep.subr.mxu1 %v1805_v6 }
 0x497   : > { %1855 = vmatpush1.msra.mxu1 %v1804_v7 }
 0x498   : > { %1856 = vmatprep.subr.mxu1 %v1803_v8 }
 0x499   : > { %1857 = vmatpush1.msra.mxu1 %v1802_v9 }
 0x49a   : > { %1858 = vmatprep.subr.mxu1 %v1801_v10 }
 0x49b   : > { %1859 = vmatpush1.msra.mxu1 %v1800_v11 }
 0x49c   : > { %1860 = vmatprep.subr.mxu1 %v1799_v12 }
 0x49d   : > { %1861 = vmatpush1.msra.mxu1 %v1798_v13 }
 0x49e   : > { %1862 = vmatprep.subr.mxu1 %v1797_v14 }
 0x49f   : > { %1863 = vmatpush1.msra.mxu1 %v1796_v15  ;;  %v5137_v15 = vld [vmem:[%s7213_s16 + $0x50] sm:$0xff] }
 0x4a0   : > { %1864 = vmatprep.subr.mxu1 %v1795_v17  ;;  %v2044_v17 = vld [vmem:[#allocation4 + $0xcf0] sm:$0xff] }
 0x4a1   : > { %1865 = vmatpush1.msra.mxu1 %v1794_v18  ;;  %v2041_v18 = vld [vmem:[#allocation4 + $0xcd8] sm:$0xff] }
 0x4a2   : > { %1866 = vmatprep.subr.mxu1 %v1793_v20  ;;  %v2040_v20 = vld [vmem:[#allocation4 + $0xcd0] sm:$0xff] }
 0x4a3   : > { %1867 = vmatpush1.msra.mxu1 %v1792_v21  ;;  %v2039_v21 = vld [vmem:[#allocation4 + $0xcc8] sm:$0xff] }
 0x4a4   : > { %1868 = vmatprep.subr.mxu1 %v1791_v24  ;;  %v2038_v24 = vld [vmem:[#allocation4 + $0xcc0] sm:$0xff] }
 0x4a5   : > { %1869 = vmatpush1.msra.mxu1 %v1790_v25  ;;  %v2037_v25 = vld [vmem:[#allocation4 + $0xcb8] sm:$0xff] }
 0x4a6   : > { %1870 = vmatprep.subr.mxu1 %v1789_v26  ;;  %v2036_v26 = vld [vmem:[#allocation4 + $0xcb0] sm:$0xff] }
 0x4a7   : > { %1871 = vmatpush1.msra.mxu1 %v1788_v27  ;;  %v2035_v27 = vld [vmem:[#allocation4 + $0xca8] sm:$0xff] }
 0x4a8   : > { %1872 = vmatprep.subr.mxu1 %v1787_v28  ;;  %v2034_v28 = vld [vmem:[#allocation4 + $0xca0] sm:$0xff] }
 0x4a9   : > { %1873 = vmatpush1.msra.mxu1 %v1786_v29  ;;  %v2033_v29 = vld [vmem:[#allocation4 + $0xc98] sm:$0xff] }
 0x4aa   : > { %1874 = vmatprep.subr.mxu1 %v1785_v30  ;;  %v2032_v30 = vld [vmem:[#allocation4 + $0xc90] sm:$0xff] }
 0x4ab   : > { %1875 = vmatpush1.msra.mxu1 %v1784_v31  ;;  %v2031_v31 = vld [vmem:[#allocation4 + $0xc88] sm:$0xff] }
 0x4ac   : > { %1876 = vmatprep.subr.mxu1 %v1783_v32  ;;  %v2030_v32 = vld [vmem:[#allocation4 + $0xc80] sm:$0xff] }
 0x4ad   : > { %1877 = vmatpush1.msra.mxu1 %v1782_v33  ;;  %v2029_v33 = vld [vmem:[#allocation4 + $0xc78] sm:$0xff] }
 0x4ae   : > { %1878 = vmatprep.subr.mxu1 %v1845_v34  ;;  %v2028_v34 = vld [vmem:[#allocation4 + $0xc70] sm:$0xff] }
 0x4af   : > { %1879 = vmatpush2.msra.mxu1 %v1844_v35  ;;  %v2027_v35 = vld [vmem:[#allocation4 + $0xc68] sm:$0xff] }
 0x4b0   : > { %1880 = vmatprep.subr.mxu1 %v1843_v36  ;;  %v2026_v36 = vld [vmem:[#allocation4 + $0xc60] sm:$0xff] }
 0x4b1   : > { %1881 = vmatpush2.msra.mxu1 %v1842_v38  ;;  %v2025_v38 = vld [vmem:[#allocation4 + $0xc58] sm:$0xff] }
 0x4b2   : > { %1882 = vmatprep.subr.mxu1 %v1841_v40  ;;  %v2024_v40 = vld [vmem:[#allocation4 + $0xc50] sm:$0xff] }
 0x4b3   : > { %1883 = vmatpush2.msra.mxu1 %v1840_v41  ;;  %v2023_v41 = vld [vmem:[#allocation4 + $0xc48] sm:$0xff] }
 0x4b4   : > { %1884 = vmatprep.subr.mxu1 %v1839_v43  ;;  %v2022_v43 = vld [vmem:[#allocation4 + $0xc40] sm:$0xff] }
 0x4b5   : > { %1885 = vmatpush2.msra.mxu1 %v1838_v45  ;;  %v2021_v45 = vld [vmem:[#allocation4 + $0xc38] sm:$0xff] }
 0x4b6   : > { %1886 = vmatprep.subr.mxu1 %v1837_v46  ;;  %v2020_v46 = vld [vmem:[#allocation4 + $0xc30] sm:$0xff] }
 0x4b7   : > { %1887 = vmatpush2.msra.mxu1 %v1836_v16  ;;  %v2019_v16 = vld [vmem:[#allocation4 + $0xc28] sm:$0xff] }
 0x4b8   : > { %1888 = vmatprep.subr.mxu1 %v1835_v47  ;;  %v2018_v47 = vld [vmem:[#allocation4 + $0xc20] sm:$0xff] }
 0x4b9   : > { %1889 = vmatpush2.msra.mxu1 %v1834_v19  ;;  %v2017_v19 = vld [vmem:[#allocation4 + $0xc18] sm:$0xff] }
 0x4ba   : > { %1890 = vmatprep.subr.mxu1 %v1833_v48  ;;  %v2016_v48 = vld [vmem:[#allocation4 + $0xc10] sm:$0xff] }
 0x4bb   : > { %1891 = vmatpush2.msra.mxu1 %v1832_v22  ;;  %v2015_v22 = vld [vmem:[#allocation4 + $0xc08] sm:$0xff] }
 0x4bc   : > { %1892 = vmatprep.subr.mxu1 %v1831_v23  ;;  %v2014_v23 = vld [vmem:[#allocation4 + $0xc00] sm:$0xff] }
 0x4bd   : > { %1893 = vmatpush2.msra.mxu1 %v1830_v49  ;;  %v2077_v49 = vld [vmem:[#allocation4 + $0xdf8] sm:$0xff] }
 0x4be   : > { %1894 = vmatprep.subr.mxu1 %v1829_v50  ;;  %v2076_v50 = vld [vmem:[#allocation4 + $0xdf0] sm:$0xff] }
 0x4bf   : > { %1895 = vmatpush2.msra.mxu1 %v1828_v51  ;;  %v2075_v51 = vld [vmem:[#allocation4 + $0xde8] sm:$0xff] }
 0x4c0   : > { %1896 = vmatprep.subr.mxu1 %v1827_v52  ;;  %v2074_v52 = vld [vmem:[#allocation4 + $0xde0] sm:$0xff] }
 0x4c1   : > { %1897 = vmatpush2.msra.mxu1 %v1826_v54  ;;  %v2073_v54 = vld [vmem:[#allocation4 + $0xdd8] sm:$0xff] }
 0x4c2   : > { %1898 = vmatprep.subr.mxu1 %v1825_v57  ;;  %v2072_v57 = vld [vmem:[#allocation4 + $0xdd0] sm:$0xff] }
 0x4c3   : > { %1899 = vmatpush2.msra.mxu1 %v1824_v59  ;;  %v2071_v59 = vld [vmem:[#allocation4 + $0xdc8] sm:$0xff] }
 0x4c4   : > { %1900 = vmatprep.subr.mxu1 %v1823_v61  ;;  %v2070_v61 = vld [vmem:[#allocation4 + $0xdc0] sm:$0xff] }
 0x4c5   : > { %1901 = vmatpush2.msra.mxu1 %v1822_v56  ;;  %v2069_v56 = vld [vmem:[#allocation4 + $0xdb8] sm:$0xff] }
 0x4c6   : > { %1902 = vmatprep.subr.mxu1 %v1821_v62  ;;  %v2068_v62 = vld [vmem:[#allocation4 + $0xdb0] sm:$0xff] }
 0x4c7   : > { %1903 = vmatpush2.msra.mxu1 %v1820_v37  ;;  %v2067_v37 = vld [vmem:[#allocation4 + $0xda8] sm:$0xff] }
 0x4c8   : > { %1904 = vmatprep.subr.mxu1 %v1819_v0  ;;  %v2066_v0 = vld [vmem:[#allocation4 + $0xda0] sm:$0xff] }
 0x4c9   : > { %1905 = vmatpush2.msra.mxu1 %v1818_v39  ;;  %v2065_v39 = vld [vmem:[#allocation4 + $0xd98] sm:$0xff] }
 0x4ca   : > { %1906 = vmatprep.subr.mxu1 %v1817_v42  ;;  %v2064_v42 = vld [vmem:[#allocation4 + $0xd90] sm:$0xff] }
 0x4cb   : > { %1907 = vmatpush2.msra.mxu1 %v1816_v44  ;;  %v2063_v44 = vld [vmem:[#allocation4 + $0xd88] sm:$0xff] }
 0x4cc   : > { %1908 = vmatprep.subr.mxu1 %v1815_v1  ;;  %v2062_v1 = vld [vmem:[#allocation4 + $0xd80] sm:$0xff] }
 0x4cd   : > { %1909 = vmatpush2.msra.mxu1 %v1814_v3  ;;  %v2061_v3 = vld [vmem:[#allocation4 + $0xd78] sm:$0xff] }
 0x4ce   : > { %1911 = vmatmul.mubr.f32.vlgmr.msra.gmra.mxu1 %v6477_v4 }
 0x4cf   : > { %2228 = vmatprep.mubr.f32.mxu1 %v6124_v2 }
 0x54e   : > { %v1766_v5 = vpop.f32.mrf.mxu1 }
 0x54f   : > { %v6482_v6 = vadd.f32 %v1766_v5, %v6452_v53  ;;  %v2045_v53 = vld [vmem:[#allocation4 + $0xcf8] sm:$0xff]  ;;  %v2060_v5 = vld [vmem:[#allocation4 + $0xd70] sm:$0xff] }
 0x550   : > { %v1768_v7 = vpop.f32.mrf.mxu1 }
 0x551   : > { %v6485_v8 = vadd.f32 %v1768_v7, %v6455_v55  ;;  %v2043_v55 = vld [vmem:[#allocation4 + $0xce8] sm:$0xff] }
 0x552   : > { %v1772_v9 = vpop.f32.mrf.mxu1  ;;  %v2059_v7 = vld [vmem:[#allocation4 + $0xd68] sm:$0xff] }
 0x553   : > { %v6488_v10 = vadd.f32 %v1772_v9, %v6458_v58  ;;  %v2042_v58 = vld [vmem:[#allocation4 + $0xce0] sm:$0xff] }
 0x554   : > { %v1774_v11 = vpop.f32.mrf.mxu1  ;;  %v2058_v9 = vld [vmem:[#allocation4 + $0xd60] sm:$0xff] }
 0x555   : > { %v6491_v12 = vadd.f32 %v1774_v11, %v6461_v60  ;;  %v5138_v60 = vld [vmem:[%s7213_s16 + $0x58] sm:$0xff]  ;;  %v2057_v11 = vld [vmem:[#allocation4 + $0xd58] sm:$0xff] }
 0x58e   : > { %v1912_v13 = vpop.f32.mrf.mxu1 }
 0x590   : > { %v1914_v14 = vpop.f32.mrf.mxu1 }
 0x591   : > { %5139 = vmatprep.subr.msk.mxu0 %vm912_vm0, %v1914_v14  ;;  %v2055_v14 = vld [vmem:[#allocation4 + $0xd48] sm:$0xff] }
 0x592   : > { %5140 = vmatpush1.msk.msra.mxu0 %vm912_vm0, %v1912_v13  ;;  %v2056_v13 = vld [vmem:[#allocation4 + $0xd50] sm:$0xff] }
 0x593   : > { %5141 = vmatmul.mubr.msk.f32.vlgmr.msra.gmra.mxu0 %vm905_vm1, %v5137_v15  ;;  %2078 = vmatprep.subr.mxu0 %v2045_v53  ;;  %v2054_v15 = vld [vmem:[#allocation4 + $0xd40] sm:$0xff]  ;;  %v2053_v53 = vld [vmem:[#allocation4 + $0xd38] sm:$0xff] }
 0x594   : > { %2079 = vmatpush1.msra.mxu0 %v2044_v17  ;;  %2002 = vmatprep.mubr.f32.mxu0 %v6124_v2  ;;  %v2052_v17 = vld [vmem:[#allocation4 + $0xd30] sm:$0xff] }
 0x595   : > { %2080 = vmatprep.subr.mxu0 %v2043_v55  ;;  %v2051_v55 = vld [vmem:[#allocation4 + $0xd28] sm:$0xff] }
 0x596   : > { %2081 = vmatpush1.msra.mxu0 %v2042_v58  ;;  %v2050_v58 = vld [vmem:[#allocation4 + $0xd20] sm:$0xff] }
 0x597   : > { %5142 = vmatmul.mubr.msk.f32.gmra.mxu0 %vm905_vm1, %v5138_v60  ;;  %2082 = vmatprep.subr.mxu0 %v2041_v18  ;;  %v2049_v60 = vld [vmem:[#allocation4 + $0xd18] sm:$0xff]  ;;  %v2048_v18 = vld [vmem:[#allocation4 + $0xd10] sm:$0xff] }
 0x598   : > { %2083 = vmatpush1.msra.mxu0 %v2040_v20  ;;  %2142 = vmatprep.mubr.f32.mxu0 %v6369_v63  ;;  %v2047_v20 = vld [vmem:[#allocation4 + $0xd08] sm:$0xff] }
 0x599   : > { %2084 = vmatprep.subr.mxu0 %v2039_v21  ;;  %v2046_v21 = vld [vmem:[#allocation4 + $0xd00] sm:$0xff] }
 0x59a   : > { %2085 = vmatpush1.msra.mxu0 %v2038_v24 }
 0x59b   : > { %2086 = vmatprep.subr.mxu0 %v2037_v25 }
 0x59c   : > { %2087 = vmatpush1.msra.mxu0 %v2036_v26 }
 0x59d   : > { %2088 = vmatprep.subr.mxu0 %v2035_v27 }
 0x59e   : > { %2089 = vmatpush1.msra.mxu0 %v2034_v28 }
 0x59f   : > { %2090 = vmatprep.subr.mxu0 %v2033_v29 }
 0x5a0   : > { %2091 = vmatpush1.msra.mxu0 %v2032_v30 }
 0x5a1   : > { %2092 = vmatprep.subr.mxu0 %v2031_v31 }
 0x5a2   : > { %2093 = vmatpush1.msra.mxu0 %v2030_v32 }
 0x5a3   : > { %2094 = vmatprep.subr.mxu0 %v2029_v33 }
 0x5a4   : > { %2095 = vmatpush1.msra.mxu0 %v2028_v34  ;;  %v5143_v34 = vld [vmem:[%s7213_s16 + $0x60] sm:$0xff] }
 0x5a5   : > { %2096 = vmatprep.subr.mxu0 %v2027_v35  ;;  %v2276_v35 = vld [vmem:[#allocation4 + $0xef0] sm:$0xff] }
 0x5a6   : > { %2097 = vmatpush1.msra.mxu0 %v2026_v36  ;;  %v2273_v36 = vld [vmem:[#allocation4 + $0xed8] sm:$0xff] }
 0x5a7   : > { %2098 = vmatprep.subr.mxu0 %v2025_v38  ;;  %v2272_v38 = vld [vmem:[#allocation4 + $0xed0] sm:$0xff] }
 0x5a8   : > { %2099 = vmatpush1.msra.mxu0 %v2024_v40  ;;  %v2271_v40 = vld [vmem:[#allocation4 + $0xec8] sm:$0xff] }
 0x5a9   : > { %2100 = vmatprep.subr.mxu0 %v2023_v41  ;;  %v2270_v41 = vld [vmem:[#allocation4 + $0xec0] sm:$0xff] }
 0x5aa   : > { %2101 = vmatpush1.msra.mxu0 %v2022_v43  ;;  %v2269_v43 = vld [vmem:[#allocation4 + $0xeb8] sm:$0xff] }
 0x5ab   : > { %2102 = vmatprep.subr.mxu0 %v2021_v45  ;;  %v2268_v45 = vld [vmem:[#allocation4 + $0xeb0] sm:$0xff] }
 0x5ac   : > { %2103 = vmatpush1.msra.mxu0 %v2020_v46  ;;  %v2267_v46 = vld [vmem:[#allocation4 + $0xea8] sm:$0xff] }
 0x5ad   : > { %2104 = vmatprep.subr.mxu0 %v2019_v16  ;;  %v2266_v16 = vld [vmem:[#allocation4 + $0xea0] sm:$0xff] }
 0x5ae   : > { %2105 = vmatpush1.msra.mxu0 %v2018_v47  ;;  %v2265_v47 = vld [vmem:[#allocation4 + $0xe98] sm:$0xff] }
 0x5af   : > { %2106 = vmatprep.subr.mxu0 %v2017_v19  ;;  %v2264_v19 = vld [vmem:[#allocation4 + $0xe90] sm:$0xff] }
 0x5b0   : > { %2107 = vmatpush1.msra.mxu0 %v2016_v48  ;;  %v2263_v48 = vld [vmem:[#allocation4 + $0xe88] sm:$0xff] }
 0x5b1   : > { %2108 = vmatprep.subr.mxu0 %v2015_v22  ;;  %v2262_v22 = vld [vmem:[#allocation4 + $0xe80] sm:$0xff] }
 0x5b2   : > { %2109 = vmatpush1.msra.mxu0 %v2014_v23  ;;  %v2261_v23 = vld [vmem:[#allocation4 + $0xe78] sm:$0xff] }
 0x5b3   : > { %2110 = vmatprep.subr.mxu0 %v2077_v49  ;;  %v2260_v49 = vld [vmem:[#allocation4 + $0xe70] sm:$0xff] }
 0x5b4   : > { %2111 = vmatpush2.msra.mxu0 %v2076_v50  ;;  %v2259_v50 = vld [vmem:[#allocation4 + $0xe68] sm:$0xff] }
 0x5b5   : > { %2112 = vmatprep.subr.mxu0 %v2075_v51  ;;  %v2258_v51 = vld [vmem:[#allocation4 + $0xe60] sm:$0xff] }
 0x5b6   : > { %2113 = vmatpush2.msra.mxu0 %v2074_v52  ;;  %v2257_v52 = vld [vmem:[#allocation4 + $0xe58] sm:$0xff] }
 0x5b7   : > { %2114 = vmatprep.subr.mxu0 %v2073_v54  ;;  %v2256_v54 = vld [vmem:[#allocation4 + $0xe50] sm:$0xff] }
 0x5b8   : > { %2115 = vmatpush2.msra.mxu0 %v2072_v57  ;;  %v2255_v57 = vld [vmem:[#allocation4 + $0xe48] sm:$0xff] }
 0x5b9   : > { %2116 = vmatprep.subr.mxu0 %v2071_v59  ;;  %v2254_v59 = vld [vmem:[#allocation4 + $0xe40] sm:$0xff] }
 0x5ba   : > { %2117 = vmatpush2.msra.mxu0 %v2070_v61  ;;  %v2253_v61 = vld [vmem:[#allocation4 + $0xe38] sm:$0xff] }
 0x5bb   : > { %2118 = vmatprep.subr.mxu0 %v2069_v56  ;;  %v2252_v56 = vld [vmem:[#allocation4 + $0xe30] sm:$0xff] }
 0x5bc   : > { %2119 = vmatpush2.msra.mxu0 %v2068_v62  ;;  %v2251_v62 = vld [vmem:[#allocation4 + $0xe28] sm:$0xff] }
 0x5bd   : > { %2120 = vmatprep.subr.mxu0 %v2067_v37  ;;  %v2250_v37 = vld [vmem:[#allocation4 + $0xe20] sm:$0xff] }
 0x5be   : > { %2121 = vmatpush2.msra.mxu0 %v2066_v0  ;;  %v2249_v0 = vld [vmem:[#allocation4 + $0xe18] sm:$0xff] }
 0x5bf   : > { %2122 = vmatprep.subr.mxu0 %v2065_v39  ;;  %v2248_v39 = vld [vmem:[#allocation4 + $0xe10] sm:$0xff] }
 0x5c0   : > { %2123 = vmatpush2.msra.mxu0 %v2064_v42  ;;  %v2247_v42 = vld [vmem:[#allocation4 + $0xe08] sm:$0xff] }
 0x5c1   : > { %2124 = vmatprep.subr.mxu0 %v2063_v44  ;;  %v2246_v44 = vld [vmem:[#allocation4 + $0xe00] sm:$0xff] }
 0x5c2   : > { %2125 = vmatpush2.msra.mxu0 %v2062_v1  ;;  %v2309_v1 = vld [vmem:[#allocation4 + $0xff8] sm:$0xff] }
 0x5c3   : > { %2126 = vmatprep.subr.mxu0 %v2061_v3  ;;  %v2308_v3 = vld [vmem:[#allocation4 + $0xff0] sm:$0xff] }
 0x5c4   : > { %2127 = vmatpush2.msra.mxu0 %v2060_v5  ;;  %v2307_v5 = vld [vmem:[#allocation4 + $0xfe8] sm:$0xff] }
 0x5c5   : > { %2128 = vmatprep.subr.mxu0 %v2059_v7  ;;  %v2306_v7 = vld [vmem:[#allocation4 + $0xfe0] sm:$0xff] }
 0x5c6   : > { %2129 = vmatpush2.msra.mxu0 %v2058_v9  ;;  %v2305_v9 = vld [vmem:[#allocation4 + $0xfd8] sm:$0xff] }
 0x5c7   : > { %2130 = vmatprep.subr.mxu0 %v2057_v11  ;;  %v2304_v11 = vld [vmem:[#allocation4 + $0xfd0] sm:$0xff] }
 0x5c8   : > { %2131 = vmatpush2.msra.mxu0 %v2056_v13  ;;  %v2303_v13 = vld [vmem:[#allocation4 + $0xfc8] sm:$0xff] }
 0x5c9   : > { %2132 = vmatprep.subr.mxu0 %v2055_v14  ;;  %v2302_v14 = vld [vmem:[#allocation4 + $0xfc0] sm:$0xff] }
 0x5ca   : > { %2133 = vmatpush2.msra.mxu0 %v2054_v15  ;;  %v2301_v15 = vld [vmem:[#allocation4 + $0xfb8] sm:$0xff] }
 0x5cb   : > { %2134 = vmatprep.subr.mxu0 %v2053_v53  ;;  %v2300_v53 = vld [vmem:[#allocation4 + $0xfb0] sm:$0xff] }
 0x5cc   : > { %2135 = vmatpush2.msra.mxu0 %v2052_v17  ;;  %v2299_v17 = vld [vmem:[#allocation4 + $0xfa8] sm:$0xff] }
 0x5cd   : > { %2136 = vmatprep.subr.mxu0 %v2051_v55  ;;  %v2298_v55 = vld [vmem:[#allocation4 + $0xfa0] sm:$0xff] }
 0x5ce   : > { %2137 = vmatpush2.msra.mxu0 %v2050_v58  ;;  %v2297_v58 = vld [vmem:[#allocation4 + $0xf98] sm:$0xff] }
 0x5cf   : > { %2138 = vmatprep.subr.mxu0 %v2049_v60  ;;  %v2296_v60 = vld [vmem:[#allocation4 + $0xf90] sm:$0xff] }
 0x5d0   : > { %2139 = vmatpush2.msra.mxu0 %v2048_v18  ;;  %v2295_v18 = vld [vmem:[#allocation4 + $0xf88] sm:$0xff] }
 0x5d1   : > { %2140 = vmatprep.subr.mxu0 %v2047_v20  ;;  %v2294_v20 = vld [vmem:[#allocation4 + $0xf80] sm:$0xff] }
 0x5d2   : > { %2141 = vmatpush2.msra.mxu0 %v2046_v21  ;;  %v2293_v21 = vld [vmem:[#allocation4 + $0xf78] sm:$0xff] }
 0x5d3   : > { %2143 = vmatmul.mubr.f32.vlgmr.msra.gmra.mxu0 %v6477_v4 }
 0x5d4   : > { %2460 = vmatprep.mubr.f32.mxu0 %v6124_v2 }
 0x653   : > { %v1998_v24 = vpop.f32.mrf.mxu0 }
 0x654   : > { %v6508_v25 = vadd.f32 %v1998_v24, %v6482_v6  ;;  %v2277_v6 = vld [vmem:[#allocation4 + $0xef8] sm:$0xff]  ;;  %v2292_v24 = vld [vmem:[#allocation4 + $0xf70] sm:$0xff] }
 0x655   : > { %v2000_v26 = vpop.f32.mrf.mxu0 }
 0x656   : > { %v6511_v27 = vadd.f32 %v2000_v26, %v6485_v8  ;;  %v2275_v8 = vld [vmem:[#allocation4 + $0xee8] sm:$0xff] }
 0x657   : > { %v2004_v28 = vpop.f32.mrf.mxu0  ;;  %v2291_v26 = vld [vmem:[#allocation4 + $0xf68] sm:$0xff] }
 0x658   : > { %v6514_v29 = vadd.f32 %v2004_v28, %v6488_v10  ;;  %v2274_v10 = vld [vmem:[#allocation4 + $0xee0] sm:$0xff] }
 0x659   : > { %v2006_v30 = vpop.f32.mrf.mxu0  ;;  %v2290_v28 = vld [vmem:[#allocation4 + $0xf60] sm:$0xff] }
 0x65a   : > { %v6517_v31 = vadd.f32 %v2006_v30, %v6491_v12  ;;  %v5144_v12 = vld [vmem:[%s7213_s16 + $0x68] sm:$0xff] }
 0x65b   : > { %v2289_v30 = vld [vmem:[#allocation4 + $0xf58] sm:$0xff] }
 0x693   : > { %v2144_v32 = vpop.f32.mrf.mxu0 }
 0x695   : > { %v2146_v33 = vpop.f32.mrf.mxu0 }
 0x696   : > { %5145 = vmatprep.subr.msk.mxu1 %vm912_vm0, %v2146_v33  ;;  %v2287_v33 = vld [vmem:[#allocation4 + $0xf48] sm:$0xff] }
 0x697   : > { %5146 = vmatpush1.msk.msra.mxu1 %vm912_vm0, %v2144_v32  ;;  %v2288_v32 = vld [vmem:[#allocation4 + $0xf50] sm:$0xff] }
 0x698   : > { %5147 = vmatmul.mubr.msk.f32.vlgmr.msra.gmra.mxu1 %vm905_vm1, %v5143_v34  ;;  %2310 = vmatprep.subr.mxu1 %v2277_v6  ;;  %v2286_v34 = vld [vmem:[#allocation4 + $0xf40] sm:$0xff]  ;;  %v2285_v6 = vld [vmem:[#allocation4 + $0xf38] sm:$0xff] }
 0x699   : > { %2311 = vmatpush1.msra.mxu1 %v2276_v35  ;;  %2234 = vmatprep.mubr.f32.mxu1 %v6124_v2  ;;  %v2284_v35 = vld [vmem:[#allocation4 + $0xf30] sm:$0xff] }
 0x69a   : > { %2312 = vmatprep.subr.mxu1 %v2275_v8  ;;  %v2283_v8 = vld [vmem:[#allocation4 + $0xf28] sm:$0xff] }
 0x69b   : > { %2313 = vmatpush1.msra.mxu1 %v2274_v10  ;;  %v2282_v10 = vld [vmem:[#allocation4 + $0xf20] sm:$0xff] }
 0x69c   : > { %5148 = vmatmul.mubr.msk.f32.gmra.mxu1 %vm905_vm1, %v5144_v12  ;;  %2314 = vmatprep.subr.mxu1 %v2273_v36  ;;  %v2281_v12 = vld [vmem:[#allocation4 + $0xf18] sm:$0xff]  ;;  %v2280_v36 = vld [vmem:[#allocation4 + $0xf10] sm:$0xff] }
 0x69d   : > { %2315 = vmatpush1.msra.mxu1 %v2272_v38  ;;  %2374 = vmatprep.mubr.f32.mxu1 %v6369_v63  ;;  %v2279_v38 = vld [vmem:[#allocation4 + $0xf08] sm:$0xff] }
 0x69e   : > { %2316 = vmatprep.subr.mxu1 %v2271_v40  ;;  %v2278_v40 = vld [vmem:[#allocation4 + $0xf00] sm:$0xff] }
 0x69f   : > { %2317 = vmatpush1.msra.mxu1 %v2270_v41 }
 0x6a0   : > { %2318 = vmatprep.subr.mxu1 %v2269_v43 }
 0x6a1   : > { %2319 = vmatpush1.msra.mxu1 %v2268_v45 }
 0x6a2   : > { %2320 = vmatprep.subr.mxu1 %v2267_v46 }
 0x6a3   : > { %2321 = vmatpush1.msra.mxu1 %v2266_v16 }
 0x6a4   : > { %2322 = vmatprep.subr.mxu1 %v2265_v47 }
 0x6a5   : > { %2323 = vmatpush1.msra.mxu1 %v2264_v19 }
 0x6a6   : > { %2324 = vmatprep.subr.mxu1 %v2263_v48 }
 0x6a7   : > { %2325 = vmatpush1.msra.mxu1 %v2262_v22 }
 0x6a8   : > { %2326 = vmatprep.subr.mxu1 %v2261_v23 }
 0x6a9   : > { %2327 = vmatpush1.msra.mxu1 %v2260_v49  ;;  %v5149_v49 = vld [vmem:[%s7213_s16 + $0x70] sm:$0xff] }
 0x6aa   : > { %2328 = vmatprep.subr.mxu1 %v2259_v50  ;;  %v2508_v50 = vld [vmem:[#allocation4 + $0x10f0] sm:$0xff] }
 0x6ab   : > { %2329 = vmatpush1.msra.mxu1 %v2258_v51  ;;  %v2505_v51 = vld [vmem:[#allocation4 + $0x10d8] sm:$0xff] }
 0x6ac   : > { %2330 = vmatprep.subr.mxu1 %v2257_v52  ;;  %v2504_v52 = vld [vmem:[#allocation4 + $0x10d0] sm:$0xff] }
 0x6ad   : > { %2331 = vmatpush1.msra.mxu1 %v2256_v54  ;;  %v2503_v54 = vld [vmem:[#allocation4 + $0x10c8] sm:$0xff] }
 0x6ae   : > { %2332 = vmatprep.subr.mxu1 %v2255_v57  ;;  %v2502_v57 = vld [vmem:[#allocation4 + $0x10c0] sm:$0xff] }
 0x6af   : > { %2333 = vmatpush1.msra.mxu1 %v2254_v59  ;;  %v2501_v59 = vld [vmem:[#allocation4 + $0x10b8] sm:$0xff] }
 0x6b0   : > { %2334 = vmatprep.subr.mxu1 %v2253_v61  ;;  %v2500_v61 = vld [vmem:[#allocation4 + $0x10b0] sm:$0xff] }
 0x6b1   : > { %2335 = vmatpush1.msra.mxu1 %v2252_v56  ;;  %v2499_v56 = vld [vmem:[#allocation4 + $0x10a8] sm:$0xff] }
 0x6b2   : > { %2336 = vmatprep.subr.mxu1 %v2251_v62  ;;  %v2498_v62 = vld [vmem:[#allocation4 + $0x10a0] sm:$0xff] }
 0x6b3   : > { %2337 = vmatpush1.msra.mxu1 %v2250_v37  ;;  %v2497_v37 = vld [vmem:[#allocation4 + $0x1098] sm:$0xff] }
 0x6b4   : > { %2338 = vmatprep.subr.mxu1 %v2249_v0  ;;  %v2496_v0 = vld [vmem:[#allocation4 + $0x1090] sm:$0xff] }
 0x6b5   : > { %2339 = vmatpush1.msra.mxu1 %v2248_v39  ;;  %v2495_v39 = vld [vmem:[#allocation4 + $0x1088] sm:$0xff] }
 0x6b6   : > { %2340 = vmatprep.subr.mxu1 %v2247_v42  ;;  %v2494_v42 = vld [vmem:[#allocation4 + $0x1080] sm:$0xff] }
 0x6b7   : > { %2341 = vmatpush1.msra.mxu1 %v2246_v44  ;;  %v2493_v44 = vld [vmem:[#allocation4 + $0x1078] sm:$0xff] }
 0x6b8   : > { %2342 = vmatprep.subr.mxu1 %v2309_v1  ;;  %v2492_v1 = vld [vmem:[#allocation4 + $0x1070] sm:$0xff] }
 0x6b9   : > { %2343 = vmatpush2.msra.mxu1 %v2308_v3  ;;  %v2490_v3 = vld [vmem:[#allocation4 + $0x1060] sm:$0xff] }
 0x6ba   : > { %2344 = vmatprep.subr.mxu1 %v2307_v5  ;;  %v2489_v5 = vld [vmem:[#allocation4 + $0x1058] sm:$0xff] }
 0x6bb   : > { %2345 = vmatpush2.msra.mxu1 %v2306_v7  ;;  %v2488_v7 = vld [vmem:[#allocation4 + $0x1050] sm:$0xff] }
 0x6bc   : > { %2346 = vmatprep.subr.mxu1 %v2305_v9  ;;  %v2487_v9 = vld [vmem:[#allocation4 + $0x1048] sm:$0xff] }
 0x6bd   : > { %2347 = vmatpush2.msra.mxu1 %v2304_v11  ;;  %v2486_v11 = vld [vmem:[#allocation4 + $0x1040] sm:$0xff] }
 0x6be   : > { %2348 = vmatprep.subr.mxu1 %v2303_v13  ;;  %v2485_v13 = vld [vmem:[#allocation4 + $0x1038] sm:$0xff] }
 0x6bf   : > { %2349 = vmatpush2.msra.mxu1 %v2302_v14  ;;  %v2484_v14 = vld [vmem:[#allocation4 + $0x1030] sm:$0xff] }
 0x6c0   : > { %2350 = vmatprep.subr.mxu1 %v2301_v15  ;;  %v2483_v15 = vld [vmem:[#allocation4 + $0x1028] sm:$0xff] }
 0x6c1   : > { %2351 = vmatpush2.msra.mxu1 %v2300_v53  ;;  %v2482_v53 = vld [vmem:[#allocation4 + $0x1020] sm:$0xff] }
 0x6c2   : > { %2352 = vmatprep.subr.mxu1 %v2299_v17  ;;  %v2481_v17 = vld [vmem:[#allocation4 + $0x1018] sm:$0xff] }
 0x6c3   : > { %2353 = vmatpush2.msra.mxu1 %v2298_v55  ;;  %v2480_v55 = vld [vmem:[#allocation4 + $0x1010] sm:$0xff] }
 0x6c4   : > { %2354 = vmatprep.subr.mxu1 %v2297_v58  ;;  %v2479_v58 = vld [vmem:[#allocation4 + $0x1008] sm:$0xff] }
 0x6c5   : > { %2355 = vmatpush2.msra.mxu1 %v2296_v60  ;;  %v2478_v60 = vld [vmem:[#allocation4 + $0x1000] sm:$0xff] }
 0x6c6   : > { %2356 = vmatprep.subr.mxu1 %v2295_v18  ;;  %v2541_v18 = vld [vmem:[#allocation4 + $0x11f8] sm:$0xff] }
 0x6c7   : > { %2357 = vmatpush2.msra.mxu1 %v2294_v20  ;;  %v2540_v20 = vld [vmem:[#allocation4 + $0x11f0] sm:$0xff] }
 0x6c8   : > { %2358 = vmatprep.subr.mxu1 %v2293_v21  ;;  %v2539_v21 = vld [vmem:[#allocation4 + $0x11e8] sm:$0xff] }
 0x6c9   : > { %2359 = vmatpush2.msra.mxu1 %v2292_v24  ;;  %v2538_v24 = vld [vmem:[#allocation4 + $0x11e0] sm:$0xff] }
 0x6ca   : > { %2360 = vmatprep.subr.mxu1 %v2291_v26  ;;  %v2537_v26 = vld [vmem:[#allocation4 + $0x11d8] sm:$0xff] }
 0x6cb   : > { %2361 = vmatpush2.msra.mxu1 %v2290_v28  ;;  %v2536_v28 = vld [vmem:[#allocation4 + $0x11d0] sm:$0xff] }
 0x6cc   : > { %2362 = vmatprep.subr.mxu1 %v2289_v30  ;;  %v2535_v30 = vld [vmem:[#allocation4 + $0x11c8] sm:$0xff] }
 0x6cd   : > { %2363 = vmatpush2.msra.mxu1 %v2288_v32  ;;  %v2534_v32 = vld [vmem:[#allocation4 + $0x11c0] sm:$0xff] }
 0x6ce   : > { %2364 = vmatprep.subr.mxu1 %v2287_v33  ;;  %v2533_v33 = vld [vmem:[#allocation4 + $0x11b8] sm:$0xff] }
 0x6cf   : > { %2365 = vmatpush2.msra.mxu1 %v2286_v34  ;;  %v2532_v34 = vld [vmem:[#allocation4 + $0x11b0] sm:$0xff] }
 0x6d0   : > { %2366 = vmatprep.subr.mxu1 %v2285_v6  ;;  %v2531_v6 = vld [vmem:[#allocation4 + $0x11a8] sm:$0xff] }
 0x6d1   : > { %2367 = vmatpush2.msra.mxu1 %v2284_v35  ;;  %v2530_v35 = vld [vmem:[#allocation4 + $0x11a0] sm:$0xff] }
 0x6d2   : > { %2368 = vmatprep.subr.mxu1 %v2283_v8  ;;  %v2529_v8 = vld [vmem:[#allocation4 + $0x1198] sm:$0xff] }
 0x6d3   : > { %2369 = vmatpush2.msra.mxu1 %v2282_v10  ;;  %v2528_v10 = vld [vmem:[#allocation4 + $0x1190] sm:$0xff] }
 0x6d4   : > { %2370 = vmatprep.subr.mxu1 %v2281_v12  ;;  %v2527_v12 = vld [vmem:[#allocation4 + $0x1188] sm:$0xff] }
 0x6d5   : > { %2371 = vmatpush2.msra.mxu1 %v2280_v36  ;;  %v2526_v36 = vld [vmem:[#allocation4 + $0x1180] sm:$0xff] }
 0x6d6   : > { %2372 = vmatprep.subr.mxu1 %v2279_v38  ;;  %v2525_v38 = vld [vmem:[#allocation4 + $0x1178] sm:$0xff] }
 0x6d7   : > { %2373 = vmatpush2.msra.mxu1 %v2278_v40  ;;  %v2524_v40 = vld [vmem:[#allocation4 + $0x1170] sm:$0xff] }
 0x6d8   : > { %2375 = vmatmul.mubr.f32.vlgmr.msra.gmra.mxu1 %v6477_v4 }
 0x6d9   : > { %2692 = vmatprep.mubr.f32.mxu1 %v6124_v2 }
 0x758   : > { %v2230_v41 = vpop.f32.mrf.mxu1 }
 0x759   : > { %v6534_v43 = vadd.f32 %v2230_v41, %v6508_v25  ;;  %v2509_v25 = vld [vmem:[#allocation4 + $0x10f8] sm:$0xff]  ;;  %v2523_v41 = vld [vmem:[#allocation4 + $0x1168] sm:$0xff] }
 0x75a   : > { %v2232_v45 = vpop.f32.mrf.mxu1 }
 0x75b   : > { %v6537_v46 = vadd.f32 %v2232_v45, %v6511_v27  ;;  %v2507_v27 = vld [vmem:[#allocation4 + $0x10e8] sm:$0xff]  ;;  %v2522_v45 = vld [vmem:[#allocation4 + $0x1160] sm:$0xff] }
 0x75c   : > { %v2236_v16 = vpop.f32.mrf.mxu1 }
 0x75d   : > { %v6540_v47 = vadd.f32 %v2236_v16, %v6514_v29  ;;  %v2506_v29 = vld [vmem:[#allocation4 + $0x10e0] sm:$0xff]  ;;  %v2521_v16 = vld [vmem:[#allocation4 + $0x1158] sm:$0xff] }
 0x75e   : > { %v2238_v19 = vpop.f32.mrf.mxu1 }
 0x75f   : > { %v6543_v48 = vadd.f32 %v2238_v19, %v6517_v31  ;;  %v5150_v31 = vld [vmem:[%s7213_s16 + $0x78] sm:$0xff]  ;;  %v2520_v19 = vld [vmem:[#allocation4 + $0x1150] sm:$0xff] }
 0x798   : > { %v2376_v22 = vpop.f32.mrf.mxu1 }
 0x79a   : > { %v2378_v23 = vpop.f32.mrf.mxu1 }
 0x79b   : > { %5151 = vmatprep.subr.msk.mxu0 %vm912_vm0, %v2378_v23  ;;  %v2518_v23 = vld [vmem:[#allocation4 + $0x1140] sm:$0xff] }
 0x79c   : > { %5152 = vmatpush1.msk.msra.mxu0 %vm912_vm0, %v2376_v22  ;;  %v2519_v22 = vld [vmem:[#allocation4 + $0x1148] sm:$0xff] }
 0x79d   : > { %5153 = vmatmul.mubr.msk.f32.vlgmr.msra.gmra.mxu0 %vm905_vm1, %v5149_v49  ;;  %2542 = vmatprep.subr.mxu0 %v2509_v25  ;;  %v2517_v49 = vld [vmem:[#allocation4 + $0x1138] sm:$0xff]  ;;  %v2516_v25 = vld [vmem:[#allocation4 + $0x1130] sm:$0xff] }
 0x79e   : > { %2543 = vmatpush1.msra.mxu0 %v2508_v50  ;;  %2466 = vmatprep.mubr.f32.mxu0 %v6124_v2  ;;  %v2515_v50 = vld [vmem:[#allocation4 + $0x1128] sm:$0xff] }
 0x79f   : > { %2544 = vmatprep.subr.mxu0 %v2507_v27  ;;  %v2514_v27 = vld [vmem:[#allocation4 + $0x1120] sm:$0xff] }
 0x7a0   : > { %2545 = vmatpush1.msra.mxu0 %v2506_v29  ;;  %v2513_v29 = vld [vmem:[#allocation4 + $0x1118] sm:$0xff] }
 0x7a1   : > { %5154 = vmatmul.mubr.msk.f32.gmra.mxu0 %vm905_vm1, %v5150_v31  ;;  %2546 = vmatprep.subr.mxu0 %v2505_v51  ;;  %v2512_v31 = vld [vmem:[#allocation4 + $0x1110] sm:$0xff]  ;;  %v2511_v51 = vld [vmem:[#allocation4 + $0x1108] sm:$0xff] }
 0x7a2   : > { %2547 = vmatpush1.msra.mxu0 %v2504_v52  ;;  %2606 = vmatprep.mubr.f32.mxu0 %v6369_v63  ;;  %v2491_v63 = vld [vmem:[#allocation4 + $0x1068] sm:$0xff]  ;;  %v2510_v52 = vld [vmem:[#allocation4 + $0x1100] sm:$0xff] }
 0x7a3   : > { %2548 = vmatprep.subr.mxu0 %v2503_v54  ;;  %v2709_v54 = vld [vmem:[%s7168_s3] sm:$0xff] }
 0x7a4   : > { %2549 = vmatpush1.msra.mxu0 %v2502_v57  ;;  %v6125_v57 = vmov 0  }
 0x7a5   : > { %2550 = vmatprep.subr.mxu0 %v2501_v59  ;;  %5917 = vset.pattern.permute.xlu0 %v6125_v57  ;;  %v2710_v59 = vld [vmem:[%s7168_s3 + $0x8] sm:$0xff] }
 0x7a6   : > { %2551 = vmatpush1.msra.mxu0 %v2500_v61  ;;  %5918 = vset.pattern.permute.xlu1 %v6125_v57  ;;  %v2725_v61 = vld [vmem:[%s7169_s4] sm:$0xff]  ;;  %v2764_v57 = vld [vmem:[%s7170_s5 + $0x58] sm:$0xff] }
 0x7a7   : > { %2552 = vmatprep.subr.mxu0 %v2499_v56  ;;  %2713 = vperm.xlu0 %5917, %v2709_v54   ;;  %v4723_v56 = vld [vmem:[%s7173_s8 + $0x8] sm:$0xff]  ;;  %v2780_v54 = vld [vmem:[%s7170_s5 + $0xd8] sm:$0xff] }
 0x7a8   : > { %2553 = vmatpush1.msra.mxu0 %v2498_v62  ;;  %2718 = vperm.xlu1 %5918, %v2710_v59   ;;  %v4722_v62 = vld [vmem:[%s7173_s8] sm:$0xff]  ;;  %v2779_v59 = vld [vmem:[%s7170_s5 + $0xd0] sm:$0xff] }
 0x7a9   : > { %2554 = vmatprep.subr.mxu0 %v2497_v37  ;;  %v4737_v37 = vld [vmem:[%s7174_s9 + $0x8] sm:$0xff] }
 0x7aa   : > { %2555 = vmatpush1.msra.mxu0 %v2496_v0  ;;  %v4736_v0 = vld [vmem:[%s7174_s9] sm:$0xff] }
 0x7ab   : > { %2556 = vmatprep.subr.mxu0 %v2495_v39  ;;  %2729 = vperm.xlu0 %5917, %v2725_v61   ;;  %v5224_v39 = vld [vmem:[%s7170_s5 + $0x2f8] sm:$0xff]  ;;  %v2763_v61 = vld [vmem:[%s7170_s5 + $0x50] sm:$0xff] }
 0x7ac   : > { %2557 = vmatpush1.msra.mxu0 %v2494_v42  ;;  %v5208_v42 = vld [vmem:[%s7170_s5 + $0x278] sm:$0xff] }
 0x7ad   : > { %2558 = vmatprep.subr.mxu0 %v2493_v44  ;;  %v4759_v44 = vld [vmem:[%s7176_s11] sm:$0xff] }
 0x7ae   : > { %2559 = vmatpush1.msra.mxu0 %v2492_v1  ;;  %v4760_v1 = vld [vmem:[%s7176_s11 + $0x8] sm:$0xff] }
 0x7af   : > { %2560 = vmatprep.subr.mxu0 %v2491_v63  ;;  %4731 = vperm.xlu0 %5917, %v4723_v56   ;;  %v5223_v63 = vld [vmem:[%s7170_s5 + $0x2f0] sm:$0xff]  ;;  %v2762_v56 = vld [vmem:[%s7170_s5 + $0x48] sm:$0xff] }
 0x7b0   : > { %2561 = vmatpush1.msra.mxu0 %v2490_v3  ;;  %v5207_v3 = vld [vmem:[%s7170_s5 + $0x270] sm:$0xff] }
 0x7b1   : > { %2562 = vmatprep.subr.mxu0 %v2489_v5  ;;  %v5222_v5 = vld [vmem:[%s7170_s5 + $0x2e8] sm:$0xff] }
 0x7b2   : > { %2563 = vmatpush1.msra.mxu0 %v2488_v7  ;;  %v4761_v7 = vld [vmem:[%s7176_s11 + $0x10] sm:$0xf] }
 0x7b3   : > { %2564 = vmatprep.subr.mxu0 %v2487_v9  ;;  %4745 = vperm.xlu0 %5917, %v4737_v37   ;;  %v5206_v9 = vld [vmem:[%s7170_s5 + $0x268] sm:$0xff]  ;;  %v2761_v37 = vld [vmem:[%s7170_s5 + $0x40] sm:$0xff] }
 0x7b4   : > { %2565 = vmatpush1.msra.mxu0 %v2486_v11  ;;  %v4881_v11 = vld [vmem:[%s7180_s15] sm:$0xff] }
 0x7b5   : > { %2566 = vmatprep.subr.mxu0 %v2485_v13  ;;  %v5221_v13 = vld [vmem:[%s7170_s5 + $0x2e0] sm:$0xff] }
 0x7b6   : > { %2567 = vmatpush1.msra.mxu0 %v2484_v14  ;;  %v5205_v14 = vld [vmem:[%s7170_s5 + $0x260] sm:$0xff] }
 0x7b7   : > { %2568 = vmatprep.subr.mxu0 %v2483_v15  ;;  %4764 = vperm.xlu0 %5917, %v4759_v44   ;;  %v5220_v15 = vld [vmem:[%s7170_s5 + $0x2d8] sm:$0xff]  ;;  %v2759_v44 = vld [vmem:[%s7170_s5 + $0x30] sm:$0xff] }
 0x7b8   : > { %2569 = vmatpush1.msra.mxu0 %v2482_v53  ;;  %v4882_v53 = vld [vmem:[%s7180_s15 + $0x8] sm:$0xff] }
 0x7b9   : > { %2570 = vmatprep.subr.mxu0 %v2481_v17  ;;  %v5204_v17 = vld [vmem:[%s7170_s5 + $0x258] sm:$0xff] }
 0x7ba   : > { %2571 = vmatpush1.msra.mxu0 %v2480_v55  ;;  %v4883_v55 = vld [vmem:[%s7180_s15 + $0x10] sm:$0xf] }
 0x7bb   : > { %2572 = vmatprep.subr.mxu0 %v2479_v58  ;;  %4774 = vperm.xlu0 %5917, %v4761_v7   ;;  %v5219_v58 = vld [vmem:[%s7170_s5 + $0x2d0] sm:$0xff]  ;;  %v2773_v7 = vld [vmem:[%s7170_s5 + $0xa0] sm:$0xff] }
 0x7bc   : > { %2573 = vmatpush1.msra.mxu0 %v2478_v60  ;;  %v5203_v60 = vld [vmem:[%s7170_s5 + $0x250] sm:$0xff] }
 0x7bd   : > { %2574 = vmatprep.subr.mxu0 %v2541_v18  ;;  %v5218_v18 = vld [vmem:[%s7170_s5 + $0x2c8] sm:$0xff] }
 0x7be   : > { %2575 = vmatpush2.msra.mxu0 %v2540_v20  ;;  %v4908_v20 = vld [vmem:[%s7177_s12] sm:$0xff] }
 0x7bf   : > { %2576 = vmatprep.subr.mxu0 %v2539_v21  ;;  %4891 = vperm.xlu0 %5917, %v4882_v53   ;;  %v5202_v21 = vld [vmem:[%s7170_s5 + $0x248] sm:$0xff]  ;;  %v2756_v53 = vld [vmem:[%s7170_s5 + $0x18] sm:$0xff] }
 0x7c0   : > { %2577 = vmatpush2.msra.mxu0 %v2538_v24  ;;  %v4909_v24 = vld [vmem:[%s7177_s12 + $0x8] sm:$0xff] }
 0x7c1   : > { %2578 = vmatprep.subr.mxu0 %v2537_v26  ;;  %v5217_v26 = vld [vmem:[%s7170_s5 + $0x2c0] sm:$0xff] }
 0x7c2   : > { %2579 = vmatpush2.msra.mxu0 %v2536_v28  ;;  %v5201_v28 = vld [vmem:[%s7170_s5 + $0x240] sm:$0xff] }
 0x7c3   : > { %2580 = vmatprep.subr.mxu0 %v2535_v30  ;;  %4913 = vperm.xlu0 %5917, %v4908_v20   ;;  %v5216_v30 = vld [vmem:[%s7170_s5 + $0x2b8] sm:$0xff]  ;;  %v2770_v20 = vld [vmem:[%s7170_s5 + $0x88] sm:$0xff] }
 0x7c4   : > { %2581 = vmatpush2.msra.mxu0 %v2534_v32  ;;  %v4910_v32 = vld [vmem:[%s7177_s12 + $0x10] sm:$0xf] }
 0x7c5   : > { %2582 = vmatprep.subr.mxu0 %v2533_v33  ;;  %v5200_v33 = vld [vmem:[%s7170_s5 + $0x238] sm:$0xff] }
 0x7c6   : > { %2583 = vmatpush2.msra.mxu0 %v2532_v34  ;;  %v4929_v34 = vld [vmem:[%s7178_s13] sm:$0xff] }
 0x7c7   : > { %2584 = vmatprep.subr.mxu0 %v2531_v6  ;;  %v5215_v6 = vld [vmem:[%s7170_s5 + $0x2b0] sm:$0xff]  ;;  %4923 = vperm.xlu0 %5917, %v4910_v32   ;;  %v2753_v32 = vld [vmem:[%s7170_s5] sm:$0xff] }
 0x7c8   : > { %2585 = vmatpush2.msra.mxu0 %v2530_v35  ;;  %v4930_v35 = vld [vmem:[%s7178_s13 + $0x8] sm:$0xff] }
 0x7c9   : > { %2586 = vmatprep.subr.mxu0 %v2529_v8  ;;  %v4931_v8 = vld [vmem:[%s7178_s13 + $0x10] sm:$0xf] }
 0x7ca   : > { %2587 = vmatpush2.msra.mxu0 %v2528_v10  ;;  %v4953_v10 = vld [vmem:[%s7179_s14] sm:$0xff] }
 0x7cb   : > { %2588 = vmatprep.subr.mxu0 %v2527_v12  ;;  %4939 = vperm.xlu0 %5917, %v4930_v35   ;;  %v4954_v12 = vld [vmem:[%s7179_s14 + $0x8] sm:$0xff] }
 0x7cc   : > { %2589 = vmatpush2.msra.mxu0 %v2526_v36  ;;  %v4955_v36 = vld [vmem:[%s7179_s14 + $0x10] sm:$0xf] }
 0x7cd   : > { %2590 = vmatprep.subr.mxu0 %v2525_v38 }
 0x7ce   : > { %2591 = vmatpush2.msra.mxu0 %v2524_v40 }
 0x7cf   : > { %2592 = vmatprep.subr.mxu0 %v2523_v41  ;;  %4958 = vperm.xlu0 %5917, %v4953_v10  }
 0x7d0   : > { %2593 = vmatpush2.msra.mxu0 %v2522_v45 }
 0x7d1   : > { %2594 = vmatprep.subr.mxu0 %v2521_v16 }
 0x7d2   : > { %2595 = vmatpush2.msra.mxu0 %v2520_v19 }
 0x7d3   : > { %2596 = vmatprep.subr.mxu0 %v2519_v22  ;;  %4968 = vperm.xlu0 %5917, %v4955_v36  }
 0x7d4   : > { %2597 = vmatpush2.msra.mxu0 %v2518_v23 }
 0x7d5   : > { %2598 = vmatprep.subr.mxu0 %v2517_v49 }
 0x7d6   : > { %2599 = vmatpush2.msra.mxu0 %v2516_v25 }
 0x7d7   : > { %2600 = vmatprep.subr.mxu0 %v2515_v50  ;;  %v5155_v50 = vld [vmem:[%s7213_s16 + $0x80] sm:$0xff] }
 0x7d8   : > { %2601 = vmatpush2.msra.mxu0 %v2514_v27  ;;  %v5156_v27 = vld [vmem:[%s7213_s16 + $0x88] sm:$0xff] }
 0x7d9   : > { %2602 = vmatprep.subr.mxu0 %v2513_v29  ;;  %v2782_v29 = vld [vmem:[%s7170_s5 + $0xe8] sm:$0xff] }
 0x7da   : > { %2603 = vmatpush2.msra.mxu0 %v2512_v31  ;;  %v2766_v31 = vld [vmem:[%s7170_s5 + $0x68] sm:$0xff] }
 0x7db   : > { %2604 = vmatprep.subr.mxu0 %v2511_v51  ;;  %v2781_v51 = vld [vmem:[%s7170_s5 + $0xe0] sm:$0xff] }
 0x7dc   : > { %2605 = vmatpush2.msra.mxu0 %v2510_v52  ;;  %v2765_v52 = vld [vmem:[%s7170_s5 + $0x60] sm:$0xff] }
 0x7dd   : > { %2607 = vmatmul.mubr.f32.vlgmr.msra.gmra.mxu0 %v6477_v4  ;;  %v2726_v4 = vld [vmem:[%s7169_s4 + $0x8] sm:$0xff]  ;;  %5375 = vmatprep.subr.mxu0 %v5224_v39  ;;  %v2760_v39 = vld [vmem:[%s7170_s5 + $0x38] sm:$0xff] }
 0x7de   : > { %2734 = vperm.xlu1 %5918, %v2726_v4   ;;  %5376 = vmatpush3.msra.mxu0 %v5208_v42  ;;  %v2778_v4 = vld [vmem:[%s7170_s5 + $0xc8] sm:$0xff]  ;;  %v2775_v42 = vld [vmem:[%s7170_s5 + $0xb0] sm:$0xff] }
 0x7df   : > { %5377 = vmatprep.subr.mxu0 %v5223_v63  ;;  %v5199_v63 = vld [vmem:[%s7170_s5 + $0x230] sm:$0xff] }
 0x7e0   : > { %5378 = vmatpush3.msra.mxu0 %v5207_v3  ;;  %v2758_v3 = vld [vmem:[%s7170_s5 + $0x28] sm:$0xff] }
 0x7e1   : > { %5379 = vmatprep.subr.mxu0 %v5222_v5  ;;  %v5214_v5 = vld [vmem:[%s7170_s5 + $0x2a8] sm:$0xff] }
 0x7e2   : > { %4726 = vperm.xlu1 %5918, %v4722_v62   ;;  %5380 = vmatpush3.msra.mxu0 %v5206_v9  ;;  %v2777_v62 = vld [vmem:[%s7170_s5 + $0xc0] sm:$0xff]  ;;  %v5198_v9 = vld [vmem:[%s7170_s5 + $0x228] sm:$0xff] }
 0x7e3   : > { %5381 = vmatprep.subr.mxu0 %v5221_v13  ;;  %v5213_v13 = vld [vmem:[%s7170_s5 + $0x2a0] sm:$0xff] }
 0x7e4   : > { %5382 = vmatpush3.msra.mxu0 %v5205_v14  ;;  %v2772_v14 = vld [vmem:[%s7170_s5 + $0x98] sm:$0xff] }
 0x7e5   : > { %5383 = vmatprep.subr.mxu0 %v5220_v15  ;;  %v5197_v15 = vld [vmem:[%s7170_s5 + $0x220] sm:$0xff] }
 0x7e6   : > { %4740 = vperm.xlu1 %5918, %v4736_v0   ;;  %5384 = vmatpush3.msra.mxu0 %v5204_v17  ;;  %v2776_v0 = vld [vmem:[%s7170_s5 + $0xb8] sm:$0xff] }
 0x7e7   : > { %5385 = vmatprep.subr.mxu0 %v5219_v58  ;;  %v5212_v17 = vld [vmem:[%s7170_s5 + $0x298] sm:$0xff] }
 0x7e8   : > { %5386 = vmatpush3.msra.mxu0 %v5203_v60  ;;  %v5196_v58 = vld [vmem:[%s7170_s5 + $0x218] sm:$0xff]  ;;  %v2755_v60 = vld [vmem:[%s7170_s5 + $0x10] sm:$0xff] }
 0x7e9   : > { %5387 = vmatprep.subr.mxu0 %v5218_v18  ;;  %v5211_v18 = vld [vmem:[%s7170_s5 + $0x290] sm:$0xff] }
 0x7ea   : > { %4769 = vperm.xlu1 %5918, %v4760_v1   ;;  %5388 = vmatpush3.msra.mxu0 %v5202_v21  ;;  %v2774_v1 = vld [vmem:[%s7170_s5 + $0xa8] sm:$0xff]  ;;  %v5195_v21 = vld [vmem:[%s7170_s5 + $0x210] sm:$0xff] }
 0x7eb   : > { %5389 = vmatprep.subr.mxu0 %v5217_v26  ;;  %v5210_v26 = vld [vmem:[%s7170_s5 + $0x288] sm:$0xff] }
 0x7ec   : > { %5390 = vmatpush3.msra.mxu0 %v5201_v28  ;;  %v2769_v28 = vld [vmem:[%s7170_s5 + $0x80] sm:$0xff] }
 0x7ed   : > { %5391 = vmatprep.subr.mxu0 %v5216_v30  ;;  %v5194_v30 = vld [vmem:[%s7170_s5 + $0x208] sm:$0xff] }
 0x7ee   : > { %4886 = vperm.xlu1 %5918, %v4881_v11   ;;  %5392 = vmatpush3.msra.mxu0 %v5200_v33  ;;  %v2757_v11 = vld [vmem:[%s7170_s5 + $0x20] sm:$0xff] }
 0x7ef   : > { %5393 = vmatprep.subr.mxu0 %v5215_v6  ;;  %v5209_v33 = vld [vmem:[%s7170_s5 + $0x280] sm:$0xff] }
 0x7f0   : > { %5394 = vmatpush3.msra.mxu0 %v5199_v63  ;;  %v5193_v6 = vld [vmem:[%s7170_s5 + $0x200] sm:$0xff]  ;;  %v5171_v63 = vld [vmem:[%s7170_s5 + $0x150] sm:$0xff] }
 0x7f1   : > { %5395 = vmatprep.subr.mxu0 %v5214_v5  ;;  %v5170_v5 = vld [vmem:[%s7170_s5 + $0x148] sm:$0xff] }
 0x7f2   : > { %4896 = vperm.xlu1 %5918, %v4883_v55   ;;  %5396 = vmatpush3.msra.mxu0 %v5198_v9  ;;  %v2771_v55 = vld [vmem:[%s7170_s5 + $0x90] sm:$0xff]  ;;  %v5169_v9 = vld [vmem:[%s7170_s5 + $0x140] sm:$0xff] }
 0x7f3   : > { %5397 = vmatprep.subr.mxu0 %v5213_v13  ;;  %v5168_v13 = vld [vmem:[%s7170_s5 + $0x138] sm:$0xff] }
 0x7f4   : > { %5398 = vmatpush3.msra.mxu0 %v5197_v15  ;;  %v5167_v15 = vld [vmem:[%s7170_s5 + $0x130] sm:$0xff] }
 0x7f5   : > { %5399 = vmatprep.subr.mxu0 %v5212_v17  ;;  %v5166_v17 = vld [vmem:[%s7170_s5 + $0x128] sm:$0xff] }
 0x7f6   : > { %4918 = vperm.xlu1 %5918, %v4909_v24   ;;  %5400 = vmatpush3.msra.mxu0 %v5196_v58  ;;  %v2754_v24 = vld [vmem:[%s7170_s5 + $0x8] sm:$0xff]  ;;  %v5165_v58 = vld [vmem:[%s7170_s5 + $0x120] sm:$0xff] }
 0x7f7   : > { %5401 = vmatprep.subr.mxu0 %v5211_v18  ;;  %v5164_v18 = vld [vmem:[%s7170_s5 + $0x118] sm:$0xff] }
 0x7f8   : > { %5402 = vmatpush3.msra.mxu0 %v5195_v21  ;;  %v5163_v21 = vld [vmem:[%s7170_s5 + $0x110] sm:$0xff] }
 0x7f9   : > { %5403 = vmatprep.subr.mxu0 %v5210_v26  ;;  %v5162_v26 = vld [vmem:[%s7170_s5 + $0x108] sm:$0xff] }
 0x7fa   : > { %4934 = vperm.xlu1 %5918, %v4929_v34   ;;  %5404 = vmatpush3.msra.mxu0 %v5194_v30  ;;  %v5192_v34 = vld [vmem:[%s7170_s5 + $0x1f8] sm:$0xff]  ;;  %v5161_v30 = vld [vmem:[%s7170_s5 + $0x100] sm:$0xff] }
 0x7fb   : > { %5405 = vmatprep.subr.mxu0 %v5209_v33  ;;  %v5240_v33 = vld [vmem:[%s7170_s5 + $0x378] sm:$0xff] }
 0x7fc   : > { %5406 = vmatpush3.msra.mxu0 %v5193_v6  ;;  %v5239_v6 = vld [vmem:[%s7170_s5 + $0x370] sm:$0xff] }
 0x7fe   : > { %4944 = vperm.xlu1 %5918, %v4931_v8  }
 0x802   : > { %4963 = vperm.xlu1 %5918, %v4954_v12  }
 0x822   : > { %v2714_v35 = vpop.permute.xlu0 %2713 }
 0x823   : > { %v2719_v12 = vpop.permute.xlu1 %2718 }
 0x85d   : > { %v2462_v38 = vpop.f32.mrf.mxu0 }
 0x85e   : > { %v6685_v40 = vadd.f32 %v2462_v38, %v6534_v43  ;;  %v2784_v43 = vld [vmem:[%s7170_s5 + $0xf8] sm:$0xff] }
 0x85f   : > { %v2464_v41 = vpop.f32.mrf.mxu0 }
 0x860   : > { %v6688_v45 = vadd.f32 %v2464_v41, %v6537_v46  ;;  %v2768_v46 = vld [vmem:[%s7170_s5 + $0x78] sm:$0xff] }
 0x861   : > { %v2468_v16 = vpop.f32.mrf.mxu0 }
 0x862   : > { %v6691_v19 = vadd.f32 %v2468_v16, %v6540_v47  ;;  %v2783_v47 = vld [vmem:[%s7170_s5 + $0xf0] sm:$0xff]  ;;  %v2730_v16 = vpop.permute.xlu0 %2729 }
 0x863   : > { %v2470_v22 = vpop.f32.mrf.mxu0 }
 0x864   : > { %v6694_v23 = vadd.f32 %v2470_v22, %v6543_v48  ;;  %v2767_v48 = vld [vmem:[%s7170_s5 + $0x70] sm:$0xff] }
 0x89d   : > { %v2608_v49 = vpop.f32.mrf.mxu0 }
 0x89f   : > { %v2610_v25 = vpop.f32.mrf.mxu0 }
 0x8a0   : > { %5157 = vmatprep.subr.msk.mxu1 %vm912_vm0, %v2610_v25 }
 0x8a1   : > { %5158 = vmatpush1.msk.msra.mxu1 %vm912_vm0, %v2608_v49 }
 0x8a2   : > { %5159 = vmatmul.mubr.msk.f32.vlgmr.msra.gmra.mxu1 %vm905_vm1, %v5155_v50  ;;  %5299 = vmatprep.subr.mxu1 %v2784_v43 }
 0x8a3   : > { %2698 = vmatprep.mubr.f32.mxu1 %v6124_v2  ;;  %5300 = vmatpush3.msra.mxu1 %v2768_v46 }
 0x8a4   : > { %5301 = vmatprep.subr.mxu1 %v2783_v47 }
 0x8a5   : > { %5302 = vmatpush3.msra.mxu1 %v2767_v48 }
 0x8a6   : > { %5160 = vmatmul.mubr.msk.f32.gmra.mxu1 %vm905_vm1, %v5156_v27  ;;  %5303 = vmatprep.subr.mxu1 %v2782_v29  ;;  %v2735_v27 = vpop.permute.xlu1 %2734 }
 0x8a7   : > { %5304 = vmatpush3.msra.mxu1 %v2766_v31 }
 0x8a8   : > { %5305 = vmatprep.subr.mxu1 %v2781_v51 }
 0x8a9   : > { %5306 = vmatpush3.msra.mxu1 %v2765_v52 }
 0x8aa   : > { %5307 = vmatprep.subr.mxu1 %v2780_v54  ;;  %v5176_v54 = vld [vmem:[%s7170_s5 + $0x178] sm:$0xff] }
 0x8ab   : > { %5308 = vmatpush3.msra.mxu1 %v2764_v57  ;;  %v5175_v57 = vld [vmem:[%s7170_s5 + $0x170] sm:$0xff] }
 0x8ac   : > { %5309 = vmatprep.subr.mxu1 %v2779_v59 }
 0x8ad   : > { %5310 = vmatpush3.msra.mxu1 %v2763_v61 }
 0x8ae   : > { %5311 = vmatprep.subr.mxu1 %v2778_v4  ;;  %v5190_v4 = vld [vmem:[%s7170_s5 + $0x1e8] sm:$0xff] }
 0x8af   : > { %5312 = vmatpush3.msra.mxu1 %v2762_v56 }
 0x8b0   : > { %5313 = vmatprep.subr.mxu1 %v2777_v62  ;;  %v5174_v62 = vld [vmem:[%s7170_s5 + $0x168] sm:$0xff] }
 0x8b1   : > { %5314 = vmatpush3.msra.mxu1 %v2761_v37 }
 0x8b2   : > { %5315 = vmatprep.subr.mxu1 %v2776_v0  ;;  %v5189_v0 = vld [vmem:[%s7170_s5 + $0x1e0] sm:$0xff] }
 0x8b3   : > { %5316 = vmatpush3.msra.mxu1 %v2760_v39  ;;  %v5173_v39 = vld [vmem:[%s7170_s5 + $0x160] sm:$0xff] }
 0x8b4   : > { %5317 = vmatprep.subr.mxu1 %v2775_v42  ;;  %v5188_v42 = vld [vmem:[%s7170_s5 + $0x1d8] sm:$0xff] }
 0x8b5   : > { %5318 = vmatpush3.msra.mxu1 %v2759_v44  ;;  %v5172_v44 = vld [vmem:[%s7170_s5 + $0x158] sm:$0xff] }
 0x8b6   : > { %5319 = vmatprep.subr.mxu1 %v2774_v1  ;;  %v5187_v1 = vld [vmem:[%s7170_s5 + $0x1d0] sm:$0xff] }
 0x8b7   : > { %5320 = vmatpush3.msra.mxu1 %v2758_v3  ;;  %v5186_v3 = vld [vmem:[%s7170_s5 + $0x1c8] sm:$0xff] }
 0x8b8   : > { %5321 = vmatprep.subr.mxu1 %v2773_v7  ;;  %v5185_v7 = vld [vmem:[%s7170_s5 + $0x1c0] sm:$0xff] }
 0x8b9   : > { %5322 = vmatpush3.msra.mxu1 %v2757_v11  ;;  %v5184_v11 = vld [vmem:[%s7170_s5 + $0x1b8] sm:$0xff] }
 0x8ba   : > { %5323 = vmatprep.subr.mxu1 %v2772_v14  ;;  %v5183_v14 = vld [vmem:[%s7170_s5 + $0x1b0] sm:$0xff] }
 0x8bb   : > { %5324 = vmatpush3.msra.mxu1 %v2756_v53  ;;  %v5182_v53 = vld [vmem:[%s7170_s5 + $0x1a8] sm:$0xff] }
 0x8bc   : > { %5325 = vmatprep.subr.mxu1 %v2771_v55  ;;  %v5181_v55 = vld [vmem:[%s7170_s5 + $0x1a0] sm:$0xff] }
 0x8bd   : > { %5326 = vmatpush3.msra.mxu1 %v2755_v60  ;;  %v5180_v60 = vld [vmem:[%s7170_s5 + $0x198] sm:$0xff] }
 0x8be   : > { %5327 = vmatprep.subr.mxu1 %v2770_v20  ;;  %v5179_v20 = vld [vmem:[%s7170_s5 + $0x190] sm:$0xff] }
 0x8bf   : > { %5328 = vmatpush3.msra.mxu1 %v2754_v24  ;;  %v5178_v24 = vld [vmem:[%s7170_s5 + $0x188] sm:$0xff] }
 0x8c0   : > { %5329 = vmatprep.subr.mxu1 %v2769_v28  ;;  %v5177_v28 = vld [vmem:[%s7170_s5 + $0x180] sm:$0xff] }
 0x8c1   : > { %5330 = vmatpush3.msra.mxu1 %v2753_v32  ;;  %v5256_v32 = vld [vmem:[%s7170_s5 + $0x3f8] sm:$0xff] }
 0x8c2   : > { %5337 = vmatprep.subr.mxu1 %v5192_v34  ;;  %v5255_v34 = vld [vmem:[%s7170_s5 + $0x3f0] sm:$0xff] }
 0x962   : > { %v2694_v8 = vpop.f32.mrf.mxu1 }
 0x963   : > { %v2705_v10 = vadd.f32 %v2694_v8, %v6685_v40  ;;  %v5238_v8 = vld [vmem:[%s7170_s5 + $0x368] sm:$0xff] }
 0x964   : > { %v2696_v36 = vpop.f32.mrf.mxu1 }
 0x965   : > { %v2721_v38 = vmul.f32 %v2714_v35, %v2705_v10  ;;  %v2706_v41 = vadd.f32 %v2696_v36, %v6688_v45  ;;  %v5253_v10 = vld [vmem:[%s7170_s5 + $0x3e0] sm:$0xff]  ;;  %v5252_v36 = vld [vmem:[%s7170_s5 + $0x3d8] sm:$0xff] }
 0x966   : > { %v2700_v22 = vpop.f32.mrf.mxu1 }
 0x967   : > { %v2737_v49 = vadd.f32 %v2730_v16, %v2721_v38  ;;  %v2722_v25 = vmul.f32 %v2714_v35, %v2706_v41  ;;  %v2707_v50 = vadd.f32 %v2700_v22, %v6691_v19  ;;  %v5254_v35 = vld [vmem:[%s7170_s5 + $0x3e8] sm:$0xff]  ;;  %v5236_v38 = vld [vmem:[%s7170_s5 + $0x358] sm:$0xff]  ;;  %v5251_v41 = vld [vmem:[%s7170_s5 + $0x3d0] sm:$0xff] }
 0x968   : > { %v2702_v43 = vpop.f32.mrf.mxu1  ;;  %v5250_v22 = vld [vmem:[%s7170_s5 + $0x3c8] sm:$0xff] }
 0x969   : > { %v2738_v46 = vadd.f32 %v2730_v16, %v2722_v25  ;;  %v2723_v47 = vmul.f32 %v2719_v12, %v2707_v50  ;;  %v2708_v48 = vadd.f32 %v2702_v43, %v6694_v23  ;;  %v2745_v29 = vmul.f32 0.1, %v2737_v49  ;;  %v5191_v23 = vld [vmem:[%s7170_s5 + $0x1f0] sm:$0xff]  ;;  %v5249_v25 = vld [vmem:[%s7170_s5 + $0x3c0] sm:$0xff]  ;;  %v5248_v43 = vld [vmem:[%s7170_s5 + $0x3b8] sm:$0xff] }
 0x96a   : > { %vm2741_vm2 = vcmp.gt.f32.partialorder %v2737_v49, 0.0  ;;  %v5235_v16 = vld [vmem:[%s7170_s5 + $0x350] sm:$0xff]  ;;  %v5233_v50 = vld [vmem:[%s7170_s5 + $0x340] sm:$0xff] }
 0x96b   : > { %v2739_v40 = vadd.f32 %v2735_v27, %v2723_v47  ;;  %v2724_v31 = vmul.f32 %v2719_v12, %v2708_v48  ;;  %vm2742_vm3 = vcmp.gt.f32.partialorder %v2738_v46, 0.0  ;;  %v2746_v51 = vmul.f32 0.1, %v2738_v46  ;;  %v5237_v12 = vld [vmem:[%s7170_s5 + $0x360] sm:$0xff]  ;;  %v5247_v47 = vld [vmem:[%s7170_s5 + $0x3b0] sm:$0xff] }
 0x96c   : > { %v6856_v19 = vsel %vm2741_vm2, %v2737_v49, %v2745_v29  ;;  %v5234_v49 = vld [vmem:[%s7170_s5 + $0x348] sm:$0xff]  ;;  %v5231_v48 = vld [vmem:[%s7170_s5 + $0x330] sm:$0xff] }
 0x96d   : > { %v2740_v52 = vadd.f32 %v2735_v27, %v2724_v31  ;;  %v6849_v45 = vsel %vm2742_vm3, %v2738_v46, %v2746_v51  ;;  %v2747_v61 = vmul.f32 0.1, %v2739_v40  ;;  %vm2743_vm5 = vcmp.gt.f32.partialorder %v2739_v40, 0.0  ;;  %v5232_v46 = vld [vmem:[%s7170_s5 + $0x338] sm:$0xff]  ;;  %v5246_v27 = vld [vmem:[%s7170_s5 + $0x3a8] sm:$0xff]  ;;  %v5229_v31 = vld [vmem:[%s7170_s5 + $0x320] sm:$0xff] }
 0x96e   : > { %2849 = vmatprep.mubr.f32.mxu1 %v6849_v45  ;;  %3067 = vmatprep.mubr.f32.mxu0 %v6849_v45  ;;  %v5230_v29 = vld [vmem:[%s7170_s5 + $0x328] sm:$0xff]  ;;  %v5244_v51 = vld [vmem:[%s7170_s5 + $0x398] sm:$0xff] }
 0x96f   : > { %2850 = vmatmul.mubr.f32.vlgmr.msra.gmra.mxu1 %v6856_v19  ;;  %3068 = vmatmul.mubr.f32.vlgmr.msra.gmra.mxu0 %v6856_v19  ;;  %vm2744_vm4 = vcmp.gt.f32.partialorder %v2740_v52, 0.0  ;;  %v2748_v59 = vmul.f32 0.1, %v2740_v52  ;;  %v6876_v37 = vsel %vm2743_vm5, %v2739_v40, %v2747_v61  ;;  %v5245_v40 = vld [vmem:[%s7170_s5 + $0x3a0] sm:$0xff] }
 0x970   : > { %5338 = vmatpush3.msra.mxu1 %v5176_v54  ;;  %v5227_v54 = vld [vmem:[%s7170_s5 + $0x310] sm:$0xff]  ;;  %v5225_v61 = vld [vmem:[%s7170_s5 + $0x300] sm:$0xff] }
 0x971   : > { %5339 = vmatprep.subr.mxu1 %v5191_v23  ;;  %v6869_v56 = vsel %vm2744_vm4, %v2740_v52, %v2748_v59  ;;  %v5228_v52 = vld [vmem:[%s7170_s5 + $0x318] sm:$0xff]  ;;  %v5242_v23 = vld [vmem:[%s7170_s5 + $0x388] sm:$0xff]  ;;  %v5241_v59 = vld [vmem:[%s7170_s5 + $0x380] sm:$0xff] }
 0x972   : > { %5340 = vmatpush3.msra.mxu1 %v5175_v57  ;;  %2854 = vmatprep.mubr.f32.mxu1 %v6869_v56  ;;  %v5226_v57 = vld [vmem:[%s7170_s5 + $0x308] sm:$0xff] }
 0x973   : > { %5341 = vmatprep.subr.mxu1 %v5190_v4  ;;  %3072 = vmatprep.mubr.f32.mxu0 %v6869_v56  ;;  %v3197_v4 = vld [vmem:[#allocation7 + $0x38] sm:$0xff] }
 0x974   : > { %2855 = vmatmul.mubr.f32.gmra.mxu1 %v6876_v37  ;;  %3073 = vmatmul.mubr.f32.gmra.mxu0 %v6876_v37 }
 0x975   : > { %5342 = vmatpush3.msra.mxu1 %v5174_v62  ;;  %2957 = vmatprep.mubr.f32.mxu1 %v6849_v45  ;;  %v3290_v62 = vld [vmem:[#allocation7 + $0x78] sm:$0xff] }
 0x976   : > { %5343 = vmatprep.subr.mxu1 %v5189_v0  ;;  %v3196_v0 = vld [vmem:[#allocation7 + $0x30] sm:$0xff]  ;;  %5582 = vmatprep.subr.mxu0 %v3197_v4 }
 0x977   : > { %5344 = vmatpush3.msra.mxu1 %v5173_v39  ;;  %v3289_v39 = vld [vmem:[#allocation7 + $0x70] sm:$0xff]  ;;  %5583 = vmatpush3.msra.mxu0 %v3197_v4 }
 0x978   : > { %5345 = vmatprep.subr.mxu1 %v5188_v42  ;;  %v3195_v42 = vld [vmem:[#allocation7 + $0x28] sm:$0xff]  ;;  %5584 = vmatprep.subr.mxu0 %v3196_v0 }
 0x979   : > { %5346 = vmatpush3.msra.mxu1 %v5172_v44  ;;  %v3288_v44 = vld [vmem:[#allocation7 + $0x68] sm:$0xff]  ;;  %5585 = vmatpush3.msra.mxu0 %v3196_v0 }
 0x97a   : > { %5347 = vmatprep.subr.mxu1 %v5187_v1  ;;  %5586 = vmatprep.subr.mxu0 %v3195_v42  ;;  %v3286_v1 = vld [vmem:[#allocation7 + $0x58] sm:$0xff] }
 0x97b   : > { %5348 = vmatpush3.msra.mxu1 %v5171_v63  ;;  %5587 = vmatpush3.msra.mxu0 %v3195_v42  ;;  %v3192_v63 = vld [vmem:[#allocation7 + $0x10] sm:$0xff] }
 0x97c   : > { %5349 = vmatprep.subr.mxu1 %v5186_v3  ;;  %v3285_v3 = vld [vmem:[#allocation7 + $0x50] sm:$0xff] }
 0x97d   : > { %5350 = vmatpush3.msra.mxu1 %v5170_v5  ;;  %v3191_v5 = vld [vmem:[#allocation7 + $0x8] sm:$0xff] }
 0x97e   : > { %5351 = vmatprep.subr.mxu1 %v5185_v7  ;;  %v3284_v7 = vld [vmem:[#allocation7 + $0x48] sm:$0xff] }
 0x97f   : > { %5352 = vmatpush3.msra.mxu1 %v5169_v9  ;;  %v3190_v9 = vld [vmem:[#allocation7] sm:$0xff] }
 0x980   : > { %5353 = vmatprep.subr.mxu1 %v5184_v11  ;;  %v3283_v11 = vld [vmem:[#allocation7 + $0x40] sm:$0xff] }
 0x981   : > { %5354 = vmatpush3.msra.mxu1 %v5168_v13 }
 0x982   : > { %5355 = vmatprep.subr.mxu1 %v5183_v14 }
 0x983   : > { %5356 = vmatpush3.msra.mxu1 %v5167_v15 }
 0x984   : > { %5357 = vmatprep.subr.mxu1 %v5182_v53 }
 0x985   : > { %5358 = vmatpush3.msra.mxu1 %v5166_v17 }
 0x986   : > { %5359 = vmatprep.subr.mxu1 %v5181_v55 }
 0x987   : > { %5360 = vmatpush3.msra.mxu1 %v5165_v58 }
 0x988   : > { %5361 = vmatprep.subr.mxu1 %v5180_v60 }
 0x989   : > { %5362 = vmatpush3.msra.mxu1 %v5164_v18 }
 0x98a   : > { %5363 = vmatprep.subr.mxu1 %v5179_v20 }
 0x98b   : > { %5364 = vmatpush3.msra.mxu1 %v5163_v21 }
 0x98c   : > { %5365 = vmatprep.subr.mxu1 %v5178_v24 }
 0x98d   : > { %5366 = vmatpush3.msra.mxu1 %v5162_v26 }
 0x98e   : > { %5367 = vmatprep.subr.mxu1 %v5177_v28 }
 0x98f   : > { %5368 = vmatpush3.msra.mxu1 %v5161_v30 }
 0x990   : > { %2958 = vmatmul.mubr.f32.vlgmr.msra.gmra.mxu1 %v6856_v19  ;;  %5413 = vmatprep.subr.mxu1 %v5256_v32 }
 0x991   : > { %2962 = vmatprep.mubr.f32.mxu1 %v6869_v56  ;;  %5414 = vmatpush3.msra.mxu1 %v5240_v33 }
 0x992   : > { %5415 = vmatprep.subr.mxu1 %v5255_v34 }
 0x993   : > { %5416 = vmatpush3.msra.mxu1 %v5239_v6 }
 0x994   : > { %2963 = vmatmul.mubr.f32.gmra.mxu1 %v6876_v37  ;;  %5417 = vmatprep.subr.mxu1 %v5254_v35 }
 0x995   : > { %5418 = vmatpush3.msra.mxu1 %v5238_v8  ;;  %3177 = vmatprep.mubr.f32.mxu1 %v6849_v45  ;;  %v5243_v45 = vld [vmem:[%s7170_s5 + $0x390] sm:$0xff] }
 0x996   : > { %5419 = vmatprep.subr.mxu1 %v5253_v10 }
 0x997   : > { %5420 = vmatpush3.msra.mxu1 %v5237_v12 }
 0x998   : > { %5421 = vmatprep.subr.mxu1 %v5252_v36 }
 0x999   : > { %5422 = vmatpush3.msra.mxu1 %v5236_v38 }
 0x99a   : > { %5423 = vmatprep.subr.mxu1 %v5251_v41 }
 0x99b   : > { %5424 = vmatpush3.msra.mxu1 %v5235_v16 }
 0x99c   : > { %5425 = vmatprep.subr.mxu1 %v5250_v22 }
 0x99d   : > { %5426 = vmatpush3.msra.mxu1 %v5234_v49 }
 0x99e   : > { %5427 = vmatprep.subr.mxu1 %v5249_v25 }
 0x99f   : > { %5428 = vmatpush3.msra.mxu1 %v5233_v50  ;;  %v3367_v50 = vld [vmem:[#allocation6 + $0x10] sm:$0xff] }
 0x9a0   : > { %5429 = vmatprep.subr.mxu1 %v5248_v43 }
 0x9a1   : > { %5430 = vmatpush3.msra.mxu1 %v5232_v46 }
 0x9a2   : > { %5431 = vmatprep.subr.mxu1 %v5247_v47 }
 0x9a3   : > { %5432 = vmatpush3.msra.mxu1 %v5231_v48  ;;  %v3368_v48 = vld [vmem:[#allocation6 + $0x18] sm:$0xff] }
 0x9a4   : > { %5433 = vmatprep.subr.mxu1 %v5246_v27  ;;  %v3280_v27 = vld [vmem:[#allocation6] sm:$0xff] }
 0x9a5   : > { %5434 = vmatpush3.msra.mxu1 %v5230_v29 }
 0x9a6   : > { %5435 = vmatprep.subr.mxu1 %v5245_v40  ;;  %v3281_v40 = vld [vmem:[#allocation6 + $0x8] sm:$0xff] }
 0x9a7   : > { %5436 = vmatpush3.msra.mxu1 %v5229_v31  ;;  %v3540_v31 = vld [vmem:[#allocation7 + $0xb8] sm:$0xff] }
 0x9a8   : > { %5437 = vmatprep.subr.mxu1 %v5244_v51  ;;  %v3539_v51 = vld [vmem:[#allocation7 + $0xb0] sm:$0xff] }
 0x9a9   : > { %5438 = vmatpush3.msra.mxu1 %v5228_v52  ;;  %v3538_v52 = vld [vmem:[#allocation7 + $0xa8] sm:$0xff] }
 0x9aa   : > { %5439 = vmatprep.subr.mxu1 %v5243_v45  ;;  %v3537_v45 = vld [vmem:[#allocation7 + $0xa0] sm:$0xff] }
 0x9ab   : > { %5440 = vmatpush3.msra.mxu1 %v5227_v54  ;;  %v3536_v54 = vld [vmem:[#allocation7 + $0x98] sm:$0xff] }
 0x9ac   : > { %5441 = vmatprep.subr.mxu1 %v5242_v23  ;;  %v3535_v23 = vld [vmem:[#allocation7 + $0x90] sm:$0xff] }
 0x9ad   : > { %5442 = vmatpush3.msra.mxu1 %v5226_v57  ;;  %v3534_v57 = vld [vmem:[#allocation7 + $0x88] sm:$0xff] }
 0x9ae   : > { %5443 = vmatprep.subr.mxu1 %v5241_v59  ;;  %v3533_v59 = vld [vmem:[#allocation7 + $0x80] sm:$0xff] }
 0x9af   : > { %5444 = vmatpush3.msra.mxu1 %v5225_v61  ;;  %v3617_v61 = vld [vmem:[#allocation6 + $0x20] sm:$0xff] }
 0x9b0   : > { %3178 = vmatmul.mubr.f32.vlgmr.msra.gmra.mxu1 %v6856_v19  ;;  %5601 = vmatprep.subr.mxu1 %v3290_v62  ;;  %v3194_v19 = vld [vmem:[#allocation7 + $0x20] sm:$0xff] }
 0x9b1   : > { %3182 = vmatprep.mubr.f32.mxu1 %v6869_v56  ;;  %5602 = vmatpush3.msra.mxu1 %v3290_v62  ;;  %v3287_v56 = vld [vmem:[#allocation7 + $0x60] sm:$0xff] }
 0x9b2   : > { %5603 = vmatprep.subr.mxu1 %v3289_v39  ;;  %5588 = vmatprep.subr.mxu0 %v3194_v19 }
 0x9b3   : > { %5604 = vmatpush3.msra.mxu1 %v3289_v39  ;;  %5589 = vmatpush3.msra.mxu0 %v3194_v19 }
 0x9b4   : > { %3183 = vmatmul.mubr.f32.gmra.mxu1 %v6876_v37  ;;  %5605 = vmatprep.subr.mxu1 %v3288_v44  ;;  %v3193_v37 = vld [vmem:[#allocation7 + $0x18] sm:$0xff] }
 0x9b5   : > { %5606 = vmatpush3.msra.mxu1 %v3288_v44  ;;  %5590 = vmatprep.subr.mxu0 %v3193_v37 }
 0x9b6   : > { %5607 = vmatprep.subr.mxu1 %v3287_v56  ;;  %5591 = vmatpush3.msra.mxu0 %v3193_v37  ;;  %v3618_v37 = vld [vmem:[#allocation6 + $0x28] sm:$0xff] }
 0x9b7   : > { %5608 = vmatpush3.msra.mxu1 %v3287_v56  ;;  %5592 = vmatprep.subr.mxu0 %v3192_v63 }
 0x9b8   : > { %5609 = vmatprep.subr.mxu1 %v3286_v1  ;;  %5593 = vmatpush3.msra.mxu0 %v3192_v63  ;;  %v3709_v63 = vld [vmem:[#allocation7 + $0xf0] sm:$0xff] }
 0x9b9   : > { %5610 = vmatpush3.msra.mxu1 %v3286_v1  ;;  %5594 = vmatprep.subr.mxu0 %v3191_v5  ;;  %v3710_v1 = vld [vmem:[#allocation7 + $0xf8] sm:$0xff] }
 0x9ba   : > { %5611 = vmatprep.subr.mxu1 %v3285_v3  ;;  %5595 = vmatpush3.msra.mxu0 %v3191_v5  ;;  %v3707_v5 = vld [vmem:[#allocation7 + $0xe0] sm:$0xff] }
 0x9bb   : > { %5612 = vmatpush3.msra.mxu1 %v3285_v3  ;;  %5596 = vmatprep.subr.mxu0 %v3190_v9  ;;  %v3708_v3 = vld [vmem:[#allocation7 + $0xe8] sm:$0xff] }
 0x9bc   : > { %5613 = vmatprep.subr.mxu1 %v3284_v7  ;;  %5597 = vmatpush3.msra.mxu0 %v3190_v9  ;;  %v3705_v9 = vld [vmem:[#allocation7 + $0xd0] sm:$0xff] }
 0x9bd   : > { %5614 = vmatpush3.msra.mxu1 %v3284_v7  ;;  %v3706_v7 = vld [vmem:[#allocation7 + $0xd8] sm:$0xff] }
 0x9be   : > { %5615 = vmatprep.subr.mxu1 %v3283_v11 }
 0x9bf   : > { %5616 = vmatpush3.msra.mxu1 %v3283_v11  ;;  %v3704_v11 = vld [vmem:[#allocation7 + $0xc8] sm:$0xff] }
 0xa2f   : > { %v5331_v13 = vpop.f32.mrf.mxu1  ;;  %v5407_v58 = vpop.f32.mrf.mxu0 }
 0xa31   : > { %v5332_v14 = vpop.f32.mrf.mxu1  ;;  %v5408_v18 = vpop.f32.mrf.mxu0 }
 0xa32   : > { %v5333_v24 = vadd.f32 %v5332_v14, %v5331_v13  ;;  %v5409_v33 = vadd.f32 %v5408_v18, %v5407_v58  ;;  %v3703_v13 = vld [vmem:[#allocation7 + $0xc0] sm:$0xff]  ;;  %v3788_v18 = vld [vmem:[#allocation6 + $0x38] sm:$0xff] }
 0xa33   : > { %v3787_v14 = vld [vmem:[#allocation6 + $0x30] sm:$0xff] }
 0xa34   : > { %v5334_v15 = vpop.f32.mrf.mxu1  ;;  %v5410_v26 = vpop.f32.mrf.mxu0 }
 0xa36   : > { %v5335_v53 = vpop.f32.mrf.mxu1  ;;  %v5411_v6 = vpop.f32.mrf.mxu0 }
 0xa37   : > { %v5336_v34 = vadd.f32 %v5335_v53, %v5334_v15  ;;  %v5412_v38 = vadd.f32 %v5411_v6, %v5410_v26  ;;  %v3877_v26 = vld [vmem:[#allocation7 + $0x120] sm:$0xff] }
 0xa50   : > { %v5369_v17 = vpop.f32.mrf.mxu1 }
 0xa52   : > { %v5370_v55 = vpop.f32.mrf.mxu1 }
 0xa53   : > { %v5371_v20 = vadd.f32 %v5370_v55, %v5369_v17 }
 0xa54   : > { %v5372_v60 = vpop.f32.mrf.mxu1 }
 0xa55   : > { %v2968_v28 = vmax.f32 %v5333_v24, %v5371_v20  ;;  %v3880_v20 = vld [vmem:[#allocation7 + $0x138] sm:$0xff]  ;;  %v3878_v24 = vld [vmem:[#allocation7 + $0x128] sm:$0xff] }
 0xa56   : > { %v5373_v21 = vpop.f32.mrf.mxu1 }
 0xa57   : > { %v5374_v30 = vadd.f32 %v5373_v21, %v5372_v60  ;;  %v3078_v10 = vmax.f32 %v2968_v28, %v5409_v33  ;;  %v3879_v21 = vld [vmem:[#allocation7 + $0x130] sm:$0xff]  ;;  %v3876_v28 = vld [vmem:[#allocation7 + $0x118] sm:$0xff]  ;;  %v3873_v33 = vld [vmem:[#allocation7 + $0x100] sm:$0xff] }
 0xa59   : > { %v2969_v8 = vmax.f32 %v5336_v34, %v5374_v30  ;;  %v3875_v30 = vld [vmem:[#allocation7 + $0x110] sm:$0xff] }
 0xa5a   : > { %v3957_v34 = vld [vmem:[#allocation6 + $0x40] sm:$0xff] }
 0xa5b   : > { %v3079_v22 = vmax.f32 %v2969_v8, %v5412_v38  ;;  %v3958_v38 = vld [vmem:[#allocation6 + $0x48] sm:$0xff] }
 0xa70   : > { %v5445_v32 = vpop.f32.mrf.mxu1 }
 0xa72   : > { %v5446_v35 = vpop.f32.mrf.mxu1 }
 0xa73   : > { %v5447_v12 = vadd.f32 %v5446_v35, %v5445_v32  ;;  %v3874_v32 = vld [vmem:[#allocation7 + $0x108] sm:$0xff] }
 0xa74   : > { %v5448_v36 = vpop.f32.mrf.mxu1 }
 0xa75   : > { %v7062_v41 = vmax.f32 %v3078_v10, %v5447_v12 }
 0xa76   : > { %v5449_v16 = vpop.f32.mrf.mxu1 }
 0xa77   : > { %v5450_v49 = vadd.f32 %v5449_v16, %v5448_v36  ;;  %5598 = vmatprep.mubr.msk.f32.mxu0 %vm3198_vm6, %v7062_v41  ;;  %5617 = vmatprep.mubr.msk.f32.mxu1 %vm3198_vm6, %v7062_v41  ;;  %v4050_v16 = vld [vmem:[#allocation7 + $0x178] sm:$0xff] }
 0xa79   : > { %v7068_v25 = vmax.f32 %v3079_v22, %v5450_v49  ;;  %v4049_v22 = vld [vmem:[#allocation7 + $0x170] sm:$0xff]  ;;  %v4048_v49 = vld [vmem:[#allocation7 + $0x168] sm:$0xff] }
 0xa7b   : > { %5599 = vmatmul.mubr.msk.f32.vlgmr.msra.gmra.mxu0 %vm3198_vm6, %v7068_v25  ;;  %5618 = vmatmul.mubr.msk.f32.vlgmr.msra.gmra.mxu1 %vm3198_vm6, %v7068_v25 }
 0xa7c   : > { %5624 = vmatprep.mubr.msk.f32.mxu0 %vm3369_vm7, %v3367_v50  ;;  %5657 = vmatprep.mubr.msk.f32.mxu1 %vm3369_vm7, %v3617_v61  ;;  %v4047_v50 = vld [vmem:[#allocation7 + $0x160] sm:$0xff] }
 0xa7d   : > { %v4217_v61 = vld [vmem:[#allocation7 + $0x1a0] sm:$0xff] }
 0xb3b   : > { %v5619_v43 = vpop.f32.mrf.mxu1  ;;  %v5600_v46 = vpop.f32.mrf.mxu0 }
 0xb3c   : > { %5620 = vmatprep.subr.mxu0 %v5619_v43 }
 0xb3d   : > { %v3357_v47 = vpop.f32.mrf.mxu1  ;;  %5621 = vmatpush3.msra.mxu0 %v5619_v43  ;;  %v3271_v29 = vpop.f32.mrf.mxu0  ;;  %v4046_v43 = vld [vmem:[#allocation7 + $0x158] sm:$0xff] }
 0xb3e   : > { %5622 = vmatprep.subr.mxu0 %v3357_v47 }
 0xb3f   : > { %5623 = vmatpush3.msra.mxu0 %v3357_v47  ;;  %v4044_v47 = vld [vmem:[#allocation7 + $0x148] sm:$0xff] }
 0xb40   : > { %5625 = vmatmul.mubr.msk.f32.vlgmr.msra.gmra.mxu0 %vm3369_vm7, %v3368_v48  ;;  %5627 = vmatprep.subr.mxu0 %v5600_v46  ;;  %v4043_v48 = vld [vmem:[#allocation7 + $0x140] sm:$0xff] }
 0xb41   : > { %5628 = vmatpush3.msra.mxu0 %v5600_v46  ;;  %5631 = vmatprep.mubr.msk.f32.mxu0 %vm3369_vm7, %v3280_v27  ;;  %v4045_v46 = vld [vmem:[#allocation7 + $0x150] sm:$0xff]  ;;  %v4127_v27 = vld [vmem:[#allocation6 + $0x50] sm:$0xff] }
 0xb42   : > { %5629 = vmatprep.subr.mxu0 %v3271_v29 }
 0xb43   : > { %5630 = vmatpush3.msra.mxu0 %v3271_v29 }
 0xb44   : > { %5632 = vmatmul.mubr.msk.f32.vlgmr.msra.gmra.mxu0 %vm3369_vm7, %v3281_v40  ;;  %5634 = vmatprep.subr.mxu0 %v3540_v31 }
 0xb45   : > { %5635 = vmatpush3.msra.mxu0 %v3540_v31  ;;  %5650 = vmatprep.mubr.msk.f32.mxu0 %vm3198_vm6, %v7062_v41 }
 0xb46   : > { %5636 = vmatprep.subr.mxu0 %v3539_v51 }
 0xb47   : > { %5637 = vmatpush3.msra.mxu0 %v3539_v51 }
 0xb48   : > { %5638 = vmatprep.subr.mxu0 %v3538_v52 }
 0xb49   : > { %5639 = vmatpush3.msra.mxu0 %v3538_v52 }
 0xb4a   : > { %5640 = vmatprep.subr.mxu0 %v3537_v45 }
 0xb4b   : > { %5641 = vmatpush3.msra.mxu0 %v3537_v45 }
 0xb4c   : > { %5642 = vmatprep.subr.mxu0 %v3536_v54 }
 0xb4d   : > { %5643 = vmatpush3.msra.mxu0 %v3536_v54  ;;  %v4128_v54 = vld [vmem:[#allocation6 + $0x58] sm:$0xff] }
 0xb4e   : > { %5644 = vmatprep.subr.mxu0 %v3535_v23 }
 0xb4f   : > { %5645 = vmatpush3.msra.mxu0 %v3535_v23  ;;  %v4220_v23 = vld [vmem:[#allocation7 + $0x1b8] sm:$0xff] }
 0xb50   : > { %5646 = vmatprep.subr.mxu0 %v3534_v57 }
 0xb51   : > { %5647 = vmatpush3.msra.mxu0 %v3534_v57  ;;  %v4219_v57 = vld [vmem:[#allocation7 + $0x1b0] sm:$0xff] }
 0xb52   : > { %5648 = vmatprep.subr.mxu0 %v3533_v59 }
 0xb53   : > { %5649 = vmatpush3.msra.mxu0 %v3533_v59  ;;  %v4218_v59 = vld [vmem:[#allocation7 + $0x1a8] sm:$0xff] }
 0xb54   : > { %5651 = vmatmul.mubr.msk.f32.vlgmr.msra.gmra.mxu0 %vm3198_vm6, %v7068_v25 }
 0xb55   : > { %5683 = vmatprep.mubr.msk.f32.mxu0 %vm3369_vm7, %v3787_v14  ;;  %v4385_v14 = vld [vmem:[#allocation7 + $0x1d0] sm:$0xff] }
 0xc00   : > { %v5626_v4 = vpop.f32.mrf.mxu0 }
 0xc02   : > { %v3442_v62 = vpop.f32.mrf.mxu0 }
 0xc04   : > { %v5633_v0 = vpop.f32.mrf.mxu0 }
 0xc05   : > { %v3529_v39 = vadd.f32 %v5633_v0, %v5626_v4  ;;  %v4216_v4 = vld [vmem:[#allocation7 + $0x198] sm:$0xff]  ;;  %v4214_v0 = vld [vmem:[#allocation7 + $0x188] sm:$0xff] }
 0xc06   : > { %v3523_v42 = vpop.f32.mrf.mxu0 }
 0xc07   : > { %v3524_v44 = vadd.f32 %v3523_v42, %v3442_v62  ;;  %v4215_v62 = vld [vmem:[#allocation7 + $0x190] sm:$0xff] }
 0xc08   : > { %v4297_v42 = vld [vmem:[#allocation6 + $0x60] sm:$0xff] }
 0xc14   : > { %v5652_v19 = vpop.f32.mrf.mxu0 }
 0xc15   : > { %5653 = vmatprep.subr.mxu1 %v5652_v19 }
 0xc16   : > { %v3607_v56 = vpop.f32.mrf.mxu0  ;;  %5654 = vmatpush3.msra.mxu1 %v5652_v19 }
 0xc17   : > { %5655 = vmatprep.subr.mxu1 %v3607_v56 }
 0xc18   : > { %5656 = vmatpush3.msra.mxu1 %v3607_v56 }
 0xc19   : > { %5658 = vmatmul.mubr.msk.f32.vlgmr.msra.gmra.mxu1 %vm3369_vm7, %v3618_v37  ;;  %5660 = vmatprep.subr.mxu1 %v3710_v1 }
 0xc1a   : > { %5661 = vmatpush3.msra.mxu1 %v3710_v1  ;;  %5676 = vmatprep.mubr.msk.f32.mxu1 %vm3198_vm6, %v7062_v41 }
 0xc1b   : > { %5662 = vmatprep.subr.mxu1 %v3709_v63 }
 0xc1c   : > { %5663 = vmatpush3.msra.mxu1 %v3709_v63 }
 0xc1d   : > { %5664 = vmatprep.subr.mxu1 %v3708_v3 }
 0xc1e   : > { %5665 = vmatpush3.msra.mxu1 %v3708_v3  ;;  %v4298_v3 = vld [vmem:[#allocation6 + $0x68] sm:$0xff] }
 0xc1f   : > { %5666 = vmatprep.subr.mxu1 %v3707_v5 }
 0xc20   : > { %5667 = vmatpush3.msra.mxu1 %v3707_v5  ;;  %v4390_v5 = vld [vmem:[#allocation7 + $0x1f8] sm:$0xff] }
 0xc21   : > { %5668 = vmatprep.subr.mxu1 %v3706_v7 }
 0xc22   : > { %5669 = vmatpush3.msra.mxu1 %v3706_v7  ;;  %v4389_v7 = vld [vmem:[#allocation7 + $0x1f0] sm:$0xff] }
 0xc23   : > { %5670 = vmatprep.subr.mxu1 %v3705_v9 }
 0xc24   : > { %5671 = vmatpush3.msra.mxu1 %v3705_v9  ;;  %v4388_v9 = vld [vmem:[#allocation7 + $0x1e8] sm:$0xff] }
 0xc25   : > { %5672 = vmatprep.subr.mxu1 %v3704_v11 }
 0xc26   : > { %5673 = vmatpush3.msra.mxu1 %v3704_v11  ;;  %v4387_v11 = vld [vmem:[#allocation7 + $0x1e0] sm:$0xff] }
 0xc27   : > { %5674 = vmatprep.subr.mxu1 %v3703_v13 }
 0xc28   : > { %5675 = vmatpush3.msra.mxu1 %v3703_v13  ;;  %v4386_v13 = vld [vmem:[#allocation7 + $0x1d8] sm:$0xff] }
 0xc29   : > { %5677 = vmatmul.mubr.msk.f32.vlgmr.msra.gmra.mxu1 %vm3198_vm6, %v7068_v25 }
 0xc2a   : > { %5709 = vmatprep.mubr.msk.f32.mxu1 %vm3369_vm7, %v3957_v34  ;;  %v4555_v34 = vld [vmem:[#allocation7 + $0x210] sm:$0xff] }
 0xcd9   : > { %v5659_v15 = vpop.f32.mrf.mxu1 }
 0xcda   : > { %v3701_v53 = vadd.f32 %v5659_v15, %v3529_v39  ;;  %v4213_v39 = vld [vmem:[#allocation7 + $0x180] sm:$0xff]  ;;  %v4384_v15 = vld [vmem:[#allocation7 + $0x1c8] sm:$0xff] }
 0xcdb   : > { %v3691_v17 = vpop.f32.mrf.mxu1 }
 0xcdc   : > { %v3700_v55 = vadd.f32 %v3691_v17, %v3524_v44  ;;  %v4467_v17 = vld [vmem:[#allocation6 + $0x70] sm:$0xff] }
 0xce9   : > { %v5678_v58 = vpop.f32.mrf.mxu1 }
 0xcea   : > { %5679 = vmatprep.subr.mxu0 %v5678_v58 }
 0xceb   : > { %v3777_v60 = vpop.f32.mrf.mxu1  ;;  %5680 = vmatpush3.msra.mxu0 %v5678_v58 }
 0xcec   : > { %5681 = vmatprep.subr.mxu0 %v3777_v60 }
 0xced   : > { %5682 = vmatpush3.msra.mxu0 %v3777_v60 }
 0xcee   : > { %5684 = vmatmul.mubr.msk.f32.vlgmr.msra.gmra.mxu0 %vm3369_vm7, %v3788_v18  ;;  %5686 = vmatprep.subr.mxu0 %v3880_v20 }
 0xcef   : > { %5687 = vmatpush3.msra.mxu0 %v3880_v20  ;;  %5702 = vmatprep.mubr.msk.f32.mxu0 %vm3198_vm6, %v7062_v41 }
 0xcf0   : > { %5688 = vmatprep.subr.mxu0 %v3879_v21 }
 0xcf1   : > { %5689 = vmatpush3.msra.mxu0 %v3879_v21 }
 0xcf2   : > { %5690 = vmatprep.subr.mxu0 %v3878_v24 }
 0xcf3   : > { %5691 = vmatpush3.msra.mxu0 %v3878_v24  ;;  %v4468_v24 = vld [vmem:[#allocation6 + $0x78] sm:$0xff] }
 0xcf4   : > { %5692 = vmatprep.subr.mxu0 %v3877_v26 }
 0xcf5   : > { %5693 = vmatpush3.msra.mxu0 %v3877_v26  ;;  %v4560_v26 = vld [vmem:[#allocation7 + $0x238] sm:$0xff] }
 0xcf6   : > { %5694 = vmatprep.subr.mxu0 %v3876_v28 }
 0xcf7   : > { %5695 = vmatpush3.msra.mxu0 %v3876_v28  ;;  %v4559_v28 = vld [vmem:[#allocation7 + $0x230] sm:$0xff] }
 0xcf8   : > { %5696 = vmatprep.subr.mxu0 %v3875_v30 }
 0xcf9   : > { %5697 = vmatpush3.msra.mxu0 %v3875_v30  ;;  %v4558_v30 = vld [vmem:[#allocation7 + $0x228] sm:$0xff] }
 0xcfa   : > { %5698 = vmatprep.subr.mxu0 %v3874_v32 }
 0xcfb   : > { %5699 = vmatpush3.msra.mxu0 %v3874_v32  ;;  %v4557_v32 = vld [vmem:[#allocation7 + $0x220] sm:$0xff] }
 0xcfc   : > { %5700 = vmatprep.subr.mxu0 %v3873_v33 }
 0xcfd   : > { %5701 = vmatpush3.msra.mxu0 %v3873_v33  ;;  %v4556_v33 = vld [vmem:[#allocation7 + $0x218] sm:$0xff] }
 0xcfe   : > { %5703 = vmatmul.mubr.msk.f32.vlgmr.msra.gmra.mxu0 %vm3198_vm6, %v7068_v25 }
 0xcff   : > { %5735 = vmatprep.mubr.msk.f32.mxu0 %vm3369_vm7, %v4127_v27 }
 0xdae   : > { %v5685_v6 = vpop.f32.mrf.mxu0 }
 0xdaf   : > { %v3871_v35 = vadd.f32 %v5685_v6, %v3701_v53  ;;  %v4383_v53 = vld [vmem:[#allocation7 + $0x1c0] sm:$0xff]  ;;  %v4554_v6 = vld [vmem:[#allocation7 + $0x208] sm:$0xff] }
 0xdb0   : > { %v3861_v8 = vpop.f32.mrf.mxu0 }
 0xdb1   : > { %v3870_v10 = vadd.f32 %v3861_v8, %v3700_v55 }
 0xdbe   : > { %v5704_v12 = vpop.f32.mrf.mxu0 }
 0xdbf   : > { %5705 = vmatprep.subr.mxu1 %v5704_v12 }
 0xdc0   : > { %v3947_v36 = vpop.f32.mrf.mxu0  ;;  %5706 = vmatpush3.msra.mxu1 %v5704_v12 }
 0xdc1   : > { %5707 = vmatprep.subr.mxu1 %v3947_v36 }
 0xdc2   : > { %5708 = vmatpush3.msra.mxu1 %v3947_v36 }
 0xdc3   : > { %5710 = vmatmul.mubr.msk.f32.vlgmr.msra.gmra.mxu1 %vm3369_vm7, %v3958_v38  ;;  %5712 = vmatprep.subr.mxu1 %v4050_v16 }
 0xdc4   : > { %5713 = vmatpush3.msra.mxu1 %v4050_v16  ;;  %5728 = vmatprep.mubr.msk.f32.mxu1 %vm3198_vm6, %v7062_v41 }
 0xdc5   : > { %5714 = vmatprep.subr.mxu1 %v4049_v22 }
 0xdc6   : > { %5715 = vmatpush3.msra.mxu1 %v4049_v22  ;;  %v4638_v22 = vld [vmem:[#allocation6 + $0x88] sm:$0xff] }
 0xdc7   : > { %5716 = vmatprep.subr.mxu1 %v4048_v49 }
 0xdc8   : > { %5717 = vmatpush3.msra.mxu1 %v4048_v49  ;;  %v4727_v49 = vpop.permute.xlu1 %4726 }
 0xdc9   : > { %5718 = vmatprep.subr.mxu1 %v4047_v50 }
 0xdca   : > { %5719 = vmatpush3.msra.mxu1 %v4047_v50 }
 0xdcb   : > { %5720 = vmatprep.subr.mxu1 %v4046_v43 }
 0xdcc   : > { %5721 = vmatpush3.msra.mxu1 %v4046_v43 }
 0xdcd   : > { %5722 = vmatprep.subr.mxu1 %v4045_v46 }
 0xdce   : > { %5723 = vmatpush3.msra.mxu1 %v4045_v46 }
 0xdcf   : > { %5724 = vmatprep.subr.mxu1 %v4044_v47 }
 0xdd0   : > { %5725 = vmatpush3.msra.mxu1 %v4044_v47 }
 0xdd1   : > { %5726 = vmatprep.subr.mxu1 %v4043_v48 }
 0xdd2   : > { %5727 = vmatpush3.msra.mxu1 %v4043_v48 }
 0xdd3   : > { %5729 = vmatmul.mubr.msk.f32.vlgmr.msra.gmra.mxu1 %vm3198_vm6, %v7068_v25 }
 0xdd4   : > { %5761 = vmatprep.mubr.msk.f32.mxu1 %vm3369_vm7, %v4297_v42 }
 0xe83   : > { %v5711_v29 = vpop.f32.mrf.mxu1 }
 0xe84   : > { %v4041_v40 = vadd.f32 %v5711_v29, %v3871_v35  ;;  %v4553_v35 = vld [vmem:[#allocation7 + $0x200] sm:$0xff] }
 0xe85   : > { %v4031_v31 = vpop.f32.mrf.mxu1 }
 0xe86   : > { %v4040_v51 = vadd.f32 %v4031_v31, %v3870_v10  ;;  %v4741_v31 = vpop.permute.xlu1 %4740 }
 0xe93   : > { %v5730_v52 = vpop.f32.mrf.mxu1 }
 0xe94   : > { %5731 = vmatprep.subr.mxu0 %v5730_v52 }
 0xe95   : > { %v4117_v45 = vpop.f32.mrf.mxu1  ;;  %5732 = vmatpush3.msra.mxu0 %v5730_v52 }
 0xe96   : > { %5733 = vmatprep.subr.mxu0 %v4117_v45 }
 0xe97   : > { %5734 = vmatpush3.msra.mxu0 %v4117_v45 }
 0xe98   : > { %5736 = vmatmul.mubr.msk.f32.vlgmr.msra.gmra.mxu0 %vm3369_vm7, %v4128_v54  ;;  %5738 = vmatprep.subr.mxu0 %v4220_v23 }
 0xe99   : > { %5739 = vmatpush3.msra.mxu0 %v4220_v23  ;;  %5754 = vmatprep.mubr.msk.f32.mxu0 %vm3198_vm6, %v7062_v41  ;;  %v4756_v23 = vld [vmem:[%s7214_s29] sm:$0xff] }
 0xe9a   : > { %5740 = vmatprep.subr.mxu0 %v4219_v57 }
 0xe9b   : > { %5741 = vmatpush3.msra.mxu0 %v4219_v57 }
 0xe9c   : > { %5742 = vmatprep.subr.mxu0 %v4218_v59 }
 0xe9d   : > { %5743 = vmatpush3.msra.mxu0 %v4218_v59  ;;  %v4757_v59 = vld [vmem:[%s7214_s29 + $0x8] sm:$0xff] }
 0xe9e   : > { %5744 = vmatprep.subr.mxu0 %v4217_v61 }
 0xe9f   : > { %5745 = vmatpush3.msra.mxu0 %v4217_v61  ;;  %v4758_v61 = vld [vmem:[%s7214_s29 + $0x10] sm:$0xf] }
 0xea0   : > { %5746 = vmatprep.subr.mxu0 %v4216_v4 }
 0xea1   : > { %5747 = vmatpush3.msra.mxu0 %v4216_v4 }
 0xea2   : > { %5748 = vmatprep.subr.mxu0 %v4215_v62 }
 0xea3   : > { %5749 = vmatpush3.msra.mxu0 %v4215_v62 }
 0xea4   : > { %5750 = vmatprep.subr.mxu0 %v4214_v0 }
 0xea5   : > { %5751 = vmatpush3.msra.mxu0 %v4214_v0 }
 0xea6   : > { %5752 = vmatprep.subr.mxu0 %v4213_v39 }
 0xea7   : > { %5753 = vmatpush3.msra.mxu0 %v4213_v39 }
 0xea8   : > { %5755 = vmatmul.mubr.msk.f32.vlgmr.msra.gmra.mxu0 %vm3198_vm6, %v7068_v25 }
 0xea9   : > { %5787 = vmatprep.mubr.msk.f32.mxu0 %vm3369_vm7, %v4467_v17 }
 0xf58   : > { %v5737_v44 = vpop.f32.mrf.mxu0 }
 0xf59   : > { %v4211_v19 = vadd.f32 %v5737_v44, %v4041_v40  ;;  %v4770_v44 = vpop.permute.xlu1 %4769 }
 0xf5a   : > { %v4201_v56 = vpop.f32.mrf.mxu0 }
 0xf5b   : > { %v4210_v37 = vadd.f32 %v4201_v56, %v4040_v51 }
 0xf68   : > { %v5756_v1 = vpop.f32.mrf.mxu0 }
 0xf69   : > { %5757 = vmatprep.subr.mxu1 %v5756_v1 }
 0xf6a   : > { %v4287_v63 = vpop.f32.mrf.mxu0  ;;  %5758 = vmatpush3.msra.mxu1 %v5756_v1 }
 0xf6b   : > { %5759 = vmatprep.subr.mxu1 %v4287_v63 }
 0xf6c   : > { %5760 = vmatpush3.msra.mxu1 %v4287_v63 }
 0xf6d   : > { %5762 = vmatmul.mubr.msk.f32.vlgmr.msra.gmra.mxu1 %vm3369_vm7, %v4298_v3  ;;  %5764 = vmatprep.subr.mxu1 %v4390_v5 }
 0xf6e   : > { %5765 = vmatpush3.msra.mxu1 %v4390_v5  ;;  %5780 = vmatprep.mubr.msk.f32.mxu1 %vm3198_vm6, %v7062_v41 }
 0xf6f   : > { %5766 = vmatprep.subr.mxu1 %v4389_v7 }
 0xf70   : > { %5767 = vmatpush3.msra.mxu1 %v4389_v7 }
 0xf71   : > { %5768 = vmatprep.subr.mxu1 %v4388_v9 }
 0xf72   : > { %5769 = vmatpush3.msra.mxu1 %v4388_v9 }
 0xf73   : > { %5770 = vmatprep.subr.mxu1 %v4387_v11 }
 0xf74   : > { %5771 = vmatpush3.msra.mxu1 %v4387_v11 }
 0xf75   : > { %5772 = vmatprep.subr.mxu1 %v4386_v13 }
 0xf76   : > { %5773 = vmatpush3.msra.mxu1 %v4386_v13  ;;  %v4887_v13 = vpop.permute.xlu1 %4886 }
 0xf77   : > { %5774 = vmatprep.subr.mxu1 %v4385_v14 }
 0xf78   : > { %5775 = vmatpush3.msra.mxu1 %v4385_v14 }
 0xf79   : > { %5776 = vmatprep.subr.mxu1 %v4384_v15 }
 0xf7a   : > { %5777 = vmatpush3.msra.mxu1 %v4384_v15 }
 0xf7b   : > { %5778 = vmatprep.subr.mxu1 %v4383_v53 }
 0xf7c   : > { %5779 = vmatpush3.msra.mxu1 %v4383_v53 }
 0xf7d   : > { %5781 = vmatmul.mubr.msk.f32.vlgmr.msra.gmra.mxu1 %vm3198_vm6, %v7068_v25 }
0x102d   : > { %v5763_v55 = vpop.f32.mrf.mxu1 }
0x102e   : > { %v4381_v58 = vadd.f32 %v5763_v55, %v4211_v19 }
0x102f   : > { %v4371_v60 = vpop.f32.mrf.mxu1 }
0x1030   : > { %v4380_v18 = vadd.f32 %v4371_v60, %v4210_v37 }
0x103d   : > { %v5782_v20 = vpop.f32.mrf.mxu1 }
0x103e   : > { %5783 = vmatprep.subr.mxu0 %v5782_v20 }
0x103f   : > { %v4457_v21 = vpop.f32.mrf.mxu1  ;;  %5784 = vmatpush3.msra.mxu0 %v5782_v20 }
0x1040   : > { %5785 = vmatprep.subr.mxu0 %v4457_v21 }
0x1041   : > { %5786 = vmatpush3.msra.mxu0 %v4457_v21 }
0x1042   : > { %5788 = vmatmul.mubr.msk.f32.vlgmr.msra.gmra.mxu0 %vm3369_vm7, %v4468_v24  ;;  %5790 = vmatprep.subr.mxu0 %v4560_v26 }
0x1043   : > { %5791 = vmatpush3.msra.mxu0 %v4560_v26  ;;  %5806 = vmatprep.mubr.msk.f32.mxu0 %vm3198_vm6, %v7062_v41  ;;  %v4637_v41 = vld [vmem:[#allocation6 + $0x80] sm:$0xff] }
0x1044   : > { %5792 = vmatprep.subr.mxu0 %v4559_v28  ;;  %5813 = vmatprep.mubr.msk.f32.mxu1 %vm3369_vm7, %v4637_v41 }
0x1045   : > { %5793 = vmatpush3.msra.mxu0 %v4559_v28 }
0x1046   : > { %5794 = vmatprep.subr.mxu0 %v4558_v30 }
0x1047   : > { %5795 = vmatpush3.msra.mxu0 %v4558_v30 }
0x1048   : > { %5796 = vmatprep.subr.mxu0 %v4557_v32 }
0x1049   : > { %5797 = vmatpush3.msra.mxu0 %v4557_v32 }
0x104a   : > { %5798 = vmatprep.subr.mxu0 %v4556_v33 }
0x104b   : > { %5799 = vmatpush3.msra.mxu0 %v4556_v33 }
0x104c   : > { %5800 = vmatprep.subr.mxu0 %v4555_v34 }
0x104d   : > { %5801 = vmatpush3.msra.mxu0 %v4555_v34 }
0x104e   : > { %5802 = vmatprep.subr.mxu0 %v4554_v6 }
0x104f   : > { %5803 = vmatpush3.msra.mxu0 %v4554_v6 }
0x1050   : > { %5804 = vmatprep.subr.mxu0 %v4553_v35 }
0x1051   : > { %5805 = vmatpush3.msra.mxu0 %v4553_v35 }
0x1052   : > { %5807 = vmatmul.mubr.msk.f32.vlgmr.msra.gmra.mxu0 %vm3198_vm6, %v7068_v25  ;;  %v4732_v25 = vpop.permute.xlu0 %4731 }
0x1056   : > { %v4746_v27 = vpop.permute.xlu0 %4745 }
0x105a   : > { %v4765_v4 = vpop.permute.xlu0 %4764 }
0x105e   : > { %v4775_v3 = vpop.permute.xlu0 %4774 }
0x1062   : > { %v4892_v53 = vpop.permute.xlu0 %4891 }
0x1102   : > { %v5789_v8 = vpop.f32.mrf.mxu0 }
0x1103   : > { %v4551_v10 = vadd.f32 %v5789_v8, %v4381_v58  ;;  %v4897_v58 = vpop.permute.xlu1 %4896 }
0x1104   : > { %v4541_v12 = vpop.f32.mrf.mxu0 }
0x1105   : > { %v4550_v36 = vadd.f32 %v4541_v12, %v4380_v18  ;;  %v4914_v18 = vpop.permute.xlu0 %4913 }
0x1107   : > { %v4919_v28 = vpop.permute.xlu1 %4918 }
0x1109   : > { %v4924_v33 = vpop.permute.xlu0 %4923 }
0x110b   : > { %v4935_v35 = vpop.permute.xlu1 %4934 }
0x110d   : > { %v4940_v41 = vpop.permute.xlu0 %4939 }
0x110f   : > { %v4945_v12 = vpop.permute.xlu1 %4944 }
0x1112   : > { %v5808_v38 = vpop.f32.mrf.mxu0 }
0x1113   : > { %5809 = vmatprep.subr.mxu1 %v5808_v38 }
0x1114   : > { %v4627_v16 = vpop.f32.mrf.mxu0  ;;  %5810 = vmatpush3.msra.mxu1 %v5808_v38 }
0x1115   : > { %5811 = vmatprep.subr.mxu1 %v4627_v16 }
0x1116   : > { %5812 = vmatpush3.msra.mxu1 %v4627_v16 }
0x1117   : > { %5814 = vmatmul.mubr.msk.f32.vlgmr.msra.gmra.mxu1 %vm3369_vm7, %v4638_v22  ;;  %5816 = vmatprep.subr.mxu1 %v6124_v2  ;;  %v4959_v22 = vpop.permute.xlu0 %4958 }
0x1118   : > { %5820 = vmatprep.mubr.msk.f32.mxu1 %vm6126_vm8, %v6124_v2 }
0x11d7   : > { %v5815_v50 = vpop.f32.mrf.mxu1 }
0x11d8   : > { %v4721_v43 = vadd.f32 %v5815_v50, %v4551_v10 }
0x11d9   : > { %v4711_v46 = vpop.f32.mrf.mxu1 }
0x11da   : > { %v4735_v47 = vmul.f32 %v4732_v25, %v4721_v43  ;;  %v4720_v48 = vadd.f32 %v4711_v46, %v4550_v36  ;;  %v4977_v43 = vld [vmem:[#allocation9] sm:$0xff] }
0x11dc   : > { %v4749_v29 = vadd.f32 %v4746_v27, %v4735_v47  ;;  %v4734_v40 = vmul.f32 %v4727_v49, %v4720_v48 }
0x11de   : > { %v4748_v51 = vadd.f32 %v4741_v31, %v4734_v40  ;;  %vm4751_vm9 = vcmp.gt.f32.partialorder %v4749_v29, 0.0  ;;  %v4753_v52 = vmul.f32 0.1, %v4749_v29 }
0x11e0   : > { %v4755_v45 = vsel %vm4751_vm9, %v4749_v29, %v4753_v52  ;;  %vm4750_vm10 = vcmp.gt.f32.partialorder %v4748_v51, 0.0  ;;  %v4752_v54 = vmul.f32 0.1, %v4748_v51  ;;  %v4964_v29 = vpop.permute.xlu1 %4963 }
0x11e1   : > { %5817 = vmatpush3.msra.mxu1 %v4755_v45  ;;  %v4978_v45 = vld [vmem:[#allocation9 + $0x8] sm:$0xff] }
0x11e2   : > { %5818 = vmatprep.subr.mxu1 %v6124_v2  ;;  %v4754_v57 = vsel %vm4750_vm10, %v4748_v51, %v4752_v54 }
0x11e3   : > { %5819 = vmatpush3.msra.mxu1 %v4754_v57 }
0x11e4   : > { %5821 = vmatmul.mubr.msk.f32.vlgmr.msra.gmra.mxu1 %vm3369_vm7, %v4756_v23 }
0x11e5   : > { %5823 = vmatprep.mubr.msk.f32.mxu1 %vm6126_vm8, %v6124_v2 }
0x11e8   : > { %5824 = vmatmul.mubr.msk.f32.gmra.mxu1 %vm3369_vm7, %v4757_v59  ;;  %v4969_v59 = vpop.permute.xlu0 %4968 }
0x11e9   : > { %5826 = vmatprep.mubr.msk.f32.mxu1 %vm6126_vm8, %v6124_v2 }
0x11ec   : > { %5827 = vmatmul.mubr.msk.f32.gmra.mxu1 %vm3369_vm7, %v4758_v61 }
0x12a4   : > { %v4852_v62 = vpop.f32.mrf.mxu1 }
0x12a5   : > { %v4853_v0 = vadd.f32 %v4852_v62, %v4765_v4 }
0x12a6   : > { %v5822_v39 = vpop.f32.mrf.mxu1 }
0x12a7   : > { %v4866_v42 = vsub.f32 0.0, %v4853_v0  ;;  %v4899_v14 = vmul.f32 %v4887_v13, %v4853_v0  ;;  %v4971_v49 = vmul.f32 %v4959_v22, %v4853_v0  ;;  %v4979_v0 = vld [vmem:[#allocation9 + $0x10] sm:$0xf] }
0x12a8   : > { %v4857_v19 = vpop.f32.mrf.mxu1 }
0x12a9   : > { %v4869_v56 = vmul.f32 1.442695, %v4866_v42  ;;  %v4858_v37 = vadd.f32 %v4857_v19, %v4770_v44  ;;  %v4902_v17 = vmul.f32 1.442695, %v4899_v14 }
0x12aa   : > { %v5825_v1 = vpop.f32.mrf.mxu1 }
0x12ab   : > { %5920 = vpow2.f32 %v4869_v56  ;;  %v4867_v63 = vsub.f32 0.0, %v4858_v37  ;;  %v4900_v55 = vmul.f32 %v4892_v53, %v4858_v37  ;;  %v4972_v51 = vmul.f32 %v4964_v29, %v4858_v37 }
0x12ac   : > { %v4862_v2 = vpop.f32.mrf.mxu1 }
0x12ad   : > { %v4871_v5 = vmul.f32 1.442695, %v4867_v63  ;;  %v7140_v7 = vadd.f32 %v4862_v2, %v4775_v3  ;;  %v4904_v21 = vmul.f32 1.442695, %v4900_v55 }
0x12ae   : > { %v5828_v9 = vpop.f32.mrf.mxu1 }
0x12af   : > { %5922 = vpow2.f32 %v4871_v5  ;;  %v4868_v11 = vsub.f32 0.0, %v7140_v7  ;;  %v4901_v24 = vmul.f32 %v4897_v58, %v7140_v7  ;;  %v4973_v62 = vmul.f32 %v4969_v59, %v7140_v7 }
0x12b1   : > { %v4873_v15 = vmul.f32 1.442695, %v4868_v11  ;;  %v4906_v32 = vmul.f32 1.442695, %v4901_v24 }
0x12b3   : > { %5924 = vpow2.f32 %v4873_v15 }
0x12b4   : > { %5926 = vpow2.f32 %v4902_v17 }
0x12b8   : > { %v5921_v60 = vpop.eup %5920 }
0x12b9   : > { %v4875_v20 = vadd.f32 1.0, %v5921_v60 }
0x12bb   : > { %5928 = vrcp.f32 %v4875_v20 }
0x12bc   : > { %v5923_v26 = vpop.eup %5922  ;;  %5930 = vpow2.f32 %v4904_v21 }
0x12bd   : > { %v4876_v30 = vadd.f32 1.0, %v5923_v26 }
0x12bf   : > { %5932 = vrcp.f32 %v4876_v30 }
0x12c0   : > { %v5925_v34 = vpop.eup %5924  ;;  %5934 = vpow2.f32 %v4906_v32 }
0x12c1   : > { %v4877_v6 = vadd.f32 1.0, %v5925_v34  ;;  %v5927_v8 = vpop.eup %5926 }
0x12c2   : > { %v4947_v38 = vmul.f32 %v5927_v8, %v4935_v35 }
0x12c3   : > { %5936 = vrcp.f32 %v4877_v6 }
0x12c8   : > { %v5929_v10 = vpop.eup %5928 }
0x12c9   : > { %v4926_v36 = vmul.f32 %v5929_v10, %v4914_v18  ;;  %v5931_v16 = vpop.eup %5930 }
0x12ca   : > { %v4948_v48 = vmul.f32 %v5931_v16, %v4940_v41 }
0x12cb   : > { %v4950_v25 = vadd.f32 %v4947_v38, %v4926_v36 }
0x12cc   : > { %v5933_v50 = vpop.eup %5932 }
0x12cd   : > { %v4974_v46 = vadd.f32 %v4971_v49, %v4950_v25  ;;  %v4927_v47 = vmul.f32 %v5933_v50, %v4919_v28  ;;  %v5935_v27 = vpop.eup %5934 }
0x12ce   : > { %v4949_v57 = vmul.f32 %v5935_v27, %v4945_v12 }
0x12cf   : > { %v4980_v40 = vadd.f32 %v4977_v43, %v4974_v46  ;;  %v4951_v31 = vadd.f32 %v4948_v48, %v4927_v47 }
0x12d0   : > { %v5937_v52 = vpop.eup %5936 }
0x12d1   : > { %4983 = vst.msk [vmem:[%s624_s17] sm:$0xff] %vm3198_vm6, %v4980_v40  ;;  %v4975_v54 = vadd.f32 %v4972_v51, %v4951_v31  ;;  %v4928_v23 = vmul.f32 %v5937_v52, %v4924_v33 }
0x12d3   : > { %v4981_v61 = vadd.f32 %v4978_v45, %v4975_v54  ;;  %v4952_v4 = vadd.f32 %v4949_v57, %v4928_v23 }
0x12d5   : > { %4984 = vst.msk [vmem:[%s624_s17 + $0x8] sm:$0xff] %vm3198_vm6, %v4981_v61  ;;  %v4976_v39 = vadd.f32 %v4973_v62, %v4952_v4 }
0x12d7   : > { %v4982_v42 = vadd.f32 %v4979_v0, %v4976_v39 }
0x12d9   : > { %4986 = vst.msk [vmem:[%s624_s17 + $0x10] sm:$0xf] %vm4985_vm11, %v4982_v42 }
0x12da PF: > { %s7216_s0 = sld [smem:[#allocation13_spill]]  ;;  %p29_p2 = scmp.ge.s32.totalorder %s6300_s21, 4  }
0x12db   : > { %s7217_s24 = smov %s6105_s25  ;;  %s7218_s25 = smov %s6109_s26 }
0x12dc   : > { %s7220_s27 = smov %s6300_s21  ;;  %31 = sbr.rel (!%p29_p2) target bundleno = 14 (0xe), region = 179 }
0x12e0   : > { %s7219_s26 = smov %s7216_s0 }
0x12e1   :  { %5008 = vsyncpa [#allocation3], 1 }
0x12e2   :  { %5010 = vsyncpa [#allocation3 + $0x1], 1 }
0x12e3   :  { %5011 = vsyncpa [#allocation5], 1 }
0x12e4   :  { %5012 = vsyncpa [#allocation8], 1 }

</bundles_post_ra>
